<compile_context>
chip_gen: v7x
topology: tpu7x:2x2x1
jax: 0.10.0
libtpu: 0.0.40
codegen_flags: <defaults>
</compile_context>

<pallas_src>
import numpy as np
import jax
import jax.numpy as jnp
from jax.experimental import pallas as pl
from jax.experimental.pallas import tpu as pltpu


def _make_node_euler_kernel(steps_per_block: int):
    U = steps_per_block

    def kernel(dts_ref, ks_ref, spc_ref,      # scalar prefetch (SMEM): [T], [T], [1]
               z0_ref, w_ref, b_ref,          # inputs (VMEM)
               out_ref,                       # output block (U, 2, TB, D)
               state_ref):                    # VMEM scratch: integration state (2, TB, D) f32
        s = pl.program_id(1)                  # time-block index

        # First time-block of this batch tile: load the initial condition into the
        # resident integration state.
        @pl.when(s == 0)
        def _():
            state_ref[...] = z0_ref[...].astype(jnp.float32)

        sp = spc_ref[0]                       # softplus(corr), precomputed on host
        base = s * U

        # U fused Euler steps per grid iteration (statically unrolled).  Row
        # base+u of the trajectory = state after (base+u) Euler steps, so the very
        # first row written is z0 itself (odeint convention, no host-side concat).
        for u in range(U):
            r = base + u
            x = state_ref[0]                  # [TB, D] dense (8,128)-tiled slab
            m = state_ref[1]                  # [TB, D] dense (8,128)-tiled slab
            out_ref[u, 0, :, :] = x.astype(out_ref.dtype)
            out_ref[u, 1, :, :] = m.astype(out_ref.dtype)

            dt = dts_ref[r]                   # t_{r+1} - t_r   (0.0 padding for r = T-1)
            k = ks_ref[r]                     # k(t_r) = t_r^(-3/2) * exp(t_r / 2)

            # NesterovNODE vector field (Identity activations, sign = +1).
            h = x * k
            dfh = jnp.dot(h.astype(w_ref.dtype), w_ref[...],
                          preferred_element_type=jnp.float32) + b_ref[...]
            dm = dfh - m - sp * h

            # Explicit Euler update (dx = m).
            state_ref[0] = x + dt * m
            state_ref[1] = m + dt * dm

    return kernel


def nodeintegrate_forward(z0, w, b, evaluation_times, corr, *,
                          batch_tile=256,
                          steps_per_block=8,
                          out_dtype=jnp.float32,
                          weight_dtype=jnp.bfloat16,
                          pytorch_layout=False):
    """Integrate the NesterovNODE field over `evaluation_times` with fused Euler steps.

    z0: [B, 2, D] (PyTorch [batch, channel, feature]); w: [D, D]; b: [D];
    evaluation_times: [T] strictly increasing, all > 0 (precondition: k(t) needs t > 0);
    corr: [1] (frozen correction parameter).

    Returns the trajectory in the kernel-native layout [T, 2, B, D] with out[0] == z0
    (set pytorch_layout=True for the original [T, B, 2, D], at the cost of an extra
    full-trajectory transpose in HBM).
    """
    B, two, D = z0.shape
    assert two == 2
    T = int(evaluation_times.shape[0])
    assert T >= 2, "need at least two evaluation times"
    assert D % 128 == 0, "feature dim must be lane-aligned (multiple of 128)"

    # Static host-side domain check only for plain numpy inputs (no device sync / jit break).
    if isinstance(evaluation_times, np.ndarray) and np.any(evaluation_times <= 0.0):
        raise ValueError("evaluation_times must be > 0 for the Nesterov k(t).")

    # Batch tiling: prefer large tiles, but keep >= 2 tiles when possible so the
    # "parallel" batch axis can still be split across v7x's two TensorCores.
    TB = min(batch_tile, B)
    if B % TB != 0:
        TB = B
    if B // TB < 2 and B >= 16 and (B // 2) % 8 == 0:
        TB = B // 2
    assert B % TB == 0 and TB % 8 == 0
    num_batch_tiles = B // TB

    # Time unroll factor: largest divisor of T not exceeding steps_per_block.
    U = max(u for u in range(1, min(steps_per_block, T) + 1) if T % u == 0)
    num_time_blocks = T // U

    # Host-side per-step scalar tables (depend only on the time grid) -> SMEM prefetch.
    # Entry T-1 is padding for the final (discarded) unrolled step: dt = 0 makes it a no-op.
    ts = jnp.asarray(evaluation_times, dtype=jnp.float32)
    dts = jnp.concatenate([ts[1:] - ts[:-1], jnp.zeros((1,), jnp.float32)])            # [T]
    ks = jnp.concatenate([jnp.exp(0.5 * ts[:-1] - 1.5 * jnp.log(ts[:-1])),
                          jnp.ones((1,), jnp.float32)])                                 # [T]
    sp_corr = jax.nn.softplus(jnp.asarray(corr, jnp.float32)).reshape(1)                # stable

    # Layout: [B, 2, D] -> [2, B, D] so x/m are contiguous (8,128)-tiled slabs (tiny copy).
    z0_t = jnp.transpose(z0, (1, 0, 2)).astype(jnp.float32)
    w_k = jnp.asarray(w, dtype=weight_dtype)          # bf16 default: 1 HBM read, 2x MXU rate
    b2d = jnp.asarray(b, jnp.float32).reshape(1, D)

    out_itemsize = jnp.dtype(out_dtype).itemsize
    w_itemsize = jnp.dtype(weight_dtype).itemsize
    flops = 2 * T * B * D * D + 10 * T * B * D
    bytes_accessed = (z0_t.size * 4 + w_k.size * w_itemsize + b2d.size * 4
                      + T * 2 * B * D * out_itemsize)

    # VMEM budget (double-buffered output + z0 blocks, resident W/b, state scratch);
    # cap at 48 MiB so large tilings still fit v7x's 64 MiB VMEM.
    block_bytes = (2 * U * 2 * TB * D * out_itemsize
                   + 2 * 2 * TB * D * 4
                   + 2 * (D * D * w_itemsize + D * 4)
                   + 2 * TB * D * 4)
    vmem_limit = int(min(max(32 * 1024 * 1024, 2 * block_bytes), 48 * 1024 * 1024))

    traj = pl.pallas_call(
        _make_node_euler_kernel(U),
        out_shape=jax.ShapeDtypeStruct((T, 2, B, D), out_dtype),
        grid_spec=pltpu.PrefetchScalarGridSpec(
            num_scalar_prefetch=3,
            grid=(num_batch_tiles, num_time_blocks),
            in_specs=[
                # initial condition: constant over time axis -> resident per batch tile
                pl.BlockSpec((2, TB, D), lambda bt, s, *_: (0, bt, 0)),
                # weights / bias: constant index_map -> one HBM read, resident in VMEM
                pl.BlockSpec((D, D), lambda bt, s, *_: (0, 0)),
                pl.BlockSpec((1, D), lambda bt, s, *_: (0, 0)),
            ],
            out_specs=pl.BlockSpec((U, 2, TB, D), lambda bt, s, *_: (s, 0, bt, 0)),
            scratch_shapes=[pltpu.VMEM((2, TB, D), jnp.float32)],
        ),
        compiler_params=pltpu.CompilerParams(
            dimension_semantics=("parallel", "arbitrary"),
            vmem_limit_bytes=vmem_limit,
        ),
        cost_estimate=pl.CostEstimate(
            flops=int(flops), transcendentals=0, bytes_accessed=int(bytes_accessed)),
    )(dts, ks, sp_corr, z0_t, w_k, b2d)

    if pytorch_layout:
        # PyTorch NODEintegrate layout [time, batch, channel, feature]; materializes a
        # full-trajectory transpose in HBM, so off by default.
        return jnp.transpose(traj, (0, 2, 1, 3))
    return traj


def nodeintegrate_reference(z0, w, b, evaluation_times, corr, weight_dtype=jnp.bfloat16):
    """Pure-JAX reference using the identical Euler scheme; returns [T, 2, B, D]."""
    ts = jnp.asarray(evaluation_times, jnp.float32)
    w_k = jnp.asarray(w, weight_dtype)
    bf = jnp.asarray(b, jnp.float32)
    sp = jax.nn.softplus(jnp.asarray(corr, jnp.float32)).reshape(-1)[0]
    x = z0[:, 0, :].astype(jnp.float32)
    m = z0[:, 1, :].astype(jnp.float32)
    outs = [jnp.stack([x, m], axis=0)]
    for s in range(int(ts.shape[0]) - 1):
        t = ts[s]
        dt = ts[s + 1] - ts[s]
        k = jnp.exp(0.5 * t - 1.5 * jnp.log(t))
        h = x * k
        dfh = jnp.dot(h.astype(weight_dtype), w_k,
                      preferred_element_type=jnp.float32) + bf
        dm = dfh - m - sp * h
        x = x + dt * m
        m = m + dt * dm
        outs.append(jnp.stack([x, m], axis=0))
    return jnp.stack(outs, axis=0)


if __name__ == "__main__":
    # 2 batch tiles of 128 rows; 15 Euler steps fused as 2 time blocks of U=8.
    B, D, T = 256, 128, 16
    key = jax.random.PRNGKey(0)
    kz, kw, kb = jax.random.split(key, 3)

    z0 = jax.random.normal(kz, (B, 2, D), dtype=jnp.float32)
    w = jax.random.normal(kw, (D, D), dtype=jnp.float32) * (1.0 / jnp.sqrt(D))
    b = jax.random.normal(kb, (D,), dtype=jnp.float32) * 0.01
    corr = jnp.array([-100.0], dtype=jnp.float32)      # frozen Parameter([corr])
    # Nesterov k(t) requires t > 0; integrate over [1, 2].
    ts = jnp.linspace(1.0, 2.0, T, dtype=jnp.float32)

    out = nodeintegrate_forward(z0, w, b, ts, corr)
    out = jax.block_until_ready(out)

    ref = nodeintegrate_reference(z0, w, b, ts, corr)
    assert out.shape == (T, 2, B, D)
    assert bool(jnp.all(jnp.isfinite(out)))
    assert bool(jnp.allclose(out[0], jnp.transpose(z0, (1, 0, 2))))   # out[0] == z0
    max_err = float(jnp.max(jnp.abs(out - ref)))
    assert bool(jnp.allclose(out, ref, rtol=1e-2, atol=1e-2)), f"mismatch vs reference: {max_err}"

    print("KERNEL_OK")
</pallas_src>

<mosaic_0001>
module attributes {stable_mosaic.version = 11 : i64} {
  func.func @kernel(%arg0: i32, %arg1: i32, %arg2: memref<16xf32, #tpu.memory_space<smem>>, %arg3: memref<16xf32, #tpu.memory_space<smem>>, %arg4: memref<1xf32, #tpu.memory_space<smem>>, %arg5: memref<2x128x128xf32, #tpu.memory_space<vmem>>, %arg6: memref<128x128xbf16, #tpu.memory_space<vmem>>, %arg7: memref<1x128xf32, #tpu.memory_space<vmem>>, %arg8: memref<8x2x128x128xf32, #tpu.memory_space<vmem>>, %arg9: memref<2x128x128xf32, #tpu.memory_space<vmem>>) attributes {dimension_semantics = [#tpu.dimension_semantics<parallel>, #tpu.dimension_semantics<arbitrary>], iteration_bounds = array<i64: 2, 2>, scalar_prefetch = 3 : i64, scratch_operands = 1 : i64, tpu.core_type = #tpu.core_type<tc>, window_params = [{transform_indices = @transform_0, window_bounds = array<i64: 2, 128, 128>}, {pipeline_mode = #tpu.pipeline_mode<synchronous>, transform_indices = @transform_1, window_bounds = array<i64: 128, 128>}, {pipeline_mode = #tpu.pipeline_mode<synchronous>, transform_indices = @transform_2, window_bounds = array<i64: 1, 128>}, {transform_indices = @transform_3, window_bounds = array<i64: 8, 2, 128, 128>}]} {
    %c0_i32 = arith.constant 0 : i32
    %0 = arith.cmpi eq, %arg1, %c0_i32 : i32
    %1 = arith.extui %0 : i1 to i32
    %c0_i32_0 = arith.constant 0 : i32
    %2 = arith.cmpi ne, %1, %c0_i32_0 : i32
    scf.if %2 {
      %c0_194 = arith.constant 0 : index
      %c0_195 = arith.constant 0 : index
      %c0_196 = arith.constant 0 : index
      %317 = vector.load %arg5[%c0_194, %c0_195, %c0_196] : memref<2x128x128xf32, #tpu.memory_space<vmem>>, vector<2x128x128xf32>
      %c0_197 = arith.constant 0 : index
      %c0_198 = arith.constant 0 : index
      %c0_199 = arith.constant 0 : index
      %318 = vector.load %arg9[%c0_197, %c0_198, %c0_199] : memref<2x128x128xf32, #tpu.memory_space<vmem>>, vector<2x128x128xf32>
      tpu.vector_store %arg9[%c0_197, %c0_198, %c0_199], %317 {strides = array<i32>} : memref<2x128x128xf32, #tpu.memory_space<vmem>>, vector<2x128x128xf32>,
    } else {
    }
    %c0 = arith.constant 0 : index
    %3 = memref.load %arg4[%c0] : memref<1xf32, #tpu.memory_space<smem>>
    %c8_i32 = arith.constant 8 : i32
    %4 = arith.muli %arg1, %c8_i32 : i32
    %c0_i32_1 = arith.constant 0 : i32
    %5 = arith.addi %4, %c0_i32_1 : i32
    %c0_2 = arith.constant 0 : index
    %c0_3 = arith.constant 0 : index
    %c0_4 = arith.constant 0 : index
    %6 = vector.load %arg9[%c0_2, %c0_3, %c0_4] : memref<2x128x128xf32, #tpu.memory_space<vmem>>, vector<1x128x128xf32>
    %7 = vector.shape_cast %6 : vector<1x128x128xf32> to vector<128x128xf32>
    %c1 = arith.constant 1 : index
    %c0_5 = arith.constant 0 : index
    %c0_6 = arith.constant 0 : index
    %8 = vector.load %arg9[%c1, %c0_5, %c0_6] : memref<2x128x128xf32, #tpu.memory_space<vmem>>, vector<1x128x128xf32>
    %9 = vector.shape_cast %8 : vector<1x128x128xf32> to vector<128x128xf32>
    %c0_7 = arith.constant 0 : index
    %c0_8 = arith.constant 0 : index
    %c0_9 = arith.constant 0 : index
    %c0_10 = arith.constant 0 : index
    %10 = vector.load %arg8[%c0_7, %c0_8, %c0_9, %c0_10] : memref<8x2x128x128xf32, #tpu.memory_space<vmem>>, vector<1x1x128x128xf32>
    %11 = vector.shape_cast %10 : vector<1x1x128x128xf32> to vector<128x128xf32>
    %12 = vector.shape_cast %7 : vector<128x128xf32> to vector<1x1x128x128xf32>
    tpu.vector_store %arg8[%c0_7, %c0_8, %c0_9, %c0_10], %12 {strides = array<i32>} : memref<8x2x128x128xf32, #tpu.memory_space<vmem>>, vector<1x1x128x128xf32>,
    %c0_11 = arith.constant 0 : index
    %c1_12 = arith.constant 1 : index
    %c0_13 = arith.constant 0 : index
    %c0_14 = arith.constant 0 : index
    %13 = vector.load %arg8[%c0_11, %c1_12, %c0_13, %c0_14] : memref<8x2x128x128xf32, #tpu.memory_space<vmem>>, vector<1x1x128x128xf32>
    %14 = vector.shape_cast %13 : vector<1x1x128x128xf32> to vector<128x128xf32>
    %15 = vector.shape_cast %9 : vector<128x128xf32> to vector<1x1x128x128xf32>
    tpu.vector_store %arg8[%c0_11, %c1_12, %c0_13, %c0_14], %15 {strides = array<i32>} : memref<8x2x128x128xf32, #tpu.memory_space<vmem>>, vector<1x1x128x128xf32>,
    %16 = arith.index_cast %5 : i32 to index
    %17 = memref.load %arg2[%16] : memref<16xf32, #tpu.memory_space<smem>>
    %18 = arith.index_cast %5 : i32 to index
    %19 = memref.load %arg3[%18] : memref<16xf32, #tpu.memory_space<smem>>
    %20 = vector.broadcast %19 : f32 to vector<128x128xf32>
    %21 = arith.mulf %7, %20 : vector<128x128xf32>
    %22 = arith.truncf %21 : vector<128x128xf32> to vector<128x128xbf16>
    %c0_15 = arith.constant 0 : index
    %c0_16 = arith.constant 0 : index
    %23 = vector.load %arg6[%c0_15, %c0_16] : memref<128x128xbf16, #tpu.memory_space<vmem>>, vector<128x128xbf16>
    %cst = arith.constant dense<0.000000e+00> : vector<128x128xf32>
    %24 = tpu.matmul %22, %23, %cst {dimension_numbers = #tpu.dot_dimension_numbers<[1], [0], [0], [1], [0, 0, 1, 1], [], []>} : vector<128x128xbf16>, vector<128x128xbf16>, vector<128x128xf32> -> vector<128x128xf32>
    %c0_17 = arith.constant 0 : index
    %c0_18 = arith.constant 0 : index
    %25 = vector.load %arg7[%c0_17, %c0_18] : memref<1x128xf32, #tpu.memory_space<vmem>>, vector<1x128xf32>
    %26 = vector.broadcast %25 : vector<1x128xf32> to vector<128x128xf32>
    %27 = arith.addf %24, %26 : vector<128x128xf32>
    %28 = arith.subf %27, %9 : vector<128x128xf32>
    %29 = vector.broadcast %3 : f32 to vector<128x128xf32>
    %30 = arith.mulf %29, %21 : vector<128x128xf32>
    %31 = arith.subf %28, %30 : vector<128x128xf32>
    %32 = vector.broadcast %17 : f32 to vector<128x128xf32>
    %33 = arith.mulf %32, %9 : vector<128x128xf32>
    %34 = arith.addf %7, %33 : vector<128x128xf32>
    %c0_19 = arith.constant 0 : index
    %c0_20 = arith.constant 0 : index
    %c0_21 = arith.constant 0 : index
    %35 = vector.load %arg9[%c0_19, %c0_20, %c0_21] : memref<2x128x128xf32, #tpu.memory_space<vmem>>, vector<1x128x128xf32>
    %36 = vector.shape_cast %35 : vector<1x128x128xf32> to vector<128x128xf32>
    %37 = vector.shape_cast %34 : vector<128x128xf32> to vector<1x128x128xf32>
    tpu.vector_store %arg9[%c0_19, %c0_20, %c0_21], %37 {strides = array<i32>} : memref<2x128x128xf32, #tpu.memory_space<vmem>>, vector<1x128x128xf32>,
    %38 = vector.broadcast %17 : f32 to vector<128x128xf32>
    %39 = arith.mulf %38, %31 : vector<128x128xf32>
    %40 = arith.addf %9, %39 : vector<128x128xf32>
    %c1_22 = arith.constant 1 : index
    %c0_23 = arith.constant 0 : index
    %c0_24 = arith.constant 0 : index
    %41 = vector.load %arg9[%c1_22, %c0_23, %c0_24] : memref<2x128x128xf32, #tpu.memory_space<vmem>>, vector<1x128x128xf32>
    %42 = vector.shape_cast %41 : vector<1x128x128xf32> to vector<128x128xf32>
    %43 = vector.shape_cast %40 : vector<128x128xf32> to vector<1x128x128xf32>
    tpu.vector_store %arg9[%c1_22, %c0_23, %c0_24], %43 {strides = array<i32>} : memref<2x128x128xf32, #tpu.memory_space<vmem>>, vector<1x128x128xf32>,
    %c1_i32 = arith.constant 1 : i32
    %44 = arith.addi %4, %c1_i32 : i32
    %c0_25 = arith.constant 0 : index
    %c0_26 = arith.constant 0 : index
    %c0_27 = arith.constant 0 : index
    %45 = vector.load %arg9[%c0_25, %c0_26, %c0_27] : memref<2x128x128xf32, #tpu.memory_space<vmem>>, vector<1x128x128xf32>
    %46 = vector.shape_cast %45 : vector<1x128x128xf32> to vector<128x128xf32>
    %c1_28 = arith.constant 1 : index
    %c0_29 = arith.constant 0 : index
    %c0_30 = arith.constant 0 : index
    %47 = vector.load %arg9[%c1_28, %c0_29, %c0_30] : memref<2x128x128xf32, #tpu.memory_space<vmem>>, vector<1x128x128xf32>
    %48 = vector.shape_cast %47 : vector<1x128x128xf32> to vector<128x128xf32>
    %c1_31 = arith.constant 1 : index
    %c0_32 = arith.constant 0 : index
    %c0_33 = arith.constant 0 : index
    %c0_34 = arith.constant 0 : index
    %49 = vector.load %arg8[%c1_31, %c0_32, %c0_33, %c0_34] : memref<8x2x128x128xf32, #tpu.memory_space<vmem>>, vector<1x1x128x128xf32>
    %50 = vector.shape_cast %49 : vector<1x1x128x128xf32> to vector<128x128xf32>
    %51 = vector.shape_cast %46 : vector<128x128xf32> to vector<1x1x128x128xf32>
    tpu.vector_store %arg8[%c1_31, %c0_32, %c0_33, %c0_34], %51 {strides = array<i32>} : memref<8x2x128x128xf32, #tpu.memory_space<vmem>>, vector<1x1x128x128xf32>,
    %c1_35 = arith.constant 1 : index
    %c1_36 = arith.constant 1 : index
    %c0_37 = arith.constant 0 : index
    %c0_38 = arith.constant 0 : index
    %52 = vector.load %arg8[%c1_35, %c1_36, %c0_37, %c0_38] : memref<8x2x128x128xf32, #tpu.memory_space<vmem>>, vector<1x1x128x128xf32>
    %53 = vector.shape_cast %52 : vector<1x1x128x128xf32> to vector<128x128xf32>
    %54 = vector.shape_cast %48 : vector<128x128xf32> to vector<1x1x128x128xf32>
    tpu.vector_store %arg8[%c1_35, %c1_36, %c0_37, %c0_38], %54 {strides = array<i32>} : memref<8x2x128x128xf32, #tpu.memory_space<vmem>>, vector<1x1x128x128xf32>,
    %55 = arith.index_cast %44 : i32 to index
    %56 = memref.load %arg2[%55] : memref<16xf32, #tpu.memory_space<smem>>
    %57 = arith.index_cast %44 : i32 to index
    %58 = memref.load %arg3[%57] : memref<16xf32, #tpu.memory_space<smem>>
    %59 = vector.broadcast %58 : f32 to vector<128x128xf32>
    %60 = arith.mulf %46, %59 : vector<128x128xf32>
    %61 = arith.truncf %60 : vector<128x128xf32> to vector<128x128xbf16>
    %c0_39 = arith.constant 0 : index
    %c0_40 = arith.constant 0 : index
    %62 = vector.load %arg6[%c0_39, %c0_40] : memref<128x128xbf16, #tpu.memory_space<vmem>>, vector<128x128xbf16>
    %cst_41 = arith.constant dense<0.000000e+00> : vector<128x128xf32>
    %63 = tpu.matmul %61, %62, %cst_41 {dimension_numbers = #tpu.dot_dimension_numbers<[1], [0], [0], [1], [0, 0, 1, 1], [], []>} : vector<128x128xbf16>, vector<128x128xbf16>, vector<128x128xf32> -> vector<128x128xf32>
    %c0_42 = arith.constant 0 : index
    %c0_43 = arith.constant 0 : index
    %64 = vector.load %arg7[%c0_42, %c0_43] : memref<1x128xf32, #tpu.memory_space<vmem>>, vector<1x128xf32>
    %65 = vector.broadcast %64 : vector<1x128xf32> to vector<128x128xf32>
    %66 = arith.addf %63, %65 : vector<128x128xf32>
    %67 = arith.subf %66, %48 : vector<128x128xf32>
    %68 = vector.broadcast %3 : f32 to vector<128x128xf32>
    %69 = arith.mulf %68, %60 : vector<128x128xf32>
    %70 = arith.subf %67, %69 : vector<128x128xf32>
    %71 = vector.broadcast %56 : f32 to vector<128x128xf32>
    %72 = arith.mulf %71, %48 : vector<128x128xf32>
    %73 = arith.addf %46, %72 : vector<128x128xf32>
    %c0_44 = arith.constant 0 : index
    %c0_45 = arith.constant 0 : index
    %c0_46 = arith.constant 0 : index
    %74 = vector.load %arg9[%c0_44, %c0_45, %c0_46] : memref<2x128x128xf32, #tpu.memory_space<vmem>>, vector<1x128x128xf32>
    %75 = vector.shape_cast %74 : vector<1x128x128xf32> to vector<128x128xf32>
    %76 = vector.shape_cast %73 : vector<128x128xf32> to vector<1x128x128xf32>
    tpu.vector_store %arg9[%c0_44, %c0_45, %c0_46], %76 {strides = array<i32>} : memref<2x128x128xf32, #tpu.memory_space<vmem>>, vector<1x128x128xf32>,
    %77 = vector.broadcast %56 : f32 to vector<128x128xf32>
    %78 = arith.mulf %77, %70 : vector<128x128xf32>
    %79 = arith.addf %48, %78 : vector<128x128xf32>
    %c1_47 = arith.constant 1 : index
    %c0_48 = arith.constant 0 : index
    %c0_49 = arith.constant 0 : index
    %80 = vector.load %arg9[%c1_47, %c0_48, %c0_49] : memref<2x128x128xf32, #tpu.memory_space<vmem>>, vector<1x128x128xf32>
    %81 = vector.shape_cast %80 : vector<1x128x128xf32> to vector<128x128xf32>
    %82 = vector.shape_cast %79 : vector<128x128xf32> to vector<1x128x128xf32>
    tpu.vector_store %arg9[%c1_47, %c0_48, %c0_49], %82 {strides = array<i32>} : memref<2x128x128xf32, #tpu.memory_space<vmem>>, vector<1x128x128xf32>,
    %c2_i32 = arith.constant 2 : i32
    %83 = arith.addi %4, %c2_i32 : i32
    %c0_50 = arith.constant 0 : index
    %c0_51 = arith.constant 0 : index
    %c0_52 = arith.constant 0 : index
    %84 = vector.load %arg9[%c0_50, %c0_51, %c0_52] : memref<2x128x128xf32, #tpu.memory_space<vmem>>, vector<1x128x128xf32>
    %85 = vector.shape_cast %84 : vector<1x128x128xf32> to vector<128x128xf32>
    %c1_53 = arith.constant 1 : index
    %c0_54 = arith.constant 0 : index
    %c0_55 = arith.constant 0 : index
    %86 = vector.load %arg9[%c1_53, %c0_54, %c0_55] : memref<2x128x128xf32, #tpu.memory_space<vmem>>, vector<1x128x128xf32>
    %87 = vector.shape_cast %86 : vector<1x128x128xf32> to vector<128x128xf32>
    %c2 = arith.constant 2 : index
    %c0_56 = arith.constant 0 : index
    %c0_57 = arith.constant 0 : index
    %c0_58 = arith.constant 0 : index
    %88 = vector.load %arg8[%c2, %c0_56, %c0_57, %c0_58] : memref<8x2x128x128xf32, #tpu.memory_space<vmem>>, vector<1x1x128x128xf32>
    %89 = vector.shape_cast %88 : vector<1x1x128x128xf32> to vector<128x128xf32>
    %90 = vector.shape_cast %85 : vector<128x128xf32> to vector<1x1x128x128xf32>
    tpu.vector_store %arg8[%c2, %c0_56, %c0_57, %c0_58], %90 {strides = array<i32>} : memref<8x2x128x128xf32, #tpu.memory_space<vmem>>, vector<1x1x128x128xf32>,
    %c2_59 = arith.constant 2 : index
    %c1_60 = arith.constant 1 : index
    %c0_61 = arith.constant 0 : index
    %c0_62 = arith.constant 0 : index
    %91 = vector.load %arg8[%c2_59, %c1_60, %c0_61, %c0_62] : memref<8x2x128x128xf32, #tpu.memory_space<vmem>>, vector<1x1x128x128xf32>
    %92 = vector.shape_cast %91 : vector<1x1x128x128xf32> to vector<128x128xf32>
    %93 = vector.shape_cast %87 : vector<128x128xf32> to vector<1x1x128x128xf32>
    tpu.vector_store %arg8[%c2_59, %c1_60, %c0_61, %c0_62], %93 {strides = array<i32>} : memref<8x2x128x128xf32, #tpu.memory_space<vmem>>, vector<1x1x128x128xf32>,
    %94 = arith.index_cast %83 : i32 to index
    %95 = memref.load %arg2[%94] : memref<16xf32, #tpu.memory_space<smem>>
    %96 = arith.index_cast %83 : i32 to index
    %97 = memref.load %arg3[%96] : memref<16xf32, #tpu.memory_space<smem>>
    %98 = vector.broadcast %97 : f32 to vector<128x128xf32>
    %99 = arith.mulf %85, %98 : vector<128x128xf32>
    %100 = arith.truncf %99 : vector<128x128xf32> to vector<128x128xbf16>
    %c0_63 = arith.constant 0 : index
    %c0_64 = arith.constant 0 : index
    %101 = vector.load %arg6[%c0_63, %c0_64] : memref<128x128xbf16, #tpu.memory_space<vmem>>, vector<128x128xbf16>
    %cst_65 = arith.constant dense<0.000000e+00> : vector<128x128xf32>
    %102 = tpu.matmul %100, %101, %cst_65 {dimension_numbers = #tpu.dot_dimension_numbers<[1], [0], [0], [1], [0, 0, 1, 1], [], []>} : vector<128x128xbf16>, vector<128x128xbf16>, vector<128x128xf32> -> vector<128x128xf32>
    %c0_66 = arith.constant 0 : index
    %c0_67 = arith.constant 0 : index
    %103 = vector.load %arg7[%c0_66, %c0_67] : memref<1x128xf32, #tpu.memory_space<vmem>>, vector<1x128xf32>
    %104 = vector.broadcast %103 : vector<1x128xf32> to vector<128x128xf32>
    %105 = arith.addf %102, %104 : vector<128x128xf32>
    %106 = arith.subf %105, %87 : vector<128x128xf32>
    %107 = vector.broadcast %3 : f32 to vector<128x128xf32>
    %108 = arith.mulf %107, %99 : vector<128x128xf32>
    %109 = arith.subf %106, %108 : vector<128x128xf32>
    %110 = vector.broadcast %95 : f32 to vector<128x128xf32>
    %111 = arith.mulf %110, %87 : vector<128x128xf32>
    %112 = arith.addf %85, %111 : vector<128x128xf32>
    %c0_68 = arith.constant 0 : index
    %c0_69 = arith.constant 0 : index
    %c0_70 = arith.constant 0 : index
    %113 = vector.load %arg9[%c0_68, %c0_69, %c0_70] : memref<2x128x128xf32, #tpu.memory_space<vmem>>, vector<1x128x128xf32>
    %114 = vector.shape_cast %113 : vector<1x128x128xf32> to vector<128x128xf32>
    %115 = vector.shape_cast %112 : vector<128x128xf32> to vector<1x128x128xf32>
    tpu.vector_store %arg9[%c0_68, %c0_69, %c0_70], %115 {strides = array<i32>} : memref<2x128x128xf32, #tpu.memory_space<vmem>>, vector<1x128x128xf32>,
    %116 = vector.broadcast %95 : f32 to vector<128x128xf32>
    %117 = arith.mulf %116, %109 : vector<128x128xf32>
    %118 = arith.addf %87, %117 : vector<128x128xf32>
    %c1_71 = arith.constant 1 : index
    %c0_72 = arith.constant 0 : index
    %c0_73 = arith.constant 0 : index
    %119 = vector.load %arg9[%c1_71, %c0_72, %c0_73] : memref<2x128x128xf32, #tpu.memory_space<vmem>>, vector<1x128x128xf32>
    %120 = vector.shape_cast %119 : vector<1x128x128xf32> to vector<128x128xf32>
    %121 = vector.shape_cast %118 : vector<128x128xf32> to vector<1x128x128xf32>
    tpu.vector_store %arg9[%c1_71, %c0_72, %c0_73], %121 {strides = array<i32>} : memref<2x128x128xf32, #tpu.memory_space<vmem>>, vector<1x128x128xf32>,
    %c3_i32 = arith.constant 3 : i32
    %122 = arith.addi %4, %c3_i32 : i32
    %c0_74 = arith.constant 0 : index
    %c0_75 = arith.constant 0 : index
    %c0_76 = arith.constant 0 : index
    %123 = vector.load %arg9[%c0_74, %c0_75, %c0_76] : memref<2x128x128xf32, #tpu.memory_space<vmem>>, vector<1x128x128xf32>
    %124 = vector.shape_cast %123 : vector<1x128x128xf32> to vector<128x128xf32>
    %c1_77 = arith.constant 1 : index
    %c0_78 = arith.constant 0 : index
    %c0_79 = arith.constant 0 : index
    %125 = vector.load %arg9[%c1_77, %c0_78, %c0_79] : memref<2x128x128xf32, #tpu.memory_space<vmem>>, vector<1x128x128xf32>
    %126 = vector.shape_cast %125 : vector<1x128x128xf32> to vector<128x128xf32>
    %c3 = arith.constant 3 : index
    %c0_80 = arith.constant 0 : index
    %c0_81 = arith.constant 0 : index
    %c0_82 = arith.constant 0 : index
    %127 = vector.load %arg8[%c3, %c0_80, %c0_81, %c0_82] : memref<8x2x128x128xf32, #tpu.memory_space<vmem>>, vector<1x1x128x128xf32>
    %128 = vector.shape_cast %127 : vector<1x1x128x128xf32> to vector<128x128xf32>
    %129 = vector.shape_cast %124 : vector<128x128xf32> to vector<1x1x128x128xf32>
    tpu.vector_store %arg8[%c3, %c0_80, %c0_81, %c0_82], %129 {strides = array<i32>} : memref<8x2x128x128xf32, #tpu.memory_space<vmem>>, vector<1x1x128x128xf32>,
    %c3_83 = arith.constant 3 : index
    %c1_84 = arith.constant 1 : index
    %c0_85 = arith.constant 0 : index
    %c0_86 = arith.constant 0 : index
    %130 = vector.load %arg8[%c3_83, %c1_84, %c0_85, %c0_86] : memref<8x2x128x128xf32, #tpu.memory_space<vmem>>, vector<1x1x128x128xf32>
    %131 = vector.shape_cast %130 : vector<1x1x128x128xf32> to vector<128x128xf32>
    %132 = vector.shape_cast %126 : vector<128x128xf32> to vector<1x1x128x128xf32>
    tpu.vector_store %arg8[%c3_83, %c1_84, %c0_85, %c0_86], %132 {strides = array<i32>} : memref<8x2x128x128xf32, #tpu.memory_space<vmem>>, vector<1x1x128x128xf32>,
    %133 = arith.index_cast %122 : i32 to index
    %134 = memref.load %arg2[%133] : memref<16xf32, #tpu.memory_space<smem>>
    %135 = arith.index_cast %122 : i32 to index
    %136 = memref.load %arg3[%135] : memref<16xf32, #tpu.memory_space<smem>>
    %137 = vector.broadcast %136 : f32 to vector<128x128xf32>
    %138 = arith.mulf %124, %137 : vector<128x128xf32>
    %139 = arith.truncf %138 : vector<128x128xf32> to vector<128x128xbf16>
    %c0_87 = arith.constant 0 : index
    %c0_88 = arith.constant 0 : index
    %140 = vector.load %arg6[%c0_87, %c0_88] : memref<128x128xbf16, #tpu.memory_space<vmem>>, vector<128x128xbf16>
    %cst_89 = arith.constant dense<0.000000e+00> : vector<128x128xf32>
    %141 = tpu.matmul %139, %140, %cst_89 {dimension_numbers = #tpu.dot_dimension_numbers<[1], [0], [0], [1], [0, 0, 1, 1], [], []>} : vector<128x128xbf16>, vector<128x128xbf16>, vector<128x128xf32> -> vector<128x128xf32>
    %c0_90 = arith.constant 0 : index
    %c0_91 = arith.constant 0 : index
    %142 = vector.load %arg7[%c0_90, %c0_91] : memref<1x128xf32, #tpu.memory_space<vmem>>, vector<1x128xf32>
    %143 = vector.broadcast %142 : vector<1x128xf32> to vector<128x128xf32>
    %144 = arith.addf %141, %143 : vector<128x128xf32>
    %145 = arith.subf %144, %126 : vector<128x128xf32>
    %146 = vector.broadcast %3 : f32 to vector<128x128xf32>
    %147 = arith.mulf %146, %138 : vector<128x128xf32>
    %148 = arith.subf %145, %147 : vector<128x128xf32>
    %149 = vector.broadcast %134 : f32 to vector<128x128xf32>
    %150 = arith.mulf %149, %126 : vector<128x128xf32>
    %151 = arith.addf %124, %150 : vector<128x128xf32>
    %c0_92 = arith.constant 0 : index
    %c0_93 = arith.constant 0 : index
    %c0_94 = arith.constant 0 : index
    %152 = vector.load %arg9[%c0_92, %c0_93, %c0_94] : memref<2x128x128xf32, #tpu.memory_space<vmem>>, vector<1x128x128xf32>
    %153 = vector.shape_cast %152 : vector<1x128x128xf32> to vector<128x128xf32>
    %154 = vector.shape_cast %151 : vector<128x128xf32> to vector<1x128x128xf32>
    tpu.vector_store %arg9[%c0_92, %c0_93, %c0_94], %154 {strides = array<i32>} : memref<2x128x128xf32, #tpu.memory_space<vmem>>, vector<1x128x128xf32>,
    %155 = vector.broadcast %134 : f32 to vector<128x128xf32>
    %156 = arith.mulf %155, %148 : vector<128x128xf32>
    %157 = arith.addf %126, %156 : vector<128x128xf32>
    %c1_95 = arith.constant 1 : index
    %c0_96 = arith.constant 0 : index
    %c0_97 = arith.constant 0 : index
    %158 = vector.load %arg9[%c1_95, %c0_96, %c0_97] : memref<2x128x128xf32, #tpu.memory_space<vmem>>, vector<1x128x128xf32>
    %159 = vector.shape_cast %158 : vector<1x128x128xf32> to vector<128x128xf32>
    %160 = vector.shape_cast %157 : vector<128x128xf32> to vector<1x128x128xf32>
    tpu.vector_store %arg9[%c1_95, %c0_96, %c0_97], %160 {strides = array<i32>} : memref<2x128x128xf32, #tpu.memory_space<vmem>>, vector<1x128x128xf32>,
    %c4_i32 = arith.constant 4 : i32
    %161 = arith.addi %4, %c4_i32 : i32
    %c0_98 = arith.constant 0 : index
    %c0_99 = arith.constant 0 : index
    %c0_100 = arith.constant 0 : index
    %162 = vector.load %arg9[%c0_98, %c0_99, %c0_100] : memref<2x128x128xf32, #tpu.memory_space<vmem>>, vector<1x128x128xf32>
    %163 = vector.shape_cast %162 : vector<1x128x128xf32> to vector<128x128xf32>
    %c1_101 = arith.constant 1 : index
    %c0_102 = arith.constant 0 : index
    %c0_103 = arith.constant 0 : index
    %164 = vector.load %arg9[%c1_101, %c0_102, %c0_103] : memref<2x128x128xf32, #tpu.memory_space<vmem>>, vector<1x128x128xf32>
    %165 = vector.shape_cast %164 : vector<1x128x128xf32> to vector<128x128xf32>
    %c4 = arith.constant 4 : index
    %c0_104 = arith.constant 0 : index
    %c0_105 = arith.constant 0 : index
    %c0_106 = arith.constant 0 : index
    %166 = vector.load %arg8[%c4, %c0_104, %c0_105, %c0_106] : memref<8x2x128x128xf32, #tpu.memory_space<vmem>>, vector<1x1x128x128xf32>
    %167 = vector.shape_cast %166 : vector<1x1x128x128xf32> to vector<128x128xf32>
    %168 = vector.shape_cast %163 : vector<128x128xf32> to vector<1x1x128x128xf32>
    tpu.vector_store %arg8[%c4, %c0_104, %c0_105, %c0_106], %168 {strides = array<i32>} : memref<8x2x128x128xf32, #tpu.memory_space<vmem>>, vector<1x1x128x128xf32>,
    %c4_107 = arith.constant 4 : index
    %c1_108 = arith.constant 1 : index
    %c0_109 = arith.constant 0 : index
    %c0_110 = arith.constant 0 : index
    %169 = vector.load %arg8[%c4_107, %c1_108, %c0_109, %c0_110] : memref<8x2x128x128xf32, #tpu.memory_space<vmem>>, vector<1x1x128x128xf32>
    %170 = vector.shape_cast %169 : vector<1x1x128x128xf32> to vector<128x128xf32>
    %171 = vector.shape_cast %165 : vector<128x128xf32> to vector<1x1x128x128xf32>
    tpu.vector_store %arg8[%c4_107, %c1_108, %c0_109, %c0_110], %171 {strides = array<i32>} : memref<8x2x128x128xf32, #tpu.memory_space<vmem>>, vector<1x1x128x128xf32>,
    %172 = arith.index_cast %161 : i32 to index
    %173 = memref.load %arg2[%172] : memref<16xf32, #tpu.memory_space<smem>>
    %174 = arith.index_cast %161 : i32 to index
    %175 = memref.load %arg3[%174] : memref<16xf32, #tpu.memory_space<smem>>
    %176 = vector.broadcast %175 : f32 to vector<128x128xf32>
    %177 = arith.mulf %163, %176 : vector<128x128xf32>
    %178 = arith.truncf %177 : vector<128x128xf32> to vector<128x128xbf16>
    %c0_111 = arith.constant 0 : index
    %c0_112 = arith.constant 0 : index
    %179 = vector.load %arg6[%c0_111, %c0_112] : memref<128x128xbf16, #tpu.memory_space<vmem>>, vector<128x128xbf16>
    %cst_113 = arith.constant dense<0.000000e+00> : vector<128x128xf32>
    %180 = tpu.matmul %178, %179, %cst_113 {dimension_numbers = #tpu.dot_dimension_numbers<[1], [0], [0], [1], [0, 0, 1, 1], [], []>} : vector<128x128xbf16>, vector<128x128xbf16>, vector<128x128xf32> -> vector<128x128xf32>
    %c0_114 = arith.constant 0 : index
    %c0_115 = arith.constant 0 : index
    %181 = vector.load %arg7[%c0_114, %c0_115] : memref<1x128xf32, #tpu.memory_space<vmem>>, vector<1x128xf32>
    %182 = vector.broadcast %181 : vector<1x128xf32> to vector<128x128xf32>
    %183 = arith.addf %180, %182 : vector<128x128xf32>
    %184 = arith.subf %183, %165 : vector<128x128xf32>
    %185 = vector.broadcast %3 : f32 to vector<128x128xf32>
    %186 = arith.mulf %185, %177 : vector<128x128xf32>
    %187 = arith.subf %184, %186 : vector<128x128xf32>
    %188 = vector.broadcast %173 : f32 to vector<128x128xf32>
    %189 = arith.mulf %188, %165 : vector<128x128xf32>
    %190 = arith.addf %163, %189 : vector<128x128xf32>
    %c0_116 = arith.constant 0 : index
    %c0_117 = arith.constant 0 : index
    %c0_118 = arith.constant 0 : index
    %191 = vector.load %arg9[%c0_116, %c0_117, %c0_118] : memref<2x128x128xf32, #tpu.memory_space<vmem>>, vector<1x128x128xf32>
    %192 = vector.shape_cast %191 : vector<1x128x128xf32> to vector<128x128xf32>
    %193 = vector.shape_cast %190 : vector<128x128xf32> to vector<1x128x128xf32>
    tpu.vector_store %arg9[%c0_116, %c0_117, %c0_118], %193 {strides = array<i32>} : memref<2x128x128xf32, #tpu.memory_space<vmem>>, vector<1x128x128xf32>,
    %194 = vector.broadcast %173 : f32 to vector<128x128xf32>
    %195 = arith.mulf %194, %187 : vector<128x128xf32>
    %196 = arith.addf %165, %195 : vector<128x128xf32>
    %c1_119 = arith.constant 1 : index
    %c0_120 = arith.constant 0 : index
    %c0_121 = arith.constant 0 : index
    %197 = vector.load %arg9[%c1_119, %c0_120, %c0_121] : memref<2x128x128xf32, #tpu.memory_space<vmem>>, vector<1x128x128xf32>
    %198 = vector.shape_cast %197 : vector<1x128x128xf32> to vector<128x128xf32>
    %199 = vector.shape_cast %196 : vector<128x128xf32> to vector<1x128x128xf32>
    tpu.vector_store %arg9[%c1_119, %c0_120, %c0_121], %199 {strides = array<i32>} : memref<2x128x128xf32, #tpu.memory_space<vmem>>, vector<1x128x128xf32>,
    %c5_i32 = arith.constant 5 : i32
    %200 = arith.addi %4, %c5_i32 : i32
    %c0_122 = arith.constant 0 : index
    %c0_123 = arith.constant 0 : index
    %c0_124 = arith.constant 0 : index
    %201 = vector.load %arg9[%c0_122, %c0_123, %c0_124] : memref<2x128x128xf32, #tpu.memory_space<vmem>>, vector<1x128x128xf32>
    %202 = vector.shape_cast %201 : vector<1x128x128xf32> to vector<128x128xf32>
    %c1_125 = arith.constant 1 : index
    %c0_126 = arith.constant 0 : index
    %c0_127 = arith.constant 0 : index
    %203 = vector.load %arg9[%c1_125, %c0_126, %c0_127] : memref<2x128x128xf32, #tpu.memory_space<vmem>>, vector<1x128x128xf32>
    %204 = vector.shape_cast %203 : vector<1x128x128xf32> to vector<128x128xf32>
    %c5 = arith.constant 5 : index
    %c0_128 = arith.constant 0 : index
    %c0_129 = arith.constant 0 : index
    %c0_130 = arith.constant 0 : index
    %205 = vector.load %arg8[%c5, %c0_128, %c0_129, %c0_130] : memref<8x2x128x128xf32, #tpu.memory_space<vmem>>, vector<1x1x128x128xf32>
    %206 = vector.shape_cast %205 : vector<1x1x128x128xf32> to vector<128x128xf32>
    %207 = vector.shape_cast %202 : vector<128x128xf32> to vector<1x1x128x128xf32>
    tpu.vector_store %arg8[%c5, %c0_128, %c0_129, %c0_130], %207 {strides = array<i32>} : memref<8x2x128x128xf32, #tpu.memory_space<vmem>>, vector<1x1x128x128xf32>,
    %c5_131 = arith.constant 5 : index
    %c1_132 = arith.constant 1 : index
    %c0_133 = arith.constant 0 : index
    %c0_134 = arith.constant 0 : index
    %208 = vector.load %arg8[%c5_131, %c1_132, %c0_133, %c0_134] : memref<8x2x128x128xf32, #tpu.memory_space<vmem>>, vector<1x1x128x128xf32>
    %209 = vector.shape_cast %208 : vector<1x1x128x128xf32> to vector<128x128xf32>
    %210 = vector.shape_cast %204 : vector<128x128xf32> to vector<1x1x128x128xf32>
    tpu.vector_store %arg8[%c5_131, %c1_132, %c0_133, %c0_134], %210 {strides = array<i32>} : memref<8x2x128x128xf32, #tpu.memory_space<vmem>>, vector<1x1x128x128xf32>,
    %211 = arith.index_cast %200 : i32 to index
    %212 = memref.load %arg2[%211] : memref<16xf32, #tpu.memory_space<smem>>
    %213 = arith.index_cast %200 : i32 to index
    %214 = memref.load %arg3[%213] : memref<16xf32, #tpu.memory_space<smem>>
    %215 = vector.broadcast %214 : f32 to vector<128x128xf32>
    %216 = arith.mulf %202, %215 : vector<128x128xf32>
    %217 = arith.truncf %216 : vector<128x128xf32> to vector<128x128xbf16>
    %c0_135 = arith.constant 0 : index
    %c0_136 = arith.constant 0 : index
    %218 = vector.load %arg6[%c0_135, %c0_136] : memref<128x128xbf16, #tpu.memory_space<vmem>>, vector<128x128xbf16>
    %cst_137 = arith.constant dense<0.000000e+00> : vector<128x128xf32>
    %219 = tpu.matmul %217, %218, %cst_137 {dimension_numbers = #tpu.dot_dimension_numbers<[1], [0], [0], [1], [0, 0, 1, 1], [], []>} : vector<128x128xbf16>, vector<128x128xbf16>, vector<128x128xf32> -> vector<128x128xf32>
    %c0_138 = arith.constant 0 : index
    %c0_139 = arith.constant 0 : index
    %220 = vector.load %arg7[%c0_138, %c0_139] : memref<1x128xf32, #tpu.memory_space<vmem>>, vector<1x128xf32>
    %221 = vector.broadcast %220 : vector<1x128xf32> to vector<128x128xf32>
    %222 = arith.addf %219, %221 : vector<128x128xf32>
    %223 = arith.subf %222, %204 : vector<128x128xf32>
    %224 = vector.broadcast %3 : f32 to vector<128x128xf32>
    %225 = arith.mulf %224, %216 : vector<128x128xf32>
    %226 = arith.subf %223, %225 : vector<128x128xf32>
    %227 = vector.broadcast %212 : f32 to vector<128x128xf32>
    %228 = arith.mulf %227, %204 : vector<128x128xf32>
    %229 = arith.addf %202, %228 : vector<128x128xf32>
    %c0_140 = arith.constant 0 : index
    %c0_141 = arith.constant 0 : index
    %c0_142 = arith.constant 0 : index
    %230 = vector.load %arg9[%c0_140, %c0_141, %c0_142] : memref<2x128x128xf32, #tpu.memory_space<vmem>>, vector<1x128x128xf32>
    %231 = vector.shape_cast %230 : vector<1x128x128xf32> to vector<128x128xf32>
    %232 = vector.shape_cast %229 : vector<128x128xf32> to vector<1x128x128xf32>
    tpu.vector_store %arg9[%c0_140, %c0_141, %c0_142], %232 {strides = array<i32>} : memref<2x128x128xf32, #tpu.memory_space<vmem>>, vector<1x128x128xf32>,
    %233 = vector.broadcast %212 : f32 to vector<128x128xf32>
    %234 = arith.mulf %233, %226 : vector<128x128xf32>
    %235 = arith.addf %204, %234 : vector<128x128xf32>
    %c1_143 = arith.constant 1 : index
    %c0_144 = arith.constant 0 : index
    %c0_145 = arith.constant 0 : index
    %236 = vector.load %arg9[%c1_143, %c0_144, %c0_145] : memref<2x128x128xf32, #tpu.memory_space<vmem>>, vector<1x128x128xf32>
    %237 = vector.shape_cast %236 : vector<1x128x128xf32> to vector<128x128xf32>
    %238 = vector.shape_cast %235 : vector<128x128xf32> to vector<1x128x128xf32>
    tpu.vector_store %arg9[%c1_143, %c0_144, %c0_145], %238 {strides = array<i32>} : memref<2x128x128xf32, #tpu.memory_space<vmem>>, vector<1x128x128xf32>,
    %c6_i32 = arith.constant 6 : i32
    %239 = arith.addi %4, %c6_i32 : i32
    %c0_146 = arith.constant 0 : index
    %c0_147 = arith.constant 0 : index
    %c0_148 = arith.constant 0 : index
    %240 = vector.load %arg9[%c0_146, %c0_147, %c0_148] : memref<2x128x128xf32, #tpu.memory_space<vmem>>, vector<1x128x128xf32>
    %241 = vector.shape_cast %240 : vector<1x128x128xf32> to vector<128x128xf32>
    %c1_149 = arith.constant 1 : index
    %c0_150 = arith.constant 0 : index
    %c0_151 = arith.constant 0 : index
    %242 = vector.load %arg9[%c1_149, %c0_150, %c0_151] : memref<2x128x128xf32, #tpu.memory_space<vmem>>, vector<1x128x128xf32>
    %243 = vector.shape_cast %242 : vector<1x128x128xf32> to vector<128x128xf32>
    %c6 = arith.constant 6 : index
    %c0_152 = arith.constant 0 : index
    %c0_153 = arith.constant 0 : index
    %c0_154 = arith.constant 0 : index
    %244 = vector.load %arg8[%c6, %c0_152, %c0_153, %c0_154] : memref<8x2x128x128xf32, #tpu.memory_space<vmem>>, vector<1x1x128x128xf32>
    %245 = vector.shape_cast %244 : vector<1x1x128x128xf32> to vector<128x128xf32>
    %246 = vector.shape_cast %241 : vector<128x128xf32> to vector<1x1x128x128xf32>
    tpu.vector_store %arg8[%c6, %c0_152, %c0_153, %c0_154], %246 {strides = array<i32>} : memref<8x2x128x128xf32, #tpu.memory_space<vmem>>, vector<1x1x128x128xf32>,
    %c6_155 = arith.constant 6 : index
    %c1_156 = arith.constant 1 : index
    %c0_157 = arith.constant 0 : index
    %c0_158 = arith.constant 0 : index
    %247 = vector.load %arg8[%c6_155, %c1_156, %c0_157, %c0_158] : memref<8x2x128x128xf32, #tpu.memory_space<vmem>>, vector<1x1x128x128xf32>
    %248 = vector.shape_cast %247 : vector<1x1x128x128xf32> to vector<128x128xf32>
    %249 = vector.shape_cast %243 : vector<128x128xf32> to vector<1x1x128x128xf32>
    tpu.vector_store %arg8[%c6_155, %c1_156, %c0_157, %c0_158], %249 {strides = array<i32>} : memref<8x2x128x128xf32, #tpu.memory_space<vmem>>, vector<1x1x128x128xf32>,
    %250 = arith.index_cast %239 : i32 to index
    %251 = memref.load %arg2[%250] : memref<16xf32, #tpu.memory_space<smem>>
    %252 = arith.index_cast %239 : i32 to index
    %253 = memref.load %arg3[%252] : memref<16xf32, #tpu.memory_space<smem>>
    %254 = vector.broadcast %253 : f32 to vector<128x128xf32>
    %255 = arith.mulf %241, %254 : vector<128x128xf32>
    %256 = arith.truncf %255 : vector<128x128xf32> to vector<128x128xbf16>
    %c0_159 = arith.constant 0 : index
    %c0_160 = arith.constant 0 : index
    %257 = vector.load %arg6[%c0_159, %c0_160] : memref<128x128xbf16, #tpu.memory_space<vmem>>, vector<128x128xbf16>
    %cst_161 = arith.constant dense<0.000000e+00> : vector<128x128xf32>
    %258 = tpu.matmul %256, %257, %cst_161 {dimension_numbers = #tpu.dot_dimension_numbers<[1], [0], [0], [1], [0, 0, 1, 1], [], []>} : vector<128x128xbf16>, vector<128x128xbf16>, vector<128x128xf32> -> vector<128x128xf32>
    %c0_162 = arith.constant 0 : index
    %c0_163 = arith.constant 0 : index
    %259 = vector.load %arg7[%c0_162, %c0_163] : memref<1x128xf32, #tpu.memory_space<vmem>>, vector<1x128xf32>
    %260 = vector.broadcast %259 : vector<1x128xf32> to vector<128x128xf32>
    %261 = arith.addf %258, %260 : vector<128x128xf32>
    %262 = arith.subf %261, %243 : vector<128x128xf32>
    %263 = vector.broadcast %3 : f32 to vector<128x128xf32>
    %264 = arith.mulf %263, %255 : vector<128x128xf32>
    %265 = arith.subf %262, %264 : vector<128x128xf32>
    %266 = vector.broadcast %251 : f32 to vector<128x128xf32>
    %267 = arith.mulf %266, %243 : vector<128x128xf32>
    %268 = arith.addf %241, %267 : vector<128x128xf32>
    %c0_164 = arith.constant 0 : index
    %c0_165 = arith.constant 0 : index
    %c0_166 = arith.constant 0 : index
    %269 = vector.load %arg9[%c0_164, %c0_165, %c0_166] : memref<2x128x128xf32, #tpu.memory_space<vmem>>, vector<1x128x128xf32>
    %270 = vector.shape_cast %269 : vector<1x128x128xf32> to vector<128x128xf32>
    %271 = vector.shape_cast %268 : vector<128x128xf32> to vector<1x128x128xf32>
    tpu.vector_store %arg9[%c0_164, %c0_165, %c0_166], %271 {strides = array<i32>} : memref<2x128x128xf32, #tpu.memory_space<vmem>>, vector<1x128x128xf32>,
    %272 = vector.broadcast %251 : f32 to vector<128x128xf32>
    %273 = arith.mulf %272, %265 : vector<128x128xf32>
    %274 = arith.addf %243, %273 : vector<128x128xf32>
    %c1_167 = arith.constant 1 : index
    %c0_168 = arith.constant 0 : index
    %c0_169 = arith.constant 0 : index
    %275 = vector.load %arg9[%c1_167, %c0_168, %c0_169] : memref<2x128x128xf32, #tpu.memory_space<vmem>>, vector<1x128x128xf32>
    %276 = vector.shape_cast %275 : vector<1x128x128xf32> to vector<128x128xf32>
    %277 = vector.shape_cast %274 : vector<128x128xf32> to vector<1x128x128xf32>
    tpu.vector_store %arg9[%c1_167, %c0_168, %c0_169], %277 {strides = array<i32>} : memref<2x128x128xf32, #tpu.memory_space<vmem>>, vector<1x128x128xf32>,
    %c7_i32 = arith.constant 7 : i32
    %278 = arith.addi %4, %c7_i32 : i32
    %c0_170 = arith.constant 0 : index
    %c0_171 = arith.constant 0 : index
    %c0_172 = arith.constant 0 : index
    %279 = vector.load %arg9[%c0_170, %c0_171, %c0_172] : memref<2x128x128xf32, #tpu.memory_space<vmem>>, vector<1x128x128xf32>
    %280 = vector.shape_cast %279 : vector<1x128x128xf32> to vector<128x128xf32>
    %c1_173 = arith.constant 1 : index
    %c0_174 = arith.constant 0 : index
    %c0_175 = arith.constant 0 : index
    %281 = vector.load %arg9[%c1_173, %c0_174, %c0_175] : memref<2x128x128xf32, #tpu.memory_space<vmem>>, vector<1x128x128xf32>
    %282 = vector.shape_cast %281 : vector<1x128x128xf32> to vector<128x128xf32>
    %c7 = arith.constant 7 : index
    %c0_176 = arith.constant 0 : index
    %c0_177 = arith.constant 0 : index
    %c0_178 = arith.constant 0 : index
    %283 = vector.load %arg8[%c7, %c0_176, %c0_177, %c0_178] : memref<8x2x128x128xf32, #tpu.memory_space<vmem>>, vector<1x1x128x128xf32>
    %284 = vector.shape_cast %283 : vector<1x1x128x128xf32> to vector<128x128xf32>
    %285 = vector.shape_cast %280 : vector<128x128xf32> to vector<1x1x128x128xf32>
    tpu.vector_store %arg8[%c7, %c0_176, %c0_177, %c0_178], %285 {strides = array<i32>} : memref<8x2x128x128xf32, #tpu.memory_space<vmem>>, vector<1x1x128x128xf32>,
    %c7_179 = arith.constant 7 : index
    %c1_180 = arith.constant 1 : index
    %c0_181 = arith.constant 0 : index
    %c0_182 = arith.constant 0 : index
    %286 = vector.load %arg8[%c7_179, %c1_180, %c0_181, %c0_182] : memref<8x2x128x128xf32, #tpu.memory_space<vmem>>, vector<1x1x128x128xf32>
    %287 = vector.shape_cast %286 : vector<1x1x128x128xf32> to vector<128x128xf32>
    %288 = vector.shape_cast %282 : vector<128x128xf32> to vector<1x1x128x128xf32>
    tpu.vector_store %arg8[%c7_179, %c1_180, %c0_181, %c0_182], %288 {strides = array<i32>} : memref<8x2x128x128xf32, #tpu.memory_space<vmem>>, vector<1x1x128x128xf32>,
    %289 = arith.index_cast %278 : i32 to index
    %290 = memref.load %arg2[%289] : memref<16xf32, #tpu.memory_space<smem>>
    %291 = arith.index_cast %278 : i32 to index
    %292 = memref.load %arg3[%291] : memref<16xf32, #tpu.memory_space<smem>>
    %293 = vector.broadcast %292 : f32 to vector<128x128xf32>
    %294 = arith.mulf %280, %293 : vector<128x128xf32>
    %295 = arith.truncf %294 : vector<128x128xf32> to vector<128x128xbf16>
    %c0_183 = arith.constant 0 : index
    %c0_184 = arith.constant 0 : index
    %296 = vector.load %arg6[%c0_183, %c0_184] : memref<128x128xbf16, #tpu.memory_space<vmem>>, vector<128x128xbf16>
    %cst_185 = arith.constant dense<0.000000e+00> : vector<128x128xf32>
    %297 = tpu.matmul %295, %296, %cst_185 {dimension_numbers = #tpu.dot_dimension_numbers<[1], [0], [0], [1], [0, 0, 1, 1], [], []>} : vector<128x128xbf16>, vector<128x128xbf16>, vector<128x128xf32> -> vector<128x128xf32>
    %c0_186 = arith.constant 0 : index
    %c0_187 = arith.constant 0 : index
    %298 = vector.load %arg7[%c0_186, %c0_187] : memref<1x128xf32, #tpu.memory_space<vmem>>, vector<1x128xf32>
    %299 = vector.broadcast %298 : vector<1x128xf32> to vector<128x128xf32>
    %300 = arith.addf %297, %299 : vector<128x128xf32>
    %301 = arith.subf %300, %282 : vector<128x128xf32>
    %302 = vector.broadcast %3 : f32 to vector<128x128xf32>
    %303 = arith.mulf %302, %294 : vector<128x128xf32>
    %304 = arith.subf %301, %303 : vector<128x128xf32>
    %305 = vector.broadcast %290 : f32 to vector<128x128xf32>
    %306 = arith.mulf %305, %282 : vector<128x128xf32>
    %307 = arith.addf %280, %306 : vector<128x128xf32>
    %c0_188 = arith.constant 0 : index
    %c0_189 = arith.constant 0 : index
    %c0_190 = arith.constant 0 : index
    %308 = vector.load %arg9[%c0_188, %c0_189, %c0_190] : memref<2x128x128xf32, #tpu.memory_space<vmem>>, vector<1x128x128xf32>
    %309 = vector.shape_cast %308 : vector<1x128x128xf32> to vector<128x128xf32>
    %310 = vector.shape_cast %307 : vector<128x128xf32> to vector<1x128x128xf32>
    tpu.vector_store %arg9[%c0_188, %c0_189, %c0_190], %310 {strides = array<i32>} : memref<2x128x128xf32, #tpu.memory_space<vmem>>, vector<1x128x128xf32>,
    %311 = vector.broadcast %290 : f32 to vector<128x128xf32>
    %312 = arith.mulf %311, %304 : vector<128x128xf32>
    %313 = arith.addf %282, %312 : vector<128x128xf32>
    %c1_191 = arith.constant 1 : index
    %c0_192 = arith.constant 0 : index
    %c0_193 = arith.constant 0 : index
    %314 = vector.load %arg9[%c1_191, %c0_192, %c0_193] : memref<2x128x128xf32, #tpu.memory_space<vmem>>, vector<1x128x128xf32>
    %315 = vector.shape_cast %314 : vector<1x128x128xf32> to vector<128x128xf32>
    %316 = vector.shape_cast %313 : vector<128x128xf32> to vector<1x128x128xf32>
    tpu.vector_store %arg9[%c1_191, %c0_192, %c0_193], %316 {strides = array<i32>} : memref<2x128x128xf32, #tpu.memory_space<vmem>>, vector<1x128x128xf32>,
    return
  }
  func.func @transform_0(%arg0: i32, %arg1: i32, %arg2: memref<16xf32, #tpu.memory_space<smem>>, %arg3: memref<16xf32, #tpu.memory_space<smem>>, %arg4: memref<1xf32, #tpu.memory_space<smem>>) -> (i32, i32, i32) {
    %c0_i32 = arith.constant 0 : i32
    %c0_i32_0 = arith.constant 0 : i32
    %c0_i32_1 = arith.constant 0 : i32
    return %c0_i32, %arg0, %c0_i32_0 : i32, i32, i32
  }
  func.func @transform_1(%arg0: i32, %arg1: i32, %arg2: memref<16xf32, #tpu.memory_space<smem>>, %arg3: memref<16xf32, #tpu.memory_space<smem>>, %arg4: memref<1xf32, #tpu.memory_space<smem>>) -> (i32, i32) {
    %c0_i32 = arith.constant 0 : i32
    %c0_i32_0 = arith.constant 0 : i32
    %c0_i32_1 = arith.constant 0 : i32
    return %c0_i32, %c0_i32_0 : i32, i32
  }
  func.func @transform_2(%arg0: i32, %arg1: i32, %arg2: memref<16xf32, #tpu.memory_space<smem>>, %arg3: memref<16xf32, #tpu.memory_space<smem>>, %arg4: memref<1xf32, #tpu.memory_space<smem>>) -> (i32, i32) {
    %c0_i32 = arith.constant 0 : i32
    %c0_i32_0 = arith.constant 0 : i32
    %c0_i32_1 = arith.constant 0 : i32
    return %c0_i32, %c0_i32_0 : i32, i32
  }
  func.func @transform_3(%arg0: i32, %arg1: i32, %arg2: memref<16xf32, #tpu.memory_space<smem>>, %arg3: memref<16xf32, #tpu.memory_space<smem>>, %arg4: memref<1xf32, #tpu.memory_space<smem>>) -> (i32, i32, i32, i32) {
    %c0_i32 = arith.constant 0 : i32
    %c0_i32_0 = arith.constant 0 : i32
    %c0_i32_1 = arith.constant 0 : i32
    return %arg1, %c0_i32, %arg0, %c0_i32_0 : i32, i32, i32, i32
  }
}

</mosaic_0001>

<bundles_post_ra>
// kernel: tpu_custom_call.1
= control target key start
LH: loop header
LB: loop body
LE: loop exit
PB: predicated region body
PF: predicated region fallthrough
CT: control target
= control target key end

     0   :  { %s8524_s0 = inlined_call_operand.hbm [shape: f32[16], index: 0, kind: input, shape index: {}]   ;;  %s8525_s2 = inlined_call_operand.<no memory space> [shape: f32[1], index: 2, kind: input, shape index: {}]   ;;  %s8526_s3 = inlined_call_operand.hbm [shape: f32[2,256,128], index: 3, kind: input, shape index: {}]   ;;  %s8527_s4 = inlined_call_operand.hbm [shape: bf16[128,128], index: 4, kind: input, shape index: {}]   ;;  %s8528_s5 = inlined_call_operand.hbm [shape: f32[1,128], index: 5, kind: input, shape index: {}]   ;;  %s8529_s6 = inlined_call_operand.hbm [shape: f32[16,2,256,128], index: 6, kind: output, shape index: {}]   ;;  %s8530_s1 = inlined_call_operand.hbm [shape: f32[16], index: 1, kind: input, shape index: {}]  }
   0x1   :  { %s4682_s23 = scalar_lea.hbm %s8524_s0, 16 }
   0x2   :  { %p4683_p0 = scmp.ne.s32.totalorder %s8524_s0, %s4682_s23  ;;  %p4686_p1 = scmp.lt.u32.totalorder %s4682_s23, %s8524_s0 }
   0x4   :  { %p4688_p2 = pnand %p4686_p1, %p4683_p0 }
   0x6   :  { %4691 = shalt.err (!%p4688_p2)  }
   0x7   :  { %s4860_s28 = smov [#allocation4]   ;;  %s4692_s9 = scalar_lea.hbm %s8530_s1, 16 }
   0x8   :  { %12 = dma.hbm_to_smem %s8524_s0, 16, %s4860_s28, [#allocation3] }
   0x9   :  { %p4693_p3 = scmp.ne.s32.totalorder %s8530_s1, %s4692_s9  ;;  %p4696_p4 = scmp.lt.u32.totalorder %s4692_s9, %s8530_s1 }
   0xb   :  { %p4698_p5 = pnand %p4696_p4, %p4693_p3 }
   0xd   :  { %4701 = shalt.err (!%p4698_p5)  }
   0xe   :  { %s4861_s14 = smov [#allocation5]   ;;  %15 = sst [smem:[#allocation6]] %s8525_s2 }
   0xf   :  { %14 = dma.hbm_to_smem %s8530_s1, 16, %s4861_s14, [#allocation3] }
  0x10   :  { %4802 = dma.done.wait [#allocation3], 32 }
  0x11   :  { %4803 = vsyncadd [#allocation3], 4294967264 }
  0x12   :  { %17 = sfence }
  0x13   :  { %18 = vsyncpa [#allocation8], 0 }
  0x14   :  { %20 = vsyncpa [#allocation8 + $0x1], 0 }
  0x15   :  { %21 = vsyncpa [#allocation11], 0 }
  0x16   :  { %22 = vsyncpa [#allocation9], 0 }
  0x17   :  { %24 = vsyncpa [#allocation9 + $0x1], 0  ;;  %s4941_s18 = smov 0   ;;  %s4943_s19 = smov 0  }
  0x18   :  { %s4945_s20 = smov 0   ;;  %s4947_s21 = smov 0  }
  0x19   :  { %s4949_s1 = smov 0   ;;  %s4951_s22 = smov 0  }
  0x1a   :  { %s4953_s2 = smov 0   ;;  %s4955_s23 = smov 0  }
  0x1b   :  { %s4957_s24 = smov 0   ;;  %s4959_s25 = smov 0  }
  0x1c   :  { %s4961_s26 = smov 0  }
  0x1d LB: > { %8626 = sst [smem:[#allocation23_spill]] %s4826_s20  ;;  %s3747_s27 = sadd.s32 4294967295, %s4858_s26   ;;  %s4858_s26 = sphi %s4961_s26, %s30_s26   ;;  %s4854_s25 = sphi %s4959_s25, %s8822_s25   ;;  %s4850_s24 = sphi %s4957_s24, %s8814_s24   ;;  %s4846_s23 = sphi %s4955_s23, %s8821_s23   ;;  %s4842_s2 = sphi %s4953_s2, %s8813_s2   ;;  %s4838_s22 = sphi %s4951_s22, %s8820_s22   ;;  %s4834_s1 = sphi %s4949_s1, %s8819_s1   ;;  %s4830_s21 = sphi %s4947_s21, %s8818_s21   ;;  %s4826_s20 = sphi %s4945_s20, %s8811_s20   ;;  %s4822_s19 = sphi %s4943_s19, %s8817_s19   ;;  %s4818_s18 = sphi %s4941_s18, %s8816_s18  }
  0x1e   : > { %8627 = sst [smem:[#allocation24_spill]] %s4850_s24  ;;  %s3748_s28 = sadd.s32 4294967294, %s4858_s26  }
  0x1f   : > { %s39_s29 = sadd.s32 1, %s4850_s24  ;;  %s42_s30 = sadd.s32 1, %s4854_s25 }
  0x20   : > { %p40_p6 = scmp.ge.s32.totalorder %s39_s29, 2  ;;  %s49_s7 = sadd.s32 1, %s4838_s22 }
  0x21   : > { %p56_p7 = scmp.ne.s32.totalorder %s4838_s22, %s4834_s1  ;;  %p57_p8 = scmp.eq.s32.totalorder %s4858_s26, 0 }
  0x22   : > { %s8824_s29 = smov (%p40_p6, %s39_s29), 0  ;;  %s8826_s30 = smov (!%p40_p6, %s42_s30), %s4854_s25 }
  0x23   : > { %8628 = sst [smem:[#allocation25_spill]] %s8824_s29  ;;  %p5005_p9 = por %p57_p8, %p56_p7 }
  0x24   : > { %p62_p10 = scmp.ne.s32.totalorder %s4834_s1, %s4830_s21  ;;  %p44_p11 = scmp.ge.s32.totalorder %s8826_s30, 2 }
  0x25   : > { %s8629_s8 = scalar_select %p5005_p9, 1, 0 }
  0x26   : > { %p5010_p12 = scmp.eq.s32.totalorder %s3747_s27, 0  ;;  %s114_s10 = ssub.s32 %s4850_s24, %s8824_s29 }
  0x27   : > { %s119_s11 = sadd.s32 1, %s4826_s20  ;;  %s8828_s30 = smov (%p44_p11, %s8826_s30), 0 }
  0x28   : > { %s8630_s9 = scalar_select %p5010_p12, 1, 0 }
  0x29   : > { %8631 = sst [smem:[#allocation26_spill]] %s8828_s30  ;;  %p5021_p13 = por %p5010_p12, %p62_p10 }
  0x2a   : > { %p129_p0 = scmp.ne.s32.totalorder %s4826_s20, %s4822_s19  ;;  %s46_s13 = ssub.s32 %s4854_s25, %s8828_s30 }
  0x2b   : > { %s8632_s12 = scalar_select %p5021_p13, 1, 0 }
  0x2c   : > { %p130_p1 = scmp.eq.s32.totalorder %s3747_s27, 3  ;;  %p47_p2 = scmp.eq.s32.totalorder %s46_s13, 0 }
  0x2d   : > { %s116_s14 = sor.u32 %s114_s10, %s46_s13  ;;  %p135_p5 = scmp.ne.s32.totalorder %s4822_s19, %s4818_s18 }
  0x2e   : > { %p117_p3 = scmp.eq.s32.totalorder %s116_s14, 0  ;;  %p5029_p4 = por %p130_p1, %p129_p0 }
  0x2f   : > { %s5034_s16 = scalar_select %p47_p2, %s4838_s22, %s49_s7  }
  0x30   : > { %s8633_s15 = scalar_select %p5029_p4, 1, 0 }
  0x31   : > { %8634 = sst [smem:[#allocation27_spill]] %s5034_s16  ;;  %p136_p6 = scmp.eq.s32.totalorder %s3748_s28, 3 }
  0x32   : > { %s5037_s0 = scalar_select %p117_p3, %s4826_s20, %s119_s11  }
  0x33   : > { %p3749_p7 = scmp.ge.s32.totalorder %s4858_s26, 1  ;;  %p143_p8 = scmp.lt.s32.totalorder %s4858_s26, 5 }
  0x34   : > { %8635 = sst [smem:[#allocation28_spill]] %s5037_s0  ;;  %p5043_p10 = por %p136_p6, %p135_p5 }
  0x35   : > { %p5047_p11 = pnand %p3749_p7, %p143_p8  ;;  %s4862_s27 = smov [#allocation10]  }
  0x36   : > { %s8636_s17 = scalar_select %p5043_p10, 1, 0 }
  0x37   : > { %s8638_s21 = scalar_select %p5047_p11, 1, 0 }
  0x38   : > { %8637 = sst [smem:[#allocation29_spill]] %s8636_s17  ;;  %s155_s10 = sshll.u32 %s4862_s27, 4  ;;  %s156_s10 = int_to_ptr.vmem [resolvable:$true] %s155_s10 }
  0x39   : > { %p4495_p0 = pneg %p5047_p11  ;;  %s4863_s28 = smov [#allocation12]  }
  0x3a   : > { %s169_s11 = sshll.u32 %s4863_s28, 4  ;;  %s4702_s30 = scalar_lea.hbm %s8527_s4, 1024  ;;  %s5059_s11 = int_to_ptr.vmem [resolvable:$true] %s169_s11 }
  0x3b   : > { %p5055_p1 = pnand %p4495_p0, %p5010_p12  ;;  %p4703_p2 = scmp.ne.s32.totalorder %s8527_s4, %s4702_s30 }
  0x3c   : > { %p4709_p7 = scmp.lt.u32.totalorder %s4702_s30, %s8527_s4 }
  0x3d   : > { %p4704_p3 = pneg %p5055_p1 }
  0x3f   : > { %p4705_p5 = pnand %p4704_p3, %p4703_p2 }
  0x41   : > { %p4706_p6 = pneg %p4705_p5 }
  0x43   : > { %p4711_p8 = pnand %p4709_p7, %p4706_p6 }
  0x45   : > { %4714 = shalt.err (!%p4711_p8)
}
  0x46   : > { %s4715_s28 = scalar_lea.vmem %s156_s10, 1024  ;;  %p4723_p12 = scmp.lt.s32.totalorder %s156_s10, %s156_s10 }
  0x47   : > { %p4716_p0 = scmp.ne.s32.totalorder %s156_s10, %s4715_s28  ;;  %p4724_p13 = scmp.lt.s32.totalorder %s4715_s28, %s4715_s28 }
  0x49   : > { %p4718_p10 = pnand %p4716_p0, %p4704_p3  ;;  %p4725_p11 = por %p4724_p13, %p4723_p12 }
  0x4b   : > { %p4719_p4 = pneg %p4718_p10 }
  0x4d   : > { %p4726_p9 = pnand %p4725_p11, %p4719_p4 }
  0x4f   : > { %4729 = shalt.err (!%p4726_p9)
}
  0x50   : > { %s4864_s29 = smov 64   ;;  %s4865_s13 = smov 4  }
  0x51   : > { %4498 = dma.hbm_to_vmem [thread:$0]  (!%p5055_p1), %s8527_s4, 1024, %s156_s10, [#allocation11], %s4864_s29, %s4864_s29, %s4865_s13  }
  0x52   : > { %s4730_s27 = scalar_lea.hbm %s8528_s5, 16 }
  0x53   : > { %p4731_p10 = scmp.ne.s32.totalorder %s8528_s5, %s4730_s27  ;;  %p4737_p13 = scmp.lt.u32.totalorder %s4730_s27, %s8528_s5 }
  0x55   : > { %p4733_p9 = pnand %p4731_p10, %p4704_p3 }
  0x57   : > { %p4734_p12 = pneg %p4733_p9 }
  0x59   : > { %p4739_p4 = pnand %p4737_p13, %p4734_p12 }
  0x5b   : > { %4742 = shalt.err (!%p4739_p4)
}
  0x5c   : > { %s4743_s10 = scalar_lea.vmem %s5059_s11, 16  ;;  %s4750_s20 = scalar_lea.vmem %s5059_s11, 32 }
  0x5d   : > { %p4744_p11 = scmp.ne.s32.totalorder %s5059_s11, %s4743_s10  ;;  %p4751_p6 = scmp.lt.s32.totalorder %s5059_s11, %s5059_s11 }
  0x5e   : > { %p4752_p7 = scmp.lt.s32.totalorder %s4750_s20, %s4743_s10 }
  0x5f   : > { %p4746_p2 = pnand %p4744_p11, %p4704_p3 }
  0x60   : > { %p4753_p8 = por %p4752_p7, %p4751_p6 }
  0x61   : > { %p4747_p5 = pneg %p4746_p2 }
  0x63   : > { %p4754_p0 = pnand %p4753_p8, %p4747_p5 }
  0x65   : > { %4757 = shalt.err (!%p4754_p0)
}
  0x66   : > { %4501 = dma.hbm_to_vmem [thread:$0]  (!%p5055_p1), %s8528_s5, 16, %s5059_s11, [#allocation11]  }
  0x67   : > { %p3752_p10 = scmp.ge.s32.totalorder %s4858_s26, 4 }
  0x69   : > { %176 = sbr.rel (%p3752_p10) target bundleno = 127 (0x7f), region = 24 }
  0x70   : > { %s180_s29 = sand.u32 1, %s4838_s22   ;;  %s4084_s13 = sshll.u32 %s4854_s25, 11 }
  0x71   : > { %s3753_s24 = sshll.u32 %s180_s29, 8  ;;  %s190_s16 = scalar_lea.hbm %s8526_s3, %s4084_s13 }
  0x72   : > { %p8640_p3 = scmp.ne.s32.totalorder %s8629_s8, 0  ;;  %s184_s14 = scalar_lea.vmem [#allocation7], %s3753_s24 }
  0x73   : > { %s203_s27 = sshll.u32 %s184_s14, 4  ;;  %s4866_s10 = smov 4096   ;;  %s204_s27 = int_to_ptr.vmem [resolvable:$true] %s203_s27 }
  0x74   : > { %s4474_s11 = scalar_select %p8640_p3, [#allocation0], [#allocation18] }
  0x75   : > { %4475 = sst [smem:[#allocation15]] (%p8640_p3), %s4866_s10  ;;  %s4867_s20 = smov 2048  }
  0x76   : > { %s195_s28 = sld [smem:[%s4474_s11]]   ;;  %s4868_s0 = smov 16  }
  0x77   : > { %4476 = sst [smem:[#allocation15 + $0x1]] (%p8640_p3), %s4867_s20  ;;  %s4869_s17 = smov 128  }
  0x78   : > { %4477 = sst [smem:[#allocation15 + $0x2]] (%p8640_p3), %s4868_s0  ;;  %s4870_s24 = smov 8  }
  0x79   : > { %4478 = sst [smem:[#allocation15 + $0x3]] (%p8640_p3), %s4869_s17  ;;  %s181_s30 = scalar_lea.sflag [#allocation8], %s180_s29 }
  0x7a   : > { %4479 = sst [smem:[#allocation15 + $0x4]] (%p8640_p3), %s4869_s17  ;;  %s4871_s11 = smov [#allocation14]  }
  0x7b   : > { %4480 = sst [smem:[#allocation15 + $0x5]] (%p8640_p3), %s4870_s24 }
  0x7c   : > { %s3756_s13 = sshll.u32 %s195_s28, 26 }
  0x7d   : > { %s3757_s7 = sadd.s32 134217728, %s3756_s13 }
  0x7e   : > { %4481 = dma.general (%p8640_p3), %s190_s16, 4096, %s204_s27, %s181_s30, %s4871_s11, [#allocation15], %s3757_s7, 0  }
  0x7f PF: > { %p8641_p1 = scmp.ne.s32.totalorder %s8638_s21, 0 }
  0x81   : > { %228 = sbr.rel (%p8641_p1) target bundleno = 1284 (0x504), region = 32 }
  0x88   : > { %s230_s14 = sand.u32 1, %s4834_s1   ;;  %p8642_p9 = scmp.ne.s32.totalorder %s8632_s12, 0 }
  0x89   : > { %s3759_s10 = sshll.u32 %s230_s14, 8  ;;  %s231_s20 = scalar_lea.sflag [#allocation8], %s230_s14 }
  0x8a   : > { %s5134_s0 = scalar_lea.vmem [#allocation7], %s3759_s10 }
  0x8b   : > { %4805 = dma.done.wait (%p8642_p9), %s231_s20, 4096  }
  0x8c   : > { %4807 = vsyncadd (%p8642_p9), %s231_s20, 4294963200  ;;  %p8643_p12 = scmp.ne.s32.totalorder %s8630_s9, 0 }
  0x8e   : > { %4809 = dma.done.wait (%p8643_p12), [#allocation11], 1040  }
  0x8f   : > { %4811 = vsyncadd (%p8643_p12), [#allocation11], 4294966256  ;;  %s262_s8 = sand.u32 1, %s4822_s19   ;;  %p3763_p13 = scmp.ne.s32.totalorder %s4842_s2, 0 }
  0x90   : > { %s3762_s21 = sshll.u32 %s262_s8, 11  ;;  %v273_v0 = vld [vmem:[%s5134_s0] sm:$0xff] (!%p3763_p13)  ;;  %v274_v1 = vld [vmem:[%s5134_s0 + $0x8] sm:$0xff] (!%p3763_p13)  ;;  %v275_v2 = vld [vmem:[%s5134_s0 + $0x10] sm:$0xff] (!%p3763_p13) }
  0x91   : > { %s5147_s29 = scalar_lea.vmem [#allocation13], %s3762_s21  ;;  %272 = sbr.rel (%p3763_p13) target bundleno = 161 (0xa1), region = 48  ;;  %305 = vst [vmem:[#allocation2] sm:$0xff] (!%p3763_p13), %v273_v0  ;;  %306 = vst [vmem:[#allocation2 + $0x8] sm:$0xff] (!%p3763_p13), %v274_v1  ;;  %v276_v3 = vld [vmem:[%s5134_s0 + $0x18] sm:$0xff] (!%p3763_p13)  ;;  %v277_v4 = vld [vmem:[%s5134_s0 + $0x20] sm:$0xff] (!%p3763_p13) }
  0x92   : > { %307 = vst [vmem:[#allocation2 + $0x10] sm:$0xff] (!%p3763_p13), %v275_v2  ;;  %v278_v5 = vld [vmem:[%s5134_s0 + $0x28] sm:$0xff] (!%p3763_p13)  ;;  %308 = vst [vmem:[#allocation2 + $0x18] sm:$0xff] (!%p3763_p13), %v276_v3  ;;  %v279_v6 = vld [vmem:[%s5134_s0 + $0x30] sm:$0xff] (!%p3763_p13) }
  0x93   : > { %309 = vst [vmem:[#allocation2 + $0x20] sm:$0xff] (!%p3763_p13), %v277_v4  ;;  %310 = vst [vmem:[#allocation2 + $0x28] sm:$0xff] (!%p3763_p13), %v278_v5  ;;  %v280_v7 = vld [vmem:[%s5134_s0 + $0x38] sm:$0xff] (!%p3763_p13)  ;;  %v281_v8 = vld [vmem:[%s5134_s0 + $0x40] sm:$0xff] (!%p3763_p13) }
  0x94   : > { %311 = vst [vmem:[#allocation2 + $0x30] sm:$0xff] (!%p3763_p13), %v279_v6  ;;  %312 = vst [vmem:[#allocation2 + $0x38] sm:$0xff] (!%p3763_p13), %v280_v7  ;;  %v282_v9 = vld [vmem:[%s5134_s0 + $0x48] sm:$0xff] (!%p3763_p13)  ;;  %v283_v10 = vld [vmem:[%s5134_s0 + $0x50] sm:$0xff] (!%p3763_p13) }
  0x95   : > { %313 = vst [vmem:[#allocation2 + $0x40] sm:$0xff] (!%p3763_p13), %v281_v8  ;;  %v284_v11 = vld [vmem:[%s5134_s0 + $0x58] sm:$0xff] (!%p3763_p13)  ;;  %314 = vst [vmem:[#allocation2 + $0x48] sm:$0xff] (!%p3763_p13), %v282_v9  ;;  %v285_v12 = vld [vmem:[%s5134_s0 + $0x60] sm:$0xff] (!%p3763_p13) }
  0x96   : > { %315 = vst [vmem:[#allocation2 + $0x50] sm:$0xff] (!%p3763_p13), %v283_v10  ;;  %316 = vst [vmem:[#allocation2 + $0x58] sm:$0xff] (!%p3763_p13), %v284_v11  ;;  %v286_v13 = vld [vmem:[%s5134_s0 + $0x68] sm:$0xff] (!%p3763_p13)  ;;  %v287_v14 = vld [vmem:[%s5134_s0 + $0x70] sm:$0xff] (!%p3763_p13) }
  0x97   : > { %317 = vst [vmem:[#allocation2 + $0x60] sm:$0xff] (!%p3763_p13), %v285_v12  ;;  %318 = vst [vmem:[#allocation2 + $0x68] sm:$0xff] (!%p3763_p13), %v286_v13  ;;  %v288_v15 = vld [vmem:[%s5134_s0 + $0x78] sm:$0xff] (!%p3763_p13)  ;;  %v289_v16 = vld [vmem:[%s5134_s0 + $0x80] sm:$0xff] (!%p3763_p13) }
  0x98   : > { %319 = vst [vmem:[#allocation2 + $0x70] sm:$0xff] %v287_v14  ;;  %v290_v17 = vld [vmem:[%s5134_s0 + $0x88] sm:$0xff]  ;;  %320 = vst [vmem:[#allocation2 + $0x78] sm:$0xff] %v288_v15  ;;  %v291_v18 = vld [vmem:[%s5134_s0 + $0x90] sm:$0xff] }
  0x99   : > { %321 = vst [vmem:[#allocation2 + $0x80] sm:$0xff] %v289_v16  ;;  %322 = vst [vmem:[#allocation2 + $0x88] sm:$0xff] %v290_v17  ;;  %v292_v19 = vld [vmem:[%s5134_s0 + $0x98] sm:$0xff]  ;;  %v293_v20 = vld [vmem:[%s5134_s0 + $0xa0] sm:$0xff] }
  0x9a   : > { %323 = vst [vmem:[#allocation2 + $0x90] sm:$0xff] %v291_v18  ;;  %324 = vst [vmem:[#allocation2 + $0x98] sm:$0xff] %v292_v19  ;;  %v294_v21 = vld [vmem:[%s5134_s0 + $0xa8] sm:$0xff]  ;;  %v295_v22 = vld [vmem:[%s5134_s0 + $0xb0] sm:$0xff] }
  0x9b   : > { %325 = vst [vmem:[#allocation2 + $0xa0] sm:$0xff] %v293_v20  ;;  %v296_v23 = vld [vmem:[%s5134_s0 + $0xb8] sm:$0xff]  ;;  %326 = vst [vmem:[#allocation2 + $0xa8] sm:$0xff] %v294_v21  ;;  %v297_v24 = vld [vmem:[%s5134_s0 + $0xc0] sm:$0xff] }
  0x9c   : > { %327 = vst [vmem:[#allocation2 + $0xb0] sm:$0xff] %v295_v22  ;;  %328 = vst [vmem:[#allocation2 + $0xb8] sm:$0xff] %v296_v23  ;;  %v298_v25 = vld [vmem:[%s5134_s0 + $0xc8] sm:$0xff]  ;;  %v299_v26 = vld [vmem:[%s5134_s0 + $0xd0] sm:$0xff] }
  0x9d   : > { %329 = vst [vmem:[#allocation2 + $0xc0] sm:$0xff] %v297_v24  ;;  %330 = vst [vmem:[#allocation2 + $0xc8] sm:$0xff] %v298_v25  ;;  %v300_v27 = vld [vmem:[%s5134_s0 + $0xd8] sm:$0xff]  ;;  %v301_v28 = vld [vmem:[%s5134_s0 + $0xe0] sm:$0xff] }
  0x9e   : > { %331 = vst [vmem:[#allocation2 + $0xd0] sm:$0xff] %v299_v26  ;;  %v302_v29 = vld [vmem:[%s5134_s0 + $0xe8] sm:$0xff]  ;;  %332 = vst [vmem:[#allocation2 + $0xd8] sm:$0xff] %v300_v27  ;;  %v303_v30 = vld [vmem:[%s5134_s0 + $0xf0] sm:$0xff] }
  0x9f   : > { %333 = vst [vmem:[#allocation2 + $0xe0] sm:$0xff] %v301_v28  ;;  %334 = vst [vmem:[#allocation2 + $0xe8] sm:$0xff] %v302_v29  ;;  %v304_v31 = vld [vmem:[%s5134_s0 + $0xf8] sm:$0xff] }
  0xa0   : > { %335 = vst [vmem:[#allocation2 + $0xf0] sm:$0xff] %v303_v30  ;;  %336 = vst [vmem:[#allocation2 + $0xf8] sm:$0xff] %v304_v31 }
  0xa1 PF: > { %v4618_v32 = vld [vmem:[#allocation10] sm:$0xff]   ;;  %s5183_s9 = sshll.u32 %s4842_s2, 3  ;;  %v4619_v33 = vld [vmem:[#allocation10 + $0x8] sm:$0xff]   ;;  %v4620_v34 = vld [vmem:[#allocation10 + $0x10] sm:$0xff]   ;;  %s337_s17 = sld [smem:[#allocation6]] }
  0xa2   : > { %4214 = vmatprep.subr.bf16.mxu0 %v4618_v32  ;;  %s405_s12 = sld [smem:[#allocation4 + %s5183_s9]]  ;;  %v4622_v35 = vld [vmem:[#allocation10] sm:$0xff]   ;;  %v4624_v36 = vld [vmem:[#allocation10 + $0x8] sm:$0xff]   ;;  %s746_s27 = sadd.s32 1, %s5183_s9  ;;  %v4621_v37 = vld [vmem:[#allocation10 + $0x18] sm:$0xff]  }
  0xa3   : > { %4215 = vmatpush3.bf16.msra.mxu0 %v4618_v32  ;;  %s406_s16 = sld [smem:[#allocation5 + %s5183_s9]]  ;;  %4246 = vmatprep.subr.bf16.mxu1 %v4622_v35  ;;  %v4626_v38 = vld [vmem:[#allocation10 + $0x10] sm:$0xff]   ;;  %v4623_v39 = vld [vmem:[#allocation10 + $0x20] sm:$0xff]   ;;  %v4628_v42 = vld [vmem:[#allocation10 + $0x18] sm:$0xff]   ;;  %s1153_s24 = sadd.s32 2, %s5183_s9 }
  0xa4   : > { %4216 = vmatprep.subr.bf16.mxu0 %v4619_v33  ;;  %4247 = vmatpush3.bf16.msra.mxu1 %v4622_v35  ;;  %s5190_s28 = sld [smem:[#allocation5 + %s746_s27]]  ;;  %v339_v43 = vld [vmem:[#allocation2] sm:$0xff]  ;;  %v340_v44 = vld [vmem:[#allocation2 + $0x8] sm:$0xff]  ;;  %v5214_v51 = vld [vmem:[#allocation2 + $0x10] sm:$0xff]  ;;  %s1560_s11 = sadd.s32 3, %s5183_s9 }
  0xa5   : > { %4248 = vmatprep.subr.bf16.mxu1 %v4624_v36  ;;  %v5196_v45 = vld [vmem:[#allocation2 + $0x80] sm:$0xff]  ;;  %v5198_v46 = vld [vmem:[#allocation10 + $0x28] sm:$0xff]   ;;  %372 = vst [vmem:[%s5147_s29] sm:$0xff] %v339_v43  ;;  %373 = vst [vmem:[%s5147_s29 + $0x8] sm:$0xff] %v340_v44  ;;  %s813_s13 = sld [smem:[#allocation4 + %s746_s27]]  ;;  %s1967_s20 = sadd.s32 4, %s5183_s9 }
  0xa6   : > { %v5200_v47 = vld [vmem:[#allocation2 + $0x88] sm:$0xff]  ;;  %3765 = vst [vmem:[%s5147_s29 + $0x80] sm:$0xff] %v5196_v45  ;;  %v5216_v52 = vld [vmem:[#allocation2 + $0x18] sm:$0xff]  ;;  %v5222_v54 = vld [vmem:[#allocation2 + $0x90] sm:$0xff]  ;;  %s1221_s7 = sld [smem:[#allocation5 + %s1153_s24]]  ;;  %s2374_s0 = sadd.s32 5, %s5183_s9 }
  0xa7   : > { %4217 = vmatpush3.bf16.msra.mxu0 %v4619_v33  ;;  %3766 = vst [vmem:[%s5147_s29 + $0x88] sm:$0xff] %v5200_v47  ;;  %v5224_v55 = vld [vmem:[#allocation2 + $0x98] sm:$0xff]  ;;  %374 = vst [vmem:[%s5147_s29 + $0x10] sm:$0xff] %v5214_v51  ;;  %v4630_v56 = vld [vmem:[#allocation10 + $0x20] sm:$0xff]   ;;  %s5636_s30 = sld [smem:[#allocation4 + %s1153_s24]] }
  0xa8   : > { %4218 = vmatprep.subr.bf16.mxu0 %v4620_v34  ;;  %4249 = vmatpush3.bf16.msra.mxu1 %v4624_v36  ;;  %v5194_v41 = vstv %s405_s12  ;;  %375 = vst [vmem:[%s5147_s29 + $0x18] sm:$0xff] %v5216_v52  ;;  %3767 = vst [vmem:[%s5147_s29 + $0x90] sm:$0xff] %v5222_v54  ;;  %v5244_v62 = vld [vmem:[#allocation2 + $0x20] sm:$0xff]  ;;  %v5249_v0 = vld [vmem:[#allocation10 + $0x30] sm:$0xff]   ;;  %s5689_s14 = sld [smem:[#allocation5 + %s1560_s11]] }
  0xa9   : > { %v5192_v40 = vstv %s406_s16  ;;  %4250 = vmatprep.subr.bf16.mxu1 %v4626_v38  ;;  %v650_v50 = vmul.f32 %v5194_v41, %v5196_v45  ;;  %v651_v53 = vmul.f32 %v5194_v41, %v5200_v47  ;;  %3768 = vst [vmem:[%s5147_s29 + $0x98] sm:$0xff] %v5224_v55  ;;  %v652_v59 = vmul.f32 %v5194_v41, %v5222_v54  ;;  %v5254_v2 = vld [vmem:[#allocation10 + $0x28] sm:$0xff]   ;;  %v5258_v4 = vld [vmem:[#allocation2 + $0xa0] sm:$0xff]  ;;  %v5277_v8 = vld [vmem:[#allocation2 + $0x30] sm:$0xff]  ;;  %s1627_s10 = sld [smem:[#allocation4 + %s1560_s11]] }
  0xaa   : > { %v5207_v48 = vmul.f32 %v5192_v40, %v339_v43  ;;  %v5210_v49 = vmul.f32 %v5192_v40, %v340_v44  ;;  %v653_v61 = vmul.f32 %v5194_v41, %v5224_v55  ;;  %v5247_v63 = vstv %s5190_s28  ;;  %v5256_v3 = vld [vmem:[#allocation2 + $0x28] sm:$0xff]  ;;  %376 = vst [vmem:[%s5147_s29 + $0x20] sm:$0xff] %v5244_v62  ;;  %3769 = vst [vmem:[%s5147_s29 + $0xa0] sm:$0xff] %v5258_v4  ;;  %v5279_v9 = vld [vmem:[#allocation2 + $0x38] sm:$0xff]  ;;  %s6490_s21 = sld [smem:[#allocation5 + %s1967_s20]]  ;;  %s2781_s28 = sadd.s32 6, %s5183_s9 }
  0xab   : > { %4219 = vmatpush3.bf16.msra.mxu0 %v4620_v34  ;;  %v5232_v58 = vadd.f32 %v650_v50, %v339_v43  ;;  %v5240_v60 = vadd.f32 %v651_v53, %v340_v44  ;;  %v5252_v1 = vadd.f32 %v652_v59, %v5214_v51  ;;  %v5260_v5 = vld [vmem:[#allocation2 + $0xa8] sm:$0xff]  ;;  %377 = vst [vmem:[%s5147_s29 + $0x28] sm:$0xff] %v5256_v3  ;;  %v5281_v10 = vld [vmem:[#allocation2 + $0xb0] sm:$0xff]  ;;  %v5288_v12 = vld [vmem:[#allocation2 + $0xb8] sm:$0xff]  ;;  %s6505_s12 = sld [smem:[#allocation4 + %s1967_s20]] }
  0xac   : > { %4220 = vmatprep.subr.bf16.mxu0 %v4621_v37  ;;  %4251 = vmatpush3.bf16.msra.mxu1 %v4626_v38  ;;  %v424_v57 = vpack.c.bf16 %v5210_v49, %v5207_v48  ;;  %v5267_v6 = vadd.f32 %v653_v61, %v5216_v52  ;;  %3770 = vst [vmem:[%s5147_s29 + $0xa8] sm:$0xff] %v5260_v5  ;;  %378 = vst [vmem:[%s5147_s29 + $0x30] sm:$0xff] %v5277_v8  ;;  %v5309_v15 = vld [vmem:[#allocation2 + $0x40] sm:$0xff]  ;;  %v5311_v16 = vld [vmem:[#allocation2 + $0x48] sm:$0xff]  ;;  %s6522_s16 = sld [smem:[#allocation5 + %s2374_s0]] }
  0xad   : > { %4252 = vmatprep.subr.bf16.mxu1 %v4628_v42  ;;  %3790 = vst [vmem:[%s5147_s29 + $0x100] sm:$0xff] %v5232_v58  ;;  %v654_v7 = vmul.f32 %v5194_v41, %v5258_v4  ;;  %3791 = vst [vmem:[%s5147_s29 + $0x108] sm:$0xff] %v5240_v60  ;;  %v655_v11 = vmul.f32 %v5194_v41, %v5260_v5  ;;  %v5298_v13 = vmul.f32 %v5247_v63, %v5232_v58  ;;  %v5313_v17 = vld [vmem:[#allocation10 + $0x38] sm:$0xff]   ;;  %v5315_v18 = vld [vmem:[#allocation10 + $0x30] sm:$0xff]   ;;  %s2441_s27 = sld [smem:[#allocation4 + %s2374_s0]] }
  0xae   : > { %4230 = vmatprep.mubr.bf16.mxu0 %v424_v57  ;;  %379 = vst [vmem:[%s5147_s29 + $0x38] sm:$0xff] %v5279_v9  ;;  %3771 = vst [vmem:[%s5147_s29 + $0xb0] sm:$0xff] %v5281_v10  ;;  %v656_v20 = vmul.f32 %v5194_v41, %v5281_v10  ;;  %v657_v21 = vmul.f32 %v5194_v41, %v5288_v12  ;;  %v5326_v22 = vmul.f32 %v5247_v63, %v5240_v60  ;;  %v5328_v23 = vld [vmem:[#allocation2 + $0xc0] sm:$0xff]  ;;  %v5330_v24 = vld [vmem:[#allocation2 + $0xc8] sm:$0xff]  ;;  %s7354_s24 = sld [smem:[#allocation4 + %s2781_s28]] }
  0xaf   : > { %4221 = vmatpush3.bf16.msra.mxu0 %v4621_v37  ;;  %3792 = vst [vmem:[%s5147_s29 + $0x110] sm:$0xff] %v5252_v1  ;;  %v5303_v14 = vadd.f32 %v654_v7, %v5244_v62  ;;  %3772 = vst [vmem:[%s5147_s29 + $0xb8] sm:$0xff] %v5288_v12  ;;  %v5318_v19 = vadd.f32 %v655_v11, %v5256_v3  ;;  %v5336_v25 = vld [vmem:[#allocation2 + $0x50] sm:$0xff]  ;;  %v5343_v26 = vld [vmem:[#allocation2 + $0x58] sm:$0xff]  ;;  %v5379_v35 = vmul.f32 %v5192_v40, %v5214_v51 }
  0xb0   : > { %4222 = vmatprep.subr.bf16.mxu0 %v4623_v39  ;;  %4253 = vmatpush3.bf16.msra.mxu1 %v4628_v42  ;;  %3793 = vst [vmem:[%s5147_s29 + $0x118] sm:$0xff] %v5267_v6  ;;  %380 = vst [vmem:[%s5147_s29 + $0x40] sm:$0xff] %v5309_v15  ;;  %v5345_v27 = vld [vmem:[#allocation2 + $0xd0] sm:$0xff]  ;;  %v5347_v28 = vld [vmem:[#allocation2 + $0xd8] sm:$0xff]  ;;  %v5356_v29 = vadd.f32 %v656_v20, %v5277_v8  ;;  %v5359_v30 = vadd.f32 %v657_v21, %v5279_v9 }
  0xb1   : > { %4254 = vmatprep.subr.bf16.mxu1 %v4630_v56  ;;  %8644 = vst [vmem:[#allocation30_spill] sm:$0xff] %v5318_v19  ;;  %381 = vst [vmem:[%s5147_s29 + $0x48] sm:$0xff] %v5311_v16  ;;  %v832_v31 = vpack.c.bf16 %v5326_v22, %v5298_v13  ;;  %v5371_v32 = vld [vmem:[#allocation2 + $0x60] sm:$0xff]  ;;  %v5373_v33 = vld [vmem:[#allocation2 + $0x68] sm:$0xff]  ;;  %v5383_v36 = vmul.f32 %v5192_v40, %v5216_v52  ;;  %v5399_v42 = vmul.f32 %v5192_v40, %v5244_v62 }
  0xb2   : > { %3773 = vst [vmem:[%s5147_s29 + $0xc0] sm:$0xff] %v5328_v23  ;;  %3774 = vst [vmem:[%s5147_s29 + $0xc8] sm:$0xff] %v5330_v24  ;;  %v5375_v34 = vld [vmem:[#allocation2 + $0xe0] sm:$0xff]  ;;  %v5385_v37 = vld [vmem:[#allocation2 + $0xe8] sm:$0xff]  ;;  %v5403_v43 = vmul.f32 %v5192_v40, %v5256_v3  ;;  %v659_v50 = vmul.f32 %v5194_v41, %v5330_v24  ;;  %v660_v53 = vmul.f32 %v5194_v41, %v5345_v27 }
  0xb3   : > { %4223 = vmatpush3.bf16.msra.mxu0 %v4623_v39  ;;  %382 = vst [vmem:[%s5147_s29 + $0x50] sm:$0xff] %v5336_v25  ;;  %3794 = vst [vmem:[%s5147_s29 + $0x120] sm:$0xff] %v5303_v14  ;;  %v5393_v38 = vld [vmem:[#allocation2 + $0x70] sm:$0xff]  ;;  %v5395_v39 = vld [vmem:[#allocation2 + $0x78] sm:$0xff]  ;;  %4262 = vmatprep.mubr.bf16.mxu1 %v832_v31  ;;  %v425_v59 = vpack.c.bf16 %v5383_v36, %v5379_v35  ;;  %v661_v61 = vmul.f32 %v5194_v41, %v5347_v28 }
  0xb4   : > { %4224 = vmatprep.subr.bf16.mxu0 %v5198_v46  ;;  %4255 = vmatpush3.bf16.msra.mxu1 %v4630_v56  ;;  %383 = vst [vmem:[%s5147_s29 + $0x58] sm:$0xff] %v5343_v26  ;;  %3775 = vst [vmem:[%s5147_s29 + $0xd0] sm:$0xff] %v5345_v27  ;;  %v4633_v44 = vld [vmem:[#allocation10 + $0x38] sm:$0xff]   ;;  %v5415_v51 = vld [vmem:[#allocation2 + $0xf0] sm:$0xff]  ;;  %v5437_v57 = vadd.f32 %v659_v50, %v5311_v16  ;;  %v5444_v62 = vadd.f32 %v660_v53, %v5336_v25 }
  0xb5   : > { %4256 = vmatprep.subr.bf16.mxu1 %v5254_v2  ;;  %3776 = vst [vmem:[%s5147_s29 + $0xd8] sm:$0xff] %v5347_v28  ;;  %3795 = vst [vmem:[%s5147_s29 + $0x128] sm:$0xff] %v5318_v19  ;;  %v5417_v52 = vld [vmem:[#allocation2 + $0xf8] sm:$0xff]  ;;  %v5454_v3 = vmul.f32 %v5247_v63, %v5267_v6  ;;  %v5458_v7 = vmul.f32 %v5247_v63, %v5303_v14  ;;  %v5467_v11 = vadd.f32 %v661_v61, %v5343_v26 }
  0xb6   : > { %8645 = vst [vmem:[#allocation31_spill] sm:$0xff] %v5375_v34  ;;  %8646 = vst [vmem:[#allocation32_spill] sm:$0xff] %v5385_v37  ;;  %v5471_v20 = vmul.f32 %v5247_v63, %v5318_v19  ;;  %v662_v21 = vmul.f32 %v5194_v41, %v5375_v34  ;;  %v5479_v31 = vmul.f32 %v5192_v40, %v5277_v8 }
  0xb7   : > { %4225 = vmatpush3.bf16.msra.mxu0 %v5198_v46  ;;  %384 = vst [vmem:[%s5147_s29 + $0x60] sm:$0xff] %v5371_v32  ;;  %385 = vst [vmem:[%s5147_s29 + $0x68] sm:$0xff] %v5373_v33  ;;  %v658_v46 = vmul.f32 %v5194_v41, %v5328_v23  ;;  %v664_v50 = vmul.f32 %v5194_v41, %v5415_v51  ;;  %v665_v8 = vmul.f32 %v5194_v41, %v5417_v52 }
  0xb8   : > { %4226 = vmatprep.subr.bf16.mxu0 %v5249_v0  ;;  %3777 = vst [vmem:[%s5147_s29 + $0xe0] sm:$0xff] %v5375_v34  ;;  %3796 = vst [vmem:[%s5147_s29 + $0x130] sm:$0xff] %v5356_v29  ;;  %4257 = vmatpush3.bf16.msra.mxu1 %v5254_v2  ;;  %v5450_v2 = vmul.f32 %v5247_v63, %v5252_v1  ;;  %v5504_v61 = vmul.f32 %v5192_v40, %v5311_v16 }
  0xb9   : > { %3797 = vst [vmem:[%s5147_s29 + $0x138] sm:$0xff] %v5359_v30  ;;  %3778 = vst [vmem:[%s5147_s29 + $0xe8] sm:$0xff] %v5385_v37  ;;  %4258 = vmatprep.subr.bf16.mxu1 %v5315_v18  ;;  %v5434_v56 = vadd.f32 %v658_v46, %v5309_v15  ;;  %v5488_v46 = vadd.f32 %v662_v21, %v5371_v32  ;;  %v5529_v16 = vmul.f32 %v5247_v63, %v5356_v29 }
  0xba   : > { %8647 = vst [vmem:[#allocation33_spill] sm:$0xff] %v5415_v51  ;;  %8648 = vst [vmem:[#allocation34_spill] sm:$0xff] %v5417_v52  ;;  %v833_v53 = vpack.c.bf16 %v5454_v3, %v5450_v2 }
  0xbb   : > { %386 = vst [vmem:[%s5147_s29 + $0x70] sm:$0xff] %v5393_v38  ;;  %387 = vst [vmem:[%s5147_s29 + $0x78] sm:$0xff] %v5395_v39  ;;  %4227 = vmatpush3.bf16.msra.mxu0 %v5249_v0  ;;  %v426_v0 = vpack.c.bf16 %v5403_v43, %v5399_v42 }
  0xbc   : > { %3779 = vst [vmem:[%s5147_s29 + $0xf0] sm:$0xff] %v5415_v51  ;;  %3780 = vst [vmem:[%s5147_s29 + $0xf8] sm:$0xff] %v5417_v52  ;;  %4228 = vmatprep.subr.bf16.mxu0 %v5313_v17  ;;  %4259 = vmatpush3.bf16.msra.mxu1 %v5315_v18  ;;  %v5485_v18 = vmul.f32 %v5192_v40, %v5279_v9  ;;  %v5500_v9 = vmul.f32 %v5192_v40, %v5309_v15 }
  0xbd   : > { %8649 = vst [vmem:[#allocation35_spill] sm:$0xff] %v5434_v56  ;;  %8650 = vst [vmem:[#allocation36_spill] sm:$0xff] %v5437_v57  ;;  %4260 = vmatprep.subr.bf16.mxu1 %v4633_v44  ;;  %v5515_v52 = vadd.f32 %v665_v8, %v5395_v39  ;;  %v5547_v8 = vmul.f32 %v5192_v40, %v5336_v25 }
  0xbe   : > { %8651 = vst [vmem:[#allocation37_spill] sm:$0xff] %v5444_v62  ;;  %3798 = vst [vmem:[%s5147_s29 + $0x140] sm:$0xff] %v5434_v56  ;;  %v427_v15 = vpack.c.bf16 %v5485_v18, %v5479_v31 }
  0xbf   : > { %3799 = vst [vmem:[%s5147_s29 + $0x148] sm:$0xff] %v5437_v57  ;;  %4229 = vmatpush3.bf16.msra.mxu0 %v5313_v17  ;;  %8652 = vst [vmem:[#allocation38_spill] sm:$0xff] %v5467_v11  ;;  %v663_v17 = vmul.f32 %v5194_v41, %v5385_v37  ;;  %v834_v37 = vpack.c.bf16 %v5471_v20, %v5458_v7 }
  0xc0   : > { %3800 = vst [vmem:[%s5147_s29 + $0x150] sm:$0xff] %v5444_v62  ;;  %8653 = vst [vmem:[#allocation39_spill] sm:$0xff] %v5488_v46  ;;  %4261 = vmatpush3.bf16.msra.mxu1 %v4633_v44  ;;  %v5533_v44 = vmul.f32 %v5247_v63, %v5359_v30 }
  0xc1   : > { %3801 = vst [vmem:[%s5147_s29 + $0x158] sm:$0xff] %v5467_v11  ;;  %v5507_v21 = vadd.f32 %v663_v17, %v5373_v33  ;;  %8656 = vst [vmem:[#allocation42_spill] sm:$0xff] %v5515_v52  ;;  %v5539_v17 = vmul.f32 %v5247_v63, %v5434_v56  ;;  %v5557_v56 = vmul.f32 %v5192_v40, %v5371_v32 }
  0xc2   : > { %4231 = vmatmul.mubr.bf16.vlgmr.msra.gmra.mrb[0].mxu0 %v425_v59  ;;  %v5512_v59 = vadd.f32 %v664_v50, %v5393_v38  ;;  %3802 = vst [vmem:[%s5147_s29 + $0x160] sm:$0xff] %v5488_v46  ;;  %3805 = vst [vmem:[%s5147_s29 + $0x178] sm:$0xff] %v5515_v52  ;;  %v5543_v50 = vmul.f32 %v5247_v63, %v5437_v57  ;;  %v5561_v57 = vmul.f32 %v5192_v40, %v5373_v33 }
  0xc3   : > { %8654 = vst [vmem:[#allocation40_spill] sm:$0xff] %v5507_v21  ;;  %4234 = vmatprep.mubr.bf16.mxu0 %v426_v0  ;;  %3803 = vst [vmem:[%s5147_s29 + $0x168] sm:$0xff] %v5507_v21  ;;  %4263 = vmatmul.mubr.bf16.vlgmr.msra.gmra.mrb[0].mxu1 %v833_v53  ;;  %v428_v0 = vpack.c.bf16 %v5504_v61, %v5500_v9  ;;  %v5551_v53 = vmul.f32 %v5192_v40, %v5343_v26 }
  0xc4   : > { %8655 = vst [vmem:[#allocation41_spill] sm:$0xff] %v5512_v59  ;;  %3804 = vst [vmem:[%s5147_s29 + $0x170] sm:$0xff] %v5512_v59  ;;  %4266 = vmatprep.mubr.bf16.mxu1 %v834_v37  ;;  %v835_v37 = vpack.c.bf16 %v5533_v44, %v5529_v16  ;;  %v836_v25 = vpack.c.bf16 %v5543_v50, %v5539_v17  ;;  %v5569_v26 = vmul.f32 %v5247_v63, %v5444_v62  ;;  %v4637_v62 = vld [vmem:[#allocation10 + $0x18] sm:$0xff]  }
  0xc5   : > { %v430_v32 = vpack.c.bf16 %v5561_v57, %v5557_v56  ;;  %v5579_v33 = vmul.f32 %v5247_v63, %v5488_v46  ;;  %v5583_v34 = vmul.f32 %v5247_v63, %v5507_v21 }
  0xc7   : > { %v838_v46 = vpack.c.bf16 %v5583_v34, %v5579_v33 }
  0xca   : > { %4235 = vmatmul.mubr.bf16.gmra.mrb[4].mxu0 %v427_v15  ;;  %v429_v15 = vpack.c.bf16 %v5551_v53, %v5547_v8 }
  0xcb   : > { %4238 = vmatprep.mubr.bf16.mxu0 %v428_v0  ;;  %4267 = vmatmul.mubr.bf16.gmra.mrb[4].mxu1 %v835_v37  ;;  %v5573_v0 = vmul.f32 %v5247_v63, %v5467_v11  ;;  %v5587_v37 = vmul.f32 %v5192_v40, %v5393_v38  ;;  %v5591_v11 = vmul.f32 %v5192_v40, %v5395_v39  ;;  %v4634_v39 = vld [vmem:[#allocation10] sm:$0xff]  }
  0xcc   : > { %4270 = vmatprep.mubr.bf16.mxu1 %v836_v25  ;;  %v5605_v38 = vmul.f32 %v5247_v63, %v5515_v52  ;;  %4278 = vmatprep.subr.bf16.mxu0 %v4634_v39  ;;  %v5685_v52 = vstv %s1221_s7 }
  0xcd   : > { %v837_v25 = vpack.c.bf16 %v5573_v0, %v5569_v26  ;;  %v431_v21 = vpack.c.bf16 %v5591_v11, %v5587_v37  ;;  %4279 = vmatpush3.bf16.msra.mxu0 %v4634_v39  ;;  %v4645_v39 = vld [vmem:[#allocation10 + $0x18] sm:$0xff]   ;;  %8658 = vst [vmem:[#allocation44_spill] sm:$0xff] %v5685_v52 }
  0xd2   : > { %4239 = vmatmul.mubr.bf16.gmra.mrb[8].mxu0 %v429_v15  ;;  %v5601_v15 = vmul.f32 %v5247_v63, %v5512_v59  ;;  %v4639_v59 = vld [vmem:[#allocation10] sm:$0xff]  }
  0xd3   : > { %4242 = vmatprep.mubr.bf16.mxu0 %v430_v32  ;;  %4271 = vmatmul.mubr.bf16.gmra.mrb[8].mxu1 %v837_v25  ;;  %v4635_v32 = vld [vmem:[#allocation10 + $0x8] sm:$0xff]   ;;  %v4636_v25 = vld [vmem:[#allocation10 + $0x10] sm:$0xff]   ;;  %v4638_v63 = vld [vmem:[#allocation10 + $0x20] sm:$0xff]  }
  0xd4   : > { %4274 = vmatprep.mubr.bf16.mxu1 %v838_v46  ;;  %v839_v40 = vpack.c.bf16 %v5605_v38, %v5601_v15  ;;  %4280 = vmatprep.subr.bf16.mxu0 %v4635_v32  ;;  %v4641_v46 = vld [vmem:[#allocation10 + $0x8] sm:$0xff]  }
  0xd5   : > { %4281 = vmatpush3.bf16.msra.mxu0 %v4635_v32  ;;  %4310 = vmatprep.subr.bf16.mxu1 %v4639_v59  ;;  %v4642_v32 = vld [vmem:[#allocation10 + $0x30] sm:$0xff]  }
  0xd6   : > { %4282 = vmatprep.subr.bf16.mxu0 %v4636_v25  ;;  %4311 = vmatpush3.bf16.msra.mxu1 %v4639_v59  ;;  %v4644_v59 = vld [vmem:[#allocation10 + $0x38] sm:$0xff]  }
  0xd7   : > { %4312 = vmatprep.subr.bf16.mxu1 %v4641_v46 }
  0xd9   : > { %4283 = vmatpush3.bf16.msra.mxu0 %v4636_v25  ;;  %v4647_v25 = vld [vmem:[#allocation10 + $0x28] sm:$0xff]  }
  0xda   : > { %4243 = vmatmul.mubr.bf16.gmra.mrb[12].mxu0 %v431_v21  ;;  %4284 = vmatprep.subr.bf16.mxu0 %v4637_v62  ;;  %v4643_v21 = vld [vmem:[#allocation10 + $0x10] sm:$0xff]  }
  0xdb   : > { %4275 = vmatmul.mubr.bf16.gmra.mrb[12].mxu1 %v839_v40  ;;  %v4640_v40 = vld [vmem:[#allocation10 + $0x28] sm:$0xff]  }
  0xdc   : > { %4313 = vmatpush3.bf16.msra.mxu1 %v4641_v46  ;;  %v4649_v46 = vld [vmem:[#allocation10 + $0x38] sm:$0xff]  }
  0xdd   : > { %4285 = vmatpush3.bf16.msra.mxu0 %v4637_v62  ;;  %4314 = vmatprep.subr.bf16.mxu1 %v4643_v21  ;;  %v4646_v62 = vld [vmem:[#allocation10 + $0x20] sm:$0xff]  }
  0xde   : > { %4286 = vmatprep.subr.bf16.mxu0 %v4638_v63 }
  0xe0   : > { %4315 = vmatpush3.bf16.msra.mxu1 %v4643_v21  ;;  %v5612_v21 = vstv %s337_s17  ;;  %s3188_s17 = sadd.s32 7, %s5183_s9  ;;  %s3596_s9 = scalar_lea.sflag [#allocation9], %s262_s8 }
  0xe1   : > { %4287 = vmatpush3.bf16.msra.mxu0 %v4638_v63  ;;  %4316 = vmatprep.subr.bf16.mxu1 %v4645_v39  ;;  %v4648_v63 = vld [vmem:[#allocation10 + $0x30] sm:$0xff]   ;;  %8657 = vst [vmem:[#allocation43_spill] sm:$0xff] %v5612_v21  ;;  %v5707_v51 = vmul.f32 %v5612_v21, %v5557_v56  ;;  %v5725_v56 = vmul.f32 %v5539_v17, %v5612_v21  ;;  %s7367_s7 = sld [smem:[#allocation5 + %s3188_s17]] }
  0xe2   : > { %4288 = vmatprep.subr.bf16.mxu0 %v4640_v40  ;;  %v5740_v17 = vmul.f32 %v5601_v15, %v5612_v21 }
  0xe3   : > { %8660 = vst [vmem:[#allocation46_spill] sm:$0xff] %v5707_v51  ;;  %8663 = vst [vmem:[#allocation49_spill] sm:$0xff] %v5725_v56 }
  0xe4   : > { %4317 = vmatpush3.bf16.msra.mxu1 %v4645_v39  ;;  %v618_v39 = vmul.f32 %v5612_v21, %v5210_v49  ;;  %v5639_v49 = vld [vmem:[#allocation12] ss:$0 sm:$0xff] }
  0xe5   : > { %4289 = vmatpush3.bf16.msra.mxu0 %v4640_v40  ;;  %4318 = vmatprep.subr.bf16.mxu1 %v4646_v62  ;;  %v617_v40 = vmul.f32 %v5612_v21, %v5207_v48  ;;  %v5634_v48 = vmul.f32 %v5612_v21, %v5479_v31  ;;  %v5659_v31 = vmul.f32 %v5454_v3, %v5612_v21 }
  0xe6   : > { %4290 = vmatprep.subr.bf16.mxu0 %v4642_v32  ;;  %v5679_v3 = vmul.f32 %v5612_v21, %v5504_v61  ;;  %v5698_v61 = vmul.f32 %v5612_v21, %v5587_v37 }
  0xe8   : > { %4319 = vmatpush3.bf16.msra.mxu1 %v4646_v62  ;;  %v5626_v62 = vmul.f32 %v5326_v22, %v5612_v21  ;;  %v5647_v22 = vmul.f32 %v5612_v21, %v5485_v18  ;;  %v5667_v18 = vmul.f32 %v5612_v21, %v5500_v9 }
  0xe9   : > { %4291 = vmatpush3.bf16.msra.mxu0 %v4642_v32  ;;  %4320 = vmatprep.subr.bf16.mxu1 %v4647_v25  ;;  %v5620_v32 = vmul.f32 %v5298_v13, %v5612_v21  ;;  %v5643_v13 = vmul.f32 %v5612_v21, %v5399_v42  ;;  %v5663_v42 = vmul.f32 %v5612_v21, %v5547_v8 }
  0xea   : > { %4292 = vmatprep.subr.bf16.mxu0 %v4644_v59  ;;  %v5683_v8 = vmul.f32 %v5458_v7, %v5612_v21  ;;  %v5702_v7 = vmul.f32 %v5471_v20, %v5612_v21 }
  0xec   : > { %4321 = vmatpush3.bf16.msra.mxu1 %v4647_v25  ;;  %v619_v25 = vmul.f32 %v5612_v21, %v5379_v35  ;;  %v5651_v35 = vmul.f32 %v5612_v21, %v5403_v43  ;;  %v5671_v43 = vmul.f32 %v5529_v16, %v5612_v21  ;;  %8659 = vst [vmem:[#allocation45_spill] sm:$0xff] %v5702_v7 }
  0xed   : > { %4293 = vmatpush3.bf16.msra.mxu0 %v4644_v59  ;;  %4322 = vmatprep.subr.bf16.mxu1 %v4648_v63  ;;  %v5622_v59 = vstv %s813_s13  ;;  %s7343_s13 = sld [smem:[#allocation5 + %s2781_s28]] }
  0xf0   : > { %4323 = vmatpush3.bf16.msra.mxu1 %v4648_v63  ;;  %v620_v63 = vmul.f32 %v5612_v21, %v5383_v36  ;;  %v5655_v36 = vmul.f32 %v5450_v2, %v5612_v21  ;;  %v5675_v2 = vmul.f32 %v5612_v21, %v5551_v53  ;;  %v5694_v53 = vmul.f32 %v5533_v44, %v5612_v21 }
  0xf1   : > { %4324 = vmatprep.subr.bf16.mxu1 %v4649_v46  ;;  %v5715_v44 = vmul.f32 %v5612_v21, %v5561_v57  ;;  %v5731_v57 = vmul.f32 %v5573_v0, %v5612_v21 }
  0xf3   : > { %8664 = vst [vmem:[#allocation50_spill] sm:$0xff] %v5731_v57  ;;  %v5748_v57 = vmul.f32 %v5579_v33, %v5612_v21 }
  0xf4   : > { %4325 = vmatpush3.bf16.msra.mxu1 %v4649_v46 }
  0xf5   : > { %8666 = vst [vmem:[#allocation52_spill] sm:$0xff] %v5748_v57  ;;  %v5763_v57 = vstv %s5689_s14 }
 0x195   : > { %v4232_v46 = vpop.f32.mrb[0].mxu0 }
 0x196   : > { %v546_v9 = vadd.f32 %v4232_v46, %v5639_v49  ;;  %v537_v16 = vpop.f32.mrb[1].mxu0  ;;  %v5711_v46 = vmul.f32 %v5612_v21, %v5591_v11  ;;  %v4264_v51 = vpop.f32.mrb[0].mxu1 }
 0x197   : > { %v538_v52 = vadd.f32 %v5639_v49, %v537_v16  ;;  %v4233_v19 = vpop.f32.mrb[2].mxu0  ;;  %v5721_v16 = vmul.f32 %v5569_v26, %v5612_v21  ;;  %v954_v15 = vadd.f32 %v4264_v51, %v5639_v49 }
 0x198   : > { %8661 = vst [vmem:[#allocation47_spill] sm:$0xff] %v5711_v46  ;;  %v602_v37 = vsub.f32 %v546_v9, %v5222_v54  ;;  %v549_v20 = vadd.f32 %v4233_v19, %v5639_v49  ;;  %v540_v7 = vpop.f32.mrb[3].mxu0  ;;  %v5735_v19 = vmul.f32 %v5543_v50, %v5612_v21  ;;  %v5752_v50 = vmul.f32 %v5605_v38, %v5612_v21 }
 0x199   : > { %8662 = vst [vmem:[#allocation48_spill] sm:$0xff] %v5721_v16  ;;  %v600_v11 = vsub.f32 %v538_v52, %v5196_v45  ;;  %v541_v46 = vadd.f32 %v5639_v49, %v540_v7  ;;  %v945_v16 = vpop.f32.mrb[1].mxu1  ;;  %v5743_v52 = vstv %s5636_s30  ;;  %s3255_s30 = sld [smem:[#allocation4 + %s3188_s17]] }
 0x19a   : > { %v635_v9 = vsub.f32 %v602_v37, %v619_v25  ;;  %v603_v26 = vsub.f32 %v549_v20, %v5224_v55  ;;  %8665 = vst [vmem:[#allocation51_spill] sm:$0xff] %v5743_v52  ;;  %v4265_v0 = vpop.f32.mrb[2].mxu1  ;;  %v946_v33 = vadd.f32 %v5639_v49, %v945_v16 }
 0x19b   : > { %v633_v7 = vsub.f32 %v600_v11, %v617_v40  ;;  %v601_v56 = vsub.f32 %v541_v46, %v5200_v47  ;;  %v948_v20 = vpop.f32.mrb[3].mxu1  ;;  %v5758_v40 = vmul.f32 %v5583_v34, %v5612_v21 }
 0x19c   : > { %v700_v25 = vmul.f32 %v5194_v41, %v635_v9  ;;  %v636_v37 = vsub.f32 %v603_v26, %v620_v63  ;;  %v957_v26 = vadd.f32 %v4265_v0, %v5639_v49 }
 0x19d   : > { %v698_v46 = vmul.f32 %v5194_v41, %v633_v7  ;;  %v634_v11 = vsub.f32 %v601_v56, %v618_v39  ;;  %v4236_v52 = vpop.f32.mrb[4].mxu0  ;;  %v949_v7 = vadd.f32 %v5639_v49, %v948_v20 }
 0x19e   : > { %v716_v38 = vadd.f32 %v700_v25, %v5222_v54  ;;  %v701_v63 = vmul.f32 %v5194_v41, %v636_v37  ;;  %v562_v51 = vadd.f32 %v4236_v52, %v5639_v49  ;;  %v553_v9 = vpop.f32.mrb[5].mxu0 }
 0x19f   : > { %v714_v34 = vadd.f32 %v698_v46, %v5196_v45  ;;  %v699_v39 = vmul.f32 %v5194_v41, %v634_v11  ;;  %v554_v56 = vadd.f32 %v5639_v49, %v553_v9  ;;  %v4237_v16 = vpop.f32.mrb[6].mxu0 }
 0x1a0   : > { %v5774_v21 = vadd.f32 %v701_v63, %v5224_v55  ;;  %v606_v54 = vsub.f32 %v562_v51, %v5281_v10  ;;  %v565_v52 = vadd.f32 %v4237_v16, %v5639_v49  ;;  %v556_v25 = vpop.f32.mrb[7].mxu0  ;;  %3808 = vst [vmem:[%s5147_s29 + $0x190] sm:$0xff] %v716_v38  ;;  %v1010_v0 = vsub.f32 %v954_v15, %v716_v38  ;;  %v4268_v55 = vpop.f32.mrb[4].mxu1 }
 0x1a1   : > { %v5780_v45 = vadd.f32 %v699_v39, %v5200_v47  ;;  %v604_v37 = vsub.f32 %v554_v56, %v5258_v4  ;;  %v557_v46 = vadd.f32 %v5639_v49, %v556_v25  ;;  %v1059_v20 = vmul.f32 %v5622_v59, %v716_v38  ;;  %3806 = vst [vmem:[%s5147_s29 + $0x180] sm:$0xff] %v714_v34  ;;  %v5791_v47 = vpop.f32.mrb[5].mxu1 }
 0x1a2   : > { %v639_v11 = vsub.f32 %v606_v54, %v5634_v48  ;;  %v607_v63 = vsub.f32 %v565_v52, %v5288_v12  ;;  %v1042_v51 = vsub.f32 %v1010_v0, %v5655_v36  ;;  %v1008_v9 = vsub.f32 %v946_v33, %v714_v34  ;;  %3809 = vst [vmem:[%s5147_s29 + $0x198] sm:$0xff] %v5774_v21  ;;  %v5801_v48 = vpop.f32.mrb[6].mxu1 }
 0x1a3   : > { %v637_v15 = vsub.f32 %v604_v37, %v5643_v13  ;;  %v605_v39 = vsub.f32 %v557_v46, %v5260_v5  ;;  %v5796_v56 = vadd.f32 %v1059_v20, %v5252_v1  ;;  %v1057_v16 = vmul.f32 %v5622_v59, %v714_v34  ;;  %3807 = vst [vmem:[%s5147_s29 + $0x188] sm:$0xff] %v5780_v45  ;;  %v5807_v52 = vpop.f32.mrb[7].mxu1 }
 0x1a4   : > { %v704_v36 = vmul.f32 %v5194_v41, %v639_v11  ;;  %v640_v33 = vsub.f32 %v607_v63, %v5647_v22  ;;  %v1107_v54 = vmul.f32 %v5622_v59, %v1042_v51  ;;  %v1040_v13 = vsub.f32 %v1008_v9, %v5620_v32 }
 0x1a5   : > { %v702_v25 = vmul.f32 %v5194_v41, %v637_v15  ;;  %v638_v1 = vsub.f32 %v605_v39, %v5651_v35  ;;  %v5812_v0 = vadd.f32 %v1057_v16, %v5232_v58  ;;  %v1011_v37 = vsub.f32 %v957_v26, %v5774_v21  ;;  %v4240_v46 = vpop.f32.mrb[8].mxu0  ;;  %3833 = vst [vmem:[%s5147_s29 + $0x210] sm:$0xff] %v5796_v56 }
 0x1a6   : > { %v5818_v22 = vadd.f32 %v704_v36, %v5281_v10  ;;  %v705_v32 = vmul.f32 %v5194_v41, %v640_v33  ;;  %v5821_v20 = vadd.f32 %v1107_v54, %v716_v38  ;;  %v1105_v11 = vmul.f32 %v5622_v59, %v1040_v13  ;;  %v569_v35 = vpop.f32.mrb[9].mxu0 }
 0x1a7   : > { %v5825_v58 = vadd.f32 %v702_v25, %v5258_v4  ;;  %v703_v26 = vmul.f32 %v5194_v41, %v638_v1  ;;  %v1043_v63 = vsub.f32 %v1011_v37, %v5659_v31  ;;  %v1060_v10 = vmul.f32 %v5622_v59, %v5774_v21  ;;  %v4241_v51 = vpop.f32.mrb[10].mxu0  ;;  %3831 = vst [vmem:[%s5147_s29 + $0x200] sm:$0xff] %v5812_v0 }
 0x1a8   : > { %v5834_v38 = vadd.f32 %v705_v32, %v5288_v12  ;;  %v5836_v9 = vadd.f32 %v1105_v11, %v714_v34  ;;  %v578_v4 = vadd.f32 %v4240_v46, %v5639_v49  ;;  %v1009_v15 = vsub.f32 %v949_v7, %v5780_v45  ;;  %v572_v39 = vpop.f32.mrb[11].mxu0  ;;  %3812 = vst [vmem:[%s5147_s29 + $0x1b0] sm:$0xff] %v5818_v22  ;;  %v5855_v7 = vpop.f32.mrb[8].mxu1 }
 0x1a9   : > { %3849 = vst [vmem:[%s5147_s29 + $0x290] sm:$0xff] %v5821_v20  ;;  %v5845_v31 = vadd.f32 %v703_v26, %v5260_v5  ;;  %v5848_v16 = vadd.f32 %v1060_v10, %v5267_v6  ;;  %v1108_v12 = vmul.f32 %v5622_v59, %v1043_v63  ;;  %v1058_v34 = vmul.f32 %v5622_v59, %v5780_v45  ;;  %v5863_v54 = vpop.f32.mrb[9].mxu1 }
 0x1aa   : > { %3810 = vst [vmem:[%s5147_s29 + $0x1a0] sm:$0xff] %v5825_v58  ;;  %v610_v36 = vsub.f32 %v578_v4, %v5345_v27  ;;  %v1041_v33 = vsub.f32 %v1009_v15, %v5626_v62  ;;  %v570_v5 = vadd.f32 %v5639_v49, %v569_v35  ;;  %v581_v6 = vadd.f32 %v4241_v51, %v5639_v49  ;;  %v5877_v37 = vpop.f32.mrb[10].mxu1 }
 0x1ab   : > { %3813 = vst [vmem:[%s5147_s29 + $0x1b8] sm:$0xff] %v5834_v38  ;;  %3847 = vst [vmem:[%s5147_s29 + $0x280] sm:$0xff] %v5836_v9  ;;  %v5868_v13 = vadd.f32 %v1108_v12, %v5774_v21  ;;  %v5871_v25 = vadd.f32 %v1058_v34, %v5240_v60  ;;  %v573_v1 = vadd.f32 %v5639_v49, %v572_v39  ;;  %v5885_v11 = vpop.f32.mrb[11].mxu1 }
 0x1ac   : > { %v970_v62 = vadd.f32 %v4268_v55, %v5639_v49  ;;  %3811 = vst [vmem:[%s5147_s29 + $0x1a8] sm:$0xff] %v5845_v31  ;;  %3834 = vst [vmem:[%s5147_s29 + $0x218] sm:$0xff] %v5848_v16  ;;  %v643_v46 = vsub.f32 %v610_v36, %v5663_v42  ;;  %v1106_v21 = vmul.f32 %v5622_v59, %v1041_v33 }
 0x1ad   : > { %v608_v32 = vsub.f32 %v570_v5, %v5328_v23  ;;  %v611_v60 = vsub.f32 %v581_v6, %v5347_v28  ;;  %v609_v35 = vsub.f32 %v573_v1, %v5330_v24  ;;  %v1063_v26 = vmul.f32 %v5622_v59, %v5818_v22  ;;  %v4244_v10 = vpop.f32.mrb[12].mxu0  ;;  %3832 = vst [vmem:[%s5147_s29 + $0x208] sm:$0xff] %v5871_v25 }
 0x1ae   : > { %v1014_v55 = vsub.f32 %v970_v62, %v5818_v22  ;;  %v962_v63 = vadd.f32 %v5639_v49, %v5791_v47  ;;  %3850 = vst [vmem:[%s5147_s29 + $0x298] sm:$0xff] %v5868_v13  ;;  %v708_v42 = vmul.f32 %v5194_v41, %v643_v46  ;;  %v5899_v51 = vadd.f32 %v1106_v21, %v5780_v45  ;;  %v585_v39 = vpop.f32.mrb[13].mxu0  ;;  %v5923_v1 = vpop.f32.mrb[12].mxu1 }
 0x1af   : > { %v641_v4 = vsub.f32 %v608_v32, %v5667_v18  ;;  %v644_v15 = vsub.f32 %v611_v60, %v5675_v2  ;;  %v642_v12 = vsub.f32 %v609_v35, %v5679_v3  ;;  %v5906_v34 = vadd.f32 %v1063_v26, %v5356_v29  ;;  %v4245_v33 = vpop.f32.mrb[14].mxu0 }
 0x1b0   : > { %v1046_v47 = vsub.f32 %v1014_v55, %v5671_v43  ;;  %v1012_v36 = vsub.f32 %v962_v63, %v5825_v58  ;;  %v5910_v5 = vadd.f32 %v708_v42, %v5345_v27  ;;  %v1061_v3 = vmul.f32 %v5622_v59, %v5825_v58  ;;  %v588_v45 = vpop.f32.mrb[15].mxu0  ;;  %3848 = vst [vmem:[%s5147_s29 + $0x288] sm:$0xff] %v5899_v51  ;;  %v8667_v42 = vld [vmem:[#allocation33_spill] sm:$0xff] }
 0x1b1   : > { %v706_v18 = vmul.f32 %v5194_v41, %v641_v4  ;;  %v709_v2 = vmul.f32 %v5194_v41, %v644_v15  ;;  %v707_v29 = vmul.f32 %v5194_v41, %v642_v12  ;;  %v973_v27 = vadd.f32 %v5801_v48, %v5639_v49  ;;  %3837 = vst [vmem:[%s5147_s29 + $0x230] sm:$0xff] %v5906_v34  ;;  %v5940_v48 = vpop.f32.mrb[13].mxu1  ;;  %v8668_v12 = vld [vmem:[#allocation30_spill] sm:$0xff] }
 0x1b2   : > { %v1111_v43 = vmul.f32 %v5622_v59, %v1046_v47  ;;  %v1044_v6 = vsub.f32 %v1012_v36, %v5683_v8  ;;  %v5934_v21 = vadd.f32 %v1061_v3, %v5303_v14  ;;  %v1064_v8 = vmul.f32 %v5622_v59, %v5834_v38  ;;  %3816 = vst [vmem:[%s5147_s29 + $0x1d0] sm:$0xff] %v5910_v5  ;;  %v5950_v60 = vpop.f32.mrb[14].mxu1 }
 0x1b3   : > { %v5928_v62 = vadd.f32 %v706_v18, %v5328_v23  ;;  %v5931_v46 = vadd.f32 %v709_v2, %v5347_v28  ;;  %v5943_v32 = vadd.f32 %v707_v29, %v5330_v24  ;;  %v1015_v14 = vsub.f32 %v973_v27, %v5834_v38  ;;  %v5964_v26 = vpop.f32.mrb[15].mxu1  ;;  %v8671_v29 = vld [vmem:[#allocation45_spill] sm:$0xff] }
 0x1b4   : > { %v5946_v23 = vadd.f32 %v1111_v43, %v5818_v22  ;;  %v1109_v28 = vmul.f32 %v5622_v59, %v1044_v6  ;;  %v5953_v35 = vadd.f32 %v1064_v8, %v5359_v30  ;;  %v594_v55 = vadd.f32 %v4244_v10, %v5639_v49  ;;  %3835 = vst [vmem:[%s5147_s29 + $0x220] sm:$0xff] %v5934_v21  ;;  %v8672_v6 = vld [vmem:[#allocation32_spill] sm:$0xff] }
 0x1b5   : > { %v965_v24 = vadd.f32 %v5639_v49, %v5807_v52  ;;  %v1062_v22 = vmul.f32 %v5622_v59, %v5845_v31  ;;  %3814 = vst [vmem:[%s5147_s29 + $0x1c0] sm:$0xff] %v5928_v62  ;;  %3817 = vst [vmem:[%s5147_s29 + $0x1d8] sm:$0xff] %v5931_v46  ;;  %v1047_v63 = vsub.f32 %v1015_v14, %v5694_v53 }
 0x1b6   : > { %v5969_v30 = vadd.f32 %v1109_v28, %v5825_v58  ;;  %v586_v52 = vadd.f32 %v5639_v49, %v585_v39  ;;  %v597_v10 = vadd.f32 %v4245_v33, %v5639_v49  ;;  %3815 = vst [vmem:[%s5147_s29 + $0x1c8] sm:$0xff] %v5943_v32  ;;  %3853 = vst [vmem:[%s5147_s29 + $0x2b0] sm:$0xff] %v5946_v23  ;;  %v8669_v39 = vld [vmem:[#allocation31_spill] sm:$0xff]  ;;  %v8670_v33 = vld [vmem:[#allocation34_spill] sm:$0xff] }
 0x1b7   : > { %v614_v4 = vsub.f32 %v594_v55, %v8667_v42  ;;  %v1013_v15 = vsub.f32 %v965_v24, %v5845_v31  ;;  %v5981_v47 = vadd.f32 %v1062_v22, %v8668_v12  ;;  %v589_v58 = vadd.f32 %v5639_v49, %v588_v45  ;;  %3838 = vst [vmem:[%s5147_s29 + $0x238] sm:$0xff] %v5953_v35  ;;  %v8673_v28 = vld [vmem:[#allocation46_spill] sm:$0xff] }
 0x1b8   : > { %v1112_v53 = vmul.f32 %v5622_v59, %v1047_v63  ;;  %v612_v36 = vsub.f32 %v586_v52, %v8669_v39  ;;  %v615_v18 = vsub.f32 %v597_v10, %v8670_v33  ;;  %v986_v2 = vadd.f32 %v5855_v7, %v5639_v49  ;;  %3851 = vst [vmem:[%s5147_s29 + $0x2a0] sm:$0xff] %v5969_v30  ;;  %v8674_v7 = vld [vmem:[#allocation47_spill] sm:$0xff]  ;;  %v8675_v52 = vld [vmem:[#allocation37_spill] sm:$0xff] }
 0x1b9   : > { %v647_v3 = vsub.f32 %v614_v4, %v5698_v61  ;;  %v1045_v43 = vsub.f32 %v1013_v15, %v8671_v29  ;;  %v613_v45 = vsub.f32 %v589_v58, %v8672_v6  ;;  %v1067_v27 = vmul.f32 %v5622_v59, %v5910_v5  ;;  %3836 = vst [vmem:[%s5147_s29 + $0x228] sm:$0xff] %v5981_v47  ;;  %v8676_v15 = vld [vmem:[#allocation48_spill] sm:$0xff] }
 0x1ba   : > { %v6001_v8 = vadd.f32 %v1112_v53, %v5834_v38  ;;  %v645_v14 = vsub.f32 %v612_v36, %v8673_v28  ;;  %v648_v55 = vsub.f32 %v615_v18, %v8674_v7  ;;  %v1018_v61 = vsub.f32 %v986_v2, %v5910_v5 }
 0x1bb   : > { %v712_v24 = vmul.f32 %v5194_v41, %v647_v3  ;;  %v1110_v22 = vmul.f32 %v5622_v59, %v1045_v43  ;;  %v646_v63 = vsub.f32 %v613_v45, %v5715_v44  ;;  %v6010_v10 = vadd.f32 %v1067_v27, %v8675_v52  ;;  %v8678_v45 = vld [vmem:[#allocation49_spill] sm:$0xff] }
 0x1bc   : > { %v710_v4 = vmul.f32 %v5194_v41, %v645_v14  ;;  %v713_v38 = vmul.f32 %v5194_v41, %v648_v55  ;;  %v1050_v12 = vsub.f32 %v1018_v61, %v8676_v15  ;;  %v978_v58 = vadd.f32 %v5639_v49, %v5863_v54  ;;  %3854 = vst [vmem:[%s5147_s29 + $0x2b8] sm:$0xff] %v6001_v8  ;;  %v8679_v14 = vld [vmem:[#allocation38_spill] sm:$0xff] }
 0x1bd   : > { %v728_v53 = vadd.f32 %v712_v24, %v8667_v42  ;;  %v6021_v44 = vadd.f32 %v1110_v22, %v5845_v31  ;;  %v711_v36 = vmul.f32 %v5194_v41, %v646_v63  ;;  %v1065_v18 = vmul.f32 %v5622_v59, %v5928_v62  ;;  %3841 = vst [vmem:[%s5147_s29 + $0x250] sm:$0xff] %v6010_v10  ;;  %v8677_v41 = vld [vmem:[#allocation35_spill] sm:$0xff]  ;;  %v8680_v24 = vld [vmem:[#allocation36_spill] sm:$0xff] }
 0x1be   : > { %v726_v2 = vadd.f32 %v710_v4, %v8669_v39  ;;  %v6030_v54 = vadd.f32 %v713_v38, %v8670_v33  ;;  %v1115_v3 = vmul.f32 %v5622_v59, %v1050_v12  ;;  %v1016_v42 = vsub.f32 %v978_v58, %v5928_v62  ;;  %v8682_v38 = vld [vmem:[#allocation41_spill] sm:$0xff] }
 0x1bf   : > { %v6035_v31 = vadd.f32 %v711_v36, %v8672_v6  ;;  %v6038_v29 = vadd.f32 %v1065_v18, %v8677_v41  ;;  %v989_v43 = vadd.f32 %v5877_v37, %v5639_v49  ;;  %v1068_v39 = vmul.f32 %v5622_v59, %v5931_v46  ;;  %3820 = vst [vmem:[%s5147_s29 + $0x1f0] sm:$0xff] %v728_v53  ;;  %v8683_v18 = vld [vmem:[#allocation44_spill] sm:$0xff] }
 0x1c0   : > { %3852 = vst [vmem:[%s5147_s29 + $0x2a8] sm:$0xff] %v6021_v44  ;;  %v6048_v33 = vadd.f32 %v1115_v3, %v5910_v5  ;;  %v1048_v6 = vsub.f32 %v1016_v42, %v8678_v45  ;;  %v981_v27 = vadd.f32 %v5639_v49, %v5885_v11  ;;  %v1066_v28 = vmul.f32 %v5622_v59, %v5943_v32  ;;  %v8685_v45 = vld [vmem:[#allocation52_spill] sm:$0xff] }
 0x1c1   : > { %3818 = vst [vmem:[%s5147_s29 + $0x1e0] sm:$0xff] %v726_v2  ;;  %3821 = vst [vmem:[%s5147_s29 + $0x1f8] sm:$0xff] %v6030_v54  ;;  %v1019_v37 = vsub.f32 %v989_v43, %v5931_v46  ;;  %v6060_v7 = vadd.f32 %v1068_v39, %v8679_v14  ;;  %v1002_v5 = vadd.f32 %v5923_v1, %v5639_v49  ;;  %v8681_v1 = vld [vmem:[#allocation50_spill] sm:$0xff]  ;;  %v8684_v43 = vld [vmem:[#allocation39_spill] sm:$0xff] }
 0x1c2   : > { %v1071_v55 = vmul.f32 %v5622_v59, %v728_v53  ;;  %3819 = vst [vmem:[%s5147_s29 + $0x1e8] sm:$0xff] %v6035_v31  ;;  %3839 = vst [vmem:[%s5147_s29 + $0x240] sm:$0xff] %v6038_v29  ;;  %v1113_v11 = vmul.f32 %v5622_v59, %v1048_v6  ;;  %v1017_v61 = vsub.f32 %v981_v27, %v5943_v32  ;;  %v8686_v27 = vld [vmem:[#allocation51_spill] sm:$0xff] }
 0x1c3   : > { %v6072_v22 = vadd.f32 %v1066_v28, %v8680_v24  ;;  %v994_v63 = vadd.f32 %v5639_v49, %v5940_v48  ;;  %3857 = vst [vmem:[%s5147_s29 + $0x2d0] sm:$0xff] %v6048_v33  ;;  %v1051_v52 = vsub.f32 %v1019_v37, %v8681_v1  ;;  %v1022_v4 = vsub.f32 %v1002_v5, %v728_v53 }
 0x1c4   : > { %v6080_v15 = vadd.f32 %v1071_v55, %v8682_v38  ;;  %v1069_v12 = vmul.f32 %v5622_v59, %v726_v2  ;;  %3842 = vst [vmem:[%s5147_s29 + $0x258] sm:$0xff] %v6060_v7  ;;  %v6086_v58 = vadd.f32 %v1113_v11, %v5928_v62  ;;  %v1049_v36 = vsub.f32 %v1017_v61, %v5735_v19 }
 0x1c5   : > { %v1020_v48 = vsub.f32 %v994_v63, %v726_v2  ;;  %v6091_v3 = vmul.f32 %v8683_v18, %v5812_v0  ;;  %3840 = vst [vmem:[%s5147_s29 + $0x248] sm:$0xff] %v6072_v22  ;;  %v1116_v42 = vmul.f32 %v5622_v59, %v1051_v52  ;;  %v1054_v41 = vsub.f32 %v1022_v4, %v5740_v17  ;;  %v8687_v4 = vld [vmem:[#allocation42_spill] sm:$0xff] }
 0x1c6   : > { %v6098_v39 = vadd.f32 %v1069_v12, %v8684_v43  ;;  %v6102_v62 = vmul.f32 %v8683_v18, %v5871_v25  ;;  %3845 = vst [vmem:[%s5147_s29 + $0x270] sm:$0xff] %v6080_v15  ;;  %v1114_v19 = vmul.f32 %v5622_v59, %v1049_v36  ;;  %v1464_v28 = vmul.f32 %v8686_v27, %v5836_v9  ;;  %v8688_v43 = vld [vmem:[#allocation40_spill] sm:$0xff] }
 0x1c7   : > { %v1052_v6 = vsub.f32 %v1020_v48, %v8685_v45  ;;  %v1465_v37 = vmul.f32 %v8686_v27, %v5899_v51  ;;  %3855 = vst [vmem:[%s5147_s29 + $0x2c0] sm:$0xff] %v6086_v58  ;;  %v6115_v17 = vadd.f32 %v1116_v42, %v5931_v46  ;;  %v1119_v14 = vmul.f32 %v5622_v59, %v1054_v41 }
 0x1c8   : > { %v1239_v5 = vpack.c.bf16 %v6102_v62, %v6091_v3  ;;  %v1005_v55 = vadd.f32 %v5950_v60, %v5639_v49  ;;  %3843 = vst [vmem:[%s5147_s29 + $0x260] sm:$0xff] %v6098_v39  ;;  %v6125_v11 = vadd.f32 %v1114_v19, %v5943_v32  ;;  %v6129_v46 = vadd.f32 %v1464_v28, %v5812_v0 }
 0x1c9   : > { %v1117_v61 = vmul.f32 %v5622_v59, %v1052_v6  ;;  %v6132_v24 = vadd.f32 %v1465_v37, %v5871_v25  ;;  %v6134_v63 = vadd.f32 %v1119_v14, %v728_v53  ;;  %v1072_v1 = vmul.f32 %v5622_v59, %v6030_v54  ;;  %3858 = vst [vmem:[%s5147_s29 + $0x2d8] sm:$0xff] %v6115_v17 }
 0x1ca   : > { %4294 = vmatprep.mubr.bf16.mxu0 %v1239_v5  ;;  %v1023_v60 = vsub.f32 %v1005_v55, %v6030_v54  ;;  %v6141_v32 = vmul.f32 %v8683_v18, %v5796_v56  ;;  %v6149_v25 = vmul.f32 %v8683_v18, %v5848_v16  ;;  %v1466_v53 = vmul.f32 %v8686_v27, %v5821_v20 }
 0x1cb   : > { %v6145_v0 = vadd.f32 %v1117_v61, %v726_v2  ;;  %v1467_v52 = vmul.f32 %v8686_v27, %v5868_v13  ;;  %3856 = vst [vmem:[%s5147_s29 + $0x2c8] sm:$0xff] %v6125_v11  ;;  %3872 = vst [vmem:[%s5147_s29 + $0x300] sm:$0xff] %v6129_v46  ;;  %v6163_v38 = vadd.f32 %v1072_v1, %v8687_v4 }
 0x1cc   : > { %3873 = vst [vmem:[%s5147_s29 + $0x308] sm:$0xff] %v6132_v24  ;;  %v1055_v2 = vsub.f32 %v1023_v60, %v5752_v50  ;;  %v997_v12 = vadd.f32 %v5639_v49, %v5964_v26  ;;  %v1070_v36 = vmul.f32 %v5622_v59, %v6035_v31  ;;  %3861 = vst [vmem:[%s5147_s29 + $0x2f0] sm:$0xff] %v6134_v63 }
 0x1cd   : > { %v1240_v48 = vpack.c.bf16 %v6149_v25, %v6141_v32  ;;  %v6174_v42 = vadd.f32 %v1466_v53, %v5796_v56  ;;  %v6177_v50 = vadd.f32 %v1467_v52, %v5848_v16  ;;  %v6181_v41 = vmul.f32 %v8683_v18, %v5934_v21  ;;  %3859 = vst [vmem:[%s5147_s29 + $0x2e0] sm:$0xff] %v6145_v0 }
 0x1ce   : > { %v1120_v49 = vmul.f32 %v5622_v59, %v1055_v2  ;;  %v1021_v26 = vsub.f32 %v997_v12, %v6035_v31  ;;  %v6188_v19 = vadd.f32 %v1070_v36, %v8688_v43  ;;  %v6192_v56 = vmul.f32 %v8683_v18, %v5981_v47  ;;  %3846 = vst [vmem:[%s5147_s29 + $0x278] sm:$0xff] %v6163_v38 }
 0x1cf   : > { %4295 = vmatmul.mubr.bf16.vlgmr.msra.gmra.mrb[16].mxu0 %v1240_v48  ;;  %v1468_v16 = vmul.f32 %v8686_v27, %v5969_v30  ;;  %v1469_v45 = vmul.f32 %v8686_v27, %v6021_v44  ;;  %v6202_v6 = vmul.f32 %v8683_v18, %v5906_v34  ;;  %v6206_v28 = vmul.f32 %v8683_v18, %v5953_v35 }
 0x1d0   : > { %3874 = vst [vmem:[%s5147_s29 + $0x310] sm:$0xff] %v6174_v42  ;;  %3875 = vst [vmem:[%s5147_s29 + $0x318] sm:$0xff] %v6177_v50  ;;  %v6213_v37 = vadd.f32 %v1120_v49, %v6030_v54  ;;  %v1053_v14 = vsub.f32 %v1021_v26, %v5758_v40  ;;  %v1241_v5 = vpack.c.bf16 %v6192_v56, %v6181_v41 }
 0x1d1   : > { %v1470_v55 = vmul.f32 %v8686_v27, %v5946_v23  ;;  %3844 = vst [vmem:[%s5147_s29 + $0x268] sm:$0xff] %v6188_v19  ;;  %v6223_v61 = vadd.f32 %v1468_v16, %v5934_v21  ;;  %v6226_v60 = vadd.f32 %v1469_v45, %v5981_v47  ;;  %v1242_v54 = vpack.c.bf16 %v6206_v28, %v6202_v6 }
 0x1d2   : > { %8689 = vst [vmem:[#allocation33_spill] sm:$0xff] %v6213_v37  ;;  %v1471_v40 = vmul.f32 %v8686_v27, %v6001_v8  ;;  %v1118_v1 = vmul.f32 %v5622_v59, %v1053_v14  ;;  %4298 = vmatprep.mubr.bf16.mxu0 %v1241_v5  ;;  %v6238_v21 = vmul.f32 %v8683_v18, %v6038_v29  ;;  %3862 = vst [vmem:[%s5147_s29 + $0x2f8] sm:$0xff] %v6213_v37 }
 0x1d3   : > { %8690 = vst [vmem:[#allocation30_spill] sm:$0xff] %v6223_v61  ;;  %8691 = vst [vmem:[#allocation31_spill] sm:$0xff] %v6226_v60  ;;  %v6234_v53 = vadd.f32 %v1470_v55, %v5906_v34  ;;  %v6242_v47 = vmul.f32 %v8683_v18, %v6072_v22  ;;  %v1472_v59 = vmul.f32 %v8686_v27, %v6086_v58 }
 0x1d4   : > { %v6247_v52 = vadd.f32 %v1471_v40, %v5953_v35  ;;  %v1473_v34 = vmul.f32 %v8686_v27, %v6125_v11  ;;  %v6255_v2 = vmul.f32 %v5763_v57, %v6129_v46  ;;  %3876 = vst [vmem:[%s5147_s29 + $0x320] sm:$0xff] %v6223_v61  ;;  %3877 = vst [vmem:[%s5147_s29 + $0x328] sm:$0xff] %v6226_v60 }
 0x1d5   : > { %v6262_v4 = vadd.f32 %v1118_v1, %v6035_v31  ;;  %v1243_v35 = vpack.c.bf16 %v6242_v47, %v6238_v21  ;;  %v6268_v12 = vmul.f32 %v5763_v57, %v6132_v24  ;;  %v6272_v36 = vmul.f32 %v8683_v18, %v6010_v10  ;;  %3878 = vst [vmem:[%s5147_s29 + $0x330] sm:$0xff] %v6234_v53 }
 0x1d6   : > { %8692 = vst [vmem:[#allocation34_spill] sm:$0xff] %v6247_v52  ;;  %v6277_v48 = vadd.f32 %v1472_v59, %v6038_v29  ;;  %v6280_v31 = vadd.f32 %v1473_v34, %v6072_v22  ;;  %v6284_v49 = vmul.f32 %v8683_v18, %v6060_v7  ;;  %v1474_v26 = vmul.f32 %v8686_v27, %v6048_v33 }
 0x1d7   : > { %8693 = vst [vmem:[#allocation45_spill] sm:$0xff] %v6262_v4  ;;  %3879 = vst [vmem:[%s5147_s29 + $0x338] sm:$0xff] %v6247_v52  ;;  %v1646_v43 = vpack.c.bf16 %v6268_v12, %v6255_v2  ;;  %v1475_v29 = vmul.f32 %v8686_v27, %v6115_v17  ;;  %v6296_v16 = vmul.f32 %v5763_v57, %v6174_v42  ;;  %4299 = vmatmul.mubr.bf16.gmra.mrb[20].mxu0 %v1242_v54 }
 0x1d8   : > { %8694 = vst [vmem:[#allocation32_spill] sm:$0xff] %v6277_v48  ;;  %8695 = vst [vmem:[#allocation46_spill] sm:$0xff] %v6280_v31  ;;  %v6300_v22 = vmul.f32 %v5763_v57, %v6177_v50  ;;  %v1244_v45 = vpack.c.bf16 %v6284_v49, %v6272_v36  ;;  %v6307_v14 = vadd.f32 %v1474_v26, %v6010_v10  ;;  %4302 = vmatprep.mubr.bf16.mxu0 %v1243_v35 }
 0x1d9   : > { %3860 = vst [vmem:[%s5147_s29 + $0x2e8] sm:$0xff] %v6262_v4  ;;  %v6311_v5 = vmul.f32 %v8683_v18, %v6098_v39  ;;  %v6315_v55 = vmul.f32 %v8683_v18, %v6188_v19  ;;  %3880 = vst [vmem:[%s5147_s29 + $0x340] sm:$0xff] %v6277_v48  ;;  %4326 = vmatprep.mubr.bf16.mxu1 %v1646_v43  ;;  %v6322_v54 = vadd.f32 %v1475_v29, %v6060_v7 }
 0x1da   : > { %8696 = vst [vmem:[#allocation47_spill] sm:$0xff] %v6307_v14  ;;  %3881 = vst [vmem:[%s5147_s29 + $0x348] sm:$0xff] %v6280_v31  ;;  %v1647_v10 = vpack.c.bf16 %v6300_v22, %v6296_v16  ;;  %v1476_v40 = vmul.f32 %v8686_v27, %v6145_v0  ;;  %v1477_v59 = vmul.f32 %v8686_v27, %v6262_v4 }
 0x1db   : > { %8697 = vst [vmem:[#allocation37_spill] sm:$0xff] %v6322_v54  ;;  %v1245_v1 = vpack.c.bf16 %v6315_v55, %v6311_v5  ;;  %v6334_v34 = vmul.f32 %v5763_v57, %v6223_v61  ;;  %v6338_v7 = vmul.f32 %v5763_v57, %v6226_v60  ;;  %3882 = vst [vmem:[%s5147_s29 + $0x350] sm:$0xff] %v6307_v14 }
 0x1dc   : > { %4327 = vmatmul.mubr.bf16.vlgmr.msra.gmra.mrb[16].mxu1 %v1647_v10  ;;  %v6343_v35 = vadd.f32 %v1476_v40, %v6098_v39  ;;  %v6347_v26 = vmul.f32 %v8683_v18, %v6080_v15  ;;  %v6351_v43 = vmul.f32 %v8683_v18, %v6163_v38  ;;  %v1478_v29 = vmul.f32 %v8686_v27, %v6134_v63 }
 0x1dd   : > { %3883 = vst [vmem:[%s5147_s29 + $0x358] sm:$0xff] %v6322_v54  ;;  %v6358_v10 = vadd.f32 %v1477_v59, %v6188_v19  ;;  %v1648_v39 = vpack.c.bf16 %v6338_v7, %v6334_v34  ;;  %v1479_v40 = vmul.f32 %v8686_v27, %v6213_v37  ;;  %v6371_v4 = vmul.f32 %v5763_v57, %v6247_v52 }
 0x1de   : > { %8698 = vst [vmem:[#allocation48_spill] sm:$0xff] %v6343_v35  ;;  %v1246_v18 = vpack.c.bf16 %v6351_v43, %v6347_v26  ;;  %v6367_v60 = vadd.f32 %v1478_v29, %v6080_v15  ;;  %3884 = vst [vmem:[%s5147_s29 + $0x360] sm:$0xff] %v6343_v35  ;;  %v6380_v59 = vmul.f32 %v5763_v57, %v6277_v48  ;;  %v4657_v48 = vld [vmem:[#allocation10 + $0x8] sm:$0xff]  }
 0x1df   : > { %8699 = vst [vmem:[#allocation35_spill] sm:$0xff] %v6358_v10  ;;  %4330 = vmatprep.mubr.bf16.mxu1 %v1648_v39  ;;  %v6376_v19 = vadd.f32 %v1479_v40, %v6163_v38  ;;  %v6384_v37 = vmul.f32 %v5763_v57, %v6280_v31  ;;  %3885 = vst [vmem:[%s5147_s29 + $0x368] sm:$0xff] %v6358_v10  ;;  %v6390_v15 = vmul.f32 %v5763_v57, %v6234_v53 }
 0x1e0   : > { %8700 = vst [vmem:[#allocation49_spill] sm:$0xff] %v6367_v60  ;;  %3886 = vst [vmem:[%s5147_s29 + $0x370] sm:$0xff] %v6367_v60  ;;  %4303 = vmatmul.mubr.bf16.gmra.mrb[24].mxu0 %v1244_v45  ;;  %v6402_v39 = vmul.f32 %v5763_v57, %v6358_v10  ;;  %v6406_v40 = vmul.f32 %v5763_v57, %v6322_v54  ;;  %v6410_v45 = vmul.f32 %v5763_v57, %v6343_v35  ;;  %v4651_v54 = vld [vmem:[#allocation10 + $0x8] sm:$0xff]  }
 0x1e1   : > { %8701 = vst [vmem:[#allocation38_spill] sm:$0xff] %v6376_v19  ;;  %v1650_v38 = vpack.c.bf16 %v6384_v37, %v6380_v59  ;;  %3887 = vst [vmem:[%s5147_s29 + $0x378] sm:$0xff] %v6376_v19  ;;  %4306 = vmatprep.mubr.bf16.mxu0 %v1245_v1  ;;  %v1649_v29 = vpack.c.bf16 %v6371_v4, %v6390_v15  ;;  %v6414_v1 = vmul.f32 %v5763_v57, %v6307_v14 }
 0x1e2   : > { %v6422_v10 = vmul.f32 %v5763_v57, %v6376_v19  ;;  %v6426_v35 = vmul.f32 %v5763_v57, %v6367_v60  ;;  %v4653_v19 = vld [vmem:[#allocation10 + $0x18] sm:$0xff]   ;;  %v4654_v57 = vld [vmem:[#allocation10 + $0x20] sm:$0xff]  }
 0x1e4   : > { %4331 = vmatmul.mubr.bf16.gmra.mrb[20].mxu1 %v1649_v29  ;;  %v1651_v29 = vpack.c.bf16 %v6406_v40, %v6414_v1  ;;  %v1653_v31 = vpack.c.bf16 %v6422_v10, %v6426_v35 }
 0x1e5   : > { %4334 = vmatprep.mubr.bf16.mxu1 %v1650_v38  ;;  %v1652_v38 = vpack.c.bf16 %v6402_v39, %v6410_v45 }
 0x1e8   : > { %4307 = vmatmul.mubr.bf16.gmra.mrb[28].mxu0 %v1246_v18  ;;  %v4650_v18 = vld [vmem:[#allocation10] sm:$0xff]  }
 0x1e9   : > { %4342 = vmatprep.subr.bf16.mxu0 %v4650_v18 }
 0x1ea   : > { %4343 = vmatpush3.bf16.msra.mxu0 %v4650_v18  ;;  %v4656_v18 = vld [vmem:[#allocation10 + $0x28] sm:$0xff]  }
 0x1eb   : > { %4344 = vmatprep.subr.bf16.mxu0 %v4651_v54 }
 0x1ec   : > { %4335 = vmatmul.mubr.bf16.gmra.mrb[24].mxu1 %v1651_v29  ;;  %v4652_v29 = vld [vmem:[#allocation10 + $0x10] sm:$0xff]  }
 0x1ed   : > { %4338 = vmatprep.mubr.bf16.mxu1 %v1652_v38  ;;  %v4655_v38 = vld [vmem:[#allocation10] sm:$0xff]  }
 0x1ee   : > { %4345 = vmatpush3.bf16.msra.mxu0 %v4651_v54  ;;  %4374 = vmatprep.subr.bf16.mxu1 %v4655_v38  ;;  %v4661_v54 = vld [vmem:[#allocation10 + $0x18] sm:$0xff]  }
 0x1ef   : > { %4346 = vmatprep.subr.bf16.mxu0 %v4652_v29  ;;  %4375 = vmatpush3.bf16.msra.mxu1 %v4655_v38  ;;  %v4660_v38 = vld [vmem:[#allocation10 + $0x38] sm:$0xff]  }
 0x1f0   : > { %4376 = vmatprep.subr.bf16.mxu1 %v4657_v48 }
 0x1f2   : > { %4347 = vmatpush3.bf16.msra.mxu0 %v4652_v29  ;;  %v4658_v29 = vld [vmem:[#allocation10 + $0x30] sm:$0xff]  }
 0x1f3   : > { %4348 = vmatprep.subr.bf16.mxu0 %v4653_v19  ;;  %4377 = vmatpush3.bf16.msra.mxu1 %v4657_v48  ;;  %v4663_v48 = vld [vmem:[#allocation10 + $0x28] sm:$0xff]  }
 0x1f4   : > { %4339 = vmatmul.mubr.bf16.gmra.mrb[28].mxu1 %v1653_v31  ;;  %v4659_v31 = vld [vmem:[#allocation10 + $0x10] sm:$0xff]  }
 0x1f5   : > { %4378 = vmatprep.subr.bf16.mxu1 %v4659_v31 }
 0x1f6   : > { %4349 = vmatpush3.bf16.msra.mxu0 %v4653_v19  ;;  %v4662_v19 = vld [vmem:[#allocation10 + $0x20] sm:$0xff]  }
 0x1f7   : > { %4350 = vmatprep.subr.bf16.mxu0 %v4654_v57  ;;  %4379 = vmatpush3.bf16.msra.mxu1 %v4659_v31  ;;  %v4665_v31 = vld [vmem:[#allocation10 + $0x38] sm:$0xff]  }
 0x1f8   : > { %4380 = vmatprep.subr.bf16.mxu1 %v4661_v54 }
 0x1fa   : > { %4351 = vmatpush3.bf16.msra.mxu0 %v4654_v57  ;;  %v4664_v57 = vld [vmem:[#allocation10 + $0x30] sm:$0xff]  }
 0x1fb   : > { %4352 = vmatprep.subr.bf16.mxu0 %v4656_v18  ;;  %4381 = vmatpush3.bf16.msra.mxu1 %v4661_v54  ;;  %v8702_v54 = vld [vmem:[#allocation43_spill] sm:$0xff] }
 0x1fc   : > { %4382 = vmatprep.subr.bf16.mxu1 %v4662_v19  ;;  %v6451_v60 = vmul.f32 %v6181_v41, %v8702_v54  ;;  %v6471_v41 = vmul.f32 %v6238_v21, %v8702_v54 }
 0x1fe   : > { %4353 = vmatpush3.bf16.msra.mxu0 %v4656_v18  ;;  %v6432_v18 = vstv %s1627_s10 }
 0x1ff   : > { %4354 = vmatprep.subr.bf16.mxu0 %v4658_v29  ;;  %4383 = vmatpush3.bf16.msra.mxu1 %v4662_v19  ;;  %v1434_v19 = vmul.f32 %v6149_v25, %v8702_v54  ;;  %v6463_v25 = vmul.f32 %v6272_v36, %v8702_v54  ;;  %v6484_v36 = vmul.f32 %v6300_v22, %v8702_v54 }
 0x200   : > { %4384 = vmatprep.subr.bf16.mxu1 %v4663_v48  ;;  %v6503_v22 = vmul.f32 %v6390_v15, %v8702_v54 }
 0x202   : > { %4355 = vmatpush3.bf16.msra.mxu0 %v4658_v29  ;;  %v1433_v29 = vmul.f32 %v6141_v32, %v8702_v54  ;;  %v6459_v32 = vmul.f32 %v6192_v56, %v8702_v54  ;;  %v6480_v56 = vmul.f32 %v6284_v49, %v8702_v54  ;;  %v6499_v49 = vmul.f32 %v6347_v26, %v8702_v54 }
 0x203   : > { %4356 = vmatprep.subr.bf16.mxu0 %v4660_v38  ;;  %4385 = vmatpush3.bf16.msra.mxu1 %v4663_v48  ;;  %v6441_v48 = vld [vmem:[#allocation12] ss:$0 sm:$0xff]  ;;  %v6518_v26 = vmul.f32 %v6351_v43, %v8702_v54 }
 0x204   : > { %4386 = vmatprep.subr.bf16.mxu1 %v4664_v57 }
 0x205   : > { %8704 = vst [vmem:[#allocation50_spill] sm:$0xff] %v6518_v26  ;;  %v6538_v26 = vmul.f32 %v6338_v7, %v8702_v54 }
 0x206   : > { %4357 = vmatpush3.bf16.msra.mxu0 %v4660_v38  ;;  %v1431_v38 = vmul.f32 %v6091_v3, %v8702_v54  ;;  %v6455_v3 = vmul.f32 %v6206_v28, %v8702_v54  ;;  %v6476_v28 = vmul.f32 %v6255_v2, %v8702_v54  ;;  %v6495_v2 = vmul.f32 %v6268_v12, %v8702_v54 }
 0x207   : > { %4387 = vmatpush3.bf16.msra.mxu1 %v4664_v57  ;;  %v1432_v57 = vmul.f32 %v6102_v62, %v8702_v54  ;;  %v6467_v62 = vmul.f32 %v6296_v16, %v8702_v54  ;;  %v6488_v16 = vmul.f32 %v6242_v47, %v8702_v54  ;;  %v6514_v12 = vmul.f32 %v6334_v34, %v8702_v54 }
 0x208   : > { %4388 = vmatprep.subr.bf16.mxu1 %v4665_v31  ;;  %v6532_v34 = vmul.f32 %v6315_v55, %v8702_v54  ;;  %v6547_v55 = vmul.f32 %v6380_v59, %v8702_v54 }
 0x209   : > { %8703 = vst [vmem:[#allocation36_spill] sm:$0xff] %v6514_v12 }
 0x20b   : > { %4389 = vmatpush3.bf16.msra.mxu1 %v4665_v31  ;;  %v6447_v31 = vmul.f32 %v6202_v6, %v8702_v54 }
 0x2a2   : > { %v4296_v6 = vpop.f32.mrb[16].mxu0 }
 0x2a3   : > { %v1361_v21 = vadd.f32 %v4296_v6, %v6441_v48  ;;  %v1352_v14 = vpop.f32.mrb[17].mxu0  ;;  %v6510_v6 = vmul.f32 %v6311_v5, %v8702_v54  ;;  %v6528_v5 = vmul.f32 %v6371_v4, %v8702_v54 }
 0x2a4   : > { %v1353_v47 = vadd.f32 %v6441_v48, %v1352_v14  ;;  %v4297_v52 = vpop.f32.mrb[18].mxu0 }
 0x2a5   : > { %v1417_v15 = vsub.f32 %v1361_v21, %v5821_v20  ;;  %v1364_v14 = vadd.f32 %v4297_v52, %v6441_v48  ;;  %v1355_v61 = vpop.f32.mrb[19].mxu0  ;;  %v6542_v52 = vmul.f32 %v6414_v1, %v8702_v54  ;;  %v6556_v1 = vmul.f32 %v6384_v37, %v8702_v54 }
 0x2a6   : > { %v1415_v12 = vsub.f32 %v1353_v47, %v5836_v9  ;;  %v1356_v43 = vadd.f32 %v6441_v48, %v1355_v61  ;;  %v6551_v47 = vmul.f32 %v6406_v40, %v8702_v54  ;;  %v6569_v40 = vmul.f32 %v6422_v10, %v8702_v54 }
 0x2a7   : > { %v1449_v21 = vsub.f32 %v1417_v15, %v1433_v29  ;;  %v1418_v4 = vsub.f32 %v1364_v14, %v5868_v13  ;;  %v6560_v29 = vmul.f32 %v6426_v35, %v8702_v54  ;;  %v6565_v14 = vmul.f32 %v6410_v45, %v8702_v54 }
 0x2a8   : > { %v1447_v61 = vsub.f32 %v1415_v12, %v1431_v38  ;;  %v1416_v7 = vsub.f32 %v1356_v43, %v5899_v51  ;;  %8705 = vst [vmem:[#allocation41_spill] sm:$0xff] %v6569_v40  ;;  %v6573_v43 = vstv %s6490_s21  ;;  %v6577_v35 = vmul.f32 %v6402_v39, %v8702_v54 }
 0x2a9   : > { %v1514_v15 = vmul.f32 %v8686_v27, %v1449_v21  ;;  %v1450_v59 = vsub.f32 %v1418_v4, %v1434_v19  ;;  %v6585_v4 = vstv %s6505_s12  ;;  %v6593_v54 = vstv %s6522_s16 }
 0x2aa   : > { %v1512_v38 = vmul.f32 %v8686_v27, %v1447_v61  ;;  %v1448_v37 = vsub.f32 %v1416_v7, %v1432_v57  ;;  %v4300_v12 = vpop.f32.mrb[20].mxu0  ;;  %8706 = vst [vmem:[#allocation44_spill] sm:$0xff] %v6577_v35  ;;  %8707 = vst [vmem:[#allocation39_spill] sm:$0xff] %v6593_v54 }
 0x2ab   : > { %v6580_v19 = vadd.f32 %v1514_v15, %v5821_v20  ;;  %v1515_v45 = vmul.f32 %v8686_v27, %v1450_v59  ;;  %v1377_v21 = vadd.f32 %v4300_v12, %v6441_v48  ;;  %v1368_v10 = vpop.f32.mrb[21].mxu0 }
 0x2ac   : > { %v6588_v57 = vadd.f32 %v1512_v38, %v5836_v9  ;;  %v1513_v61 = vmul.f32 %v8686_v27, %v1448_v37  ;;  %v1369_v7 = vadd.f32 %v6441_v48, %v1368_v10  ;;  %v4301_v39 = vpop.f32.mrb[22].mxu0 }
 0x2ad   : > { %v6596_v20 = vadd.f32 %v1515_v45, %v5868_v13  ;;  %v1421_v15 = vsub.f32 %v1377_v21, %v5946_v23  ;;  %v1380_v59 = vadd.f32 %v4301_v39, %v6441_v48  ;;  %v1371_v12 = vpop.f32.mrb[23].mxu0  ;;  %3890 = vst [vmem:[%s5147_s29 + $0x390] sm:$0xff] %v6580_v19  ;;  %v1873_v38 = vmul.f32 %v6432_v18, %v6580_v19 }
 0x2ae   : > { %v6605_v37 = vadd.f32 %v1513_v61, %v5899_v51  ;;  %v1419_v10 = vsub.f32 %v1369_v7, %v5969_v30  ;;  %v1372_v13 = vadd.f32 %v6441_v48, %v1371_v12  ;;  %3888 = vst [vmem:[%s5147_s29 + $0x380] sm:$0xff] %v6588_v57 }
 0x2af   : > { %v4328_v9 = vpop.f32.mrb[16].mxu1  ;;  %v1453_v39 = vsub.f32 %v1421_v15, %v6447_v31  ;;  %v1422_v54 = vsub.f32 %v1380_v59, %v6001_v8  ;;  %v6615_v35 = vadd.f32 %v1873_v38, %v6174_v42  ;;  %3891 = vst [vmem:[%s5147_s29 + $0x398] sm:$0xff] %v6596_v20  ;;  %v1871_v31 = vmul.f32 %v6432_v18, %v6588_v57 }
 0x2b0   : > { %v1768_v45 = vadd.f32 %v4328_v9, %v6441_v48  ;;  %v1759_v21 = vpop.f32.mrb[17].mxu1  ;;  %v1451_v7 = vsub.f32 %v1419_v10, %v6451_v60  ;;  %v1420_v12 = vsub.f32 %v1372_v13, %v6021_v44  ;;  %3889 = vst [vmem:[%s5147_s29 + $0x388] sm:$0xff] %v6605_v37 }
 0x2b1   : > { %v1760_v51 = vadd.f32 %v6441_v48, %v1759_v21  ;;  %v4329_v61 = vpop.f32.mrb[18].mxu1  ;;  %v1518_v42 = vmul.f32 %v8686_v27, %v1453_v39  ;;  %v1454_v59 = vsub.f32 %v1422_v54, %v6455_v3  ;;  %3915 = vst [vmem:[%s5147_s29 + $0x410] sm:$0xff] %v6615_v35  ;;  %v6637_v40 = vadd.f32 %v1871_v31, %v6129_v46 }
 0x2b2   : > { %v1824_v9 = vsub.f32 %v1768_v45, %v6580_v19  ;;  %v1762_v15 = vpop.f32.mrb[19].mxu1  ;;  %v1771_v21 = vadd.f32 %v4329_v61, %v6441_v48  ;;  %v1516_v60 = vmul.f32 %v8686_v27, %v1451_v7  ;;  %v1452_v10 = vsub.f32 %v1420_v12, %v6459_v32 }
 0x2b3   : > { %v1822_v38 = vsub.f32 %v1760_v51, %v6588_v57  ;;  %v4304_v13 = vpop.f32.mrb[24].mxu0  ;;  %v6640_v39 = vadd.f32 %v1518_v42, %v5946_v23  ;;  %v1519_v54 = vmul.f32 %v8686_v27, %v1454_v59  ;;  %3913 = vst [vmem:[%s5147_s29 + $0x400] sm:$0xff] %v6637_v40 }
 0x2b4   : > { %v1856_v45 = vsub.f32 %v1824_v9, %v6467_v62  ;;  %v1393_v3 = vadd.f32 %v4304_v13, %v6441_v48  ;;  %v1384_v51 = vpop.f32.mrb[25].mxu0  ;;  %v6646_v7 = vadd.f32 %v1516_v60, %v5969_v30  ;;  %v1517_v32 = vmul.f32 %v8686_v27, %v1452_v10 }
 0x2b5   : > { %v1854_v61 = vsub.f32 %v1822_v38, %v6476_v28  ;;  %v1385_v62 = vadd.f32 %v6441_v48, %v1384_v51  ;;  %v4305_v23 = vpop.f32.mrb[26].mxu0  ;;  %v6654_v12 = vadd.f32 %v1519_v54, %v6001_v8  ;;  %3894 = vst [vmem:[%s5147_s29 + $0x3b0] sm:$0xff] %v6640_v39  ;;  %v1825_v60 = vsub.f32 %v1771_v21, %v6596_v20 }
 0x2b6   : > { %v1921_v46 = vmul.f32 %v6432_v18, %v1856_v45  ;;  %v1425_v9 = vsub.f32 %v1393_v3, %v6048_v33  ;;  %v1396_v30 = vadd.f32 %v4305_v23, %v6441_v48  ;;  %v1387_v31 = vpop.f32.mrb[27].mxu0  ;;  %v6662_v59 = vadd.f32 %v1517_v32, %v6021_v44  ;;  %3892 = vst [vmem:[%s5147_s29 + $0x3a0] sm:$0xff] %v6646_v7 }
 0x2b7   : > { %v1919_v28 = vmul.f32 %v6432_v18, %v1854_v61  ;;  %v4332_v42 = vpop.f32.mrb[20].mxu1  ;;  %v1423_v8 = vsub.f32 %v1385_v62, %v6086_v58  ;;  %3895 = vst [vmem:[%s5147_s29 + $0x3b8] sm:$0xff] %v6654_v12  ;;  %v1857_v21 = vsub.f32 %v1825_v60, %v6484_v36  ;;  %v1388_v51 = vadd.f32 %v6441_v48, %v1387_v31 }
 0x2b8   : > { %v6665_v38 = vadd.f32 %v1921_v46, %v6580_v19  ;;  %v1775_v10 = vpop.f32.mrb[21].mxu1  ;;  %v1457_v13 = vsub.f32 %v1425_v9, %v6463_v25  ;;  %v1426_v44 = vsub.f32 %v1396_v30, %v6115_v17  ;;  %v1874_v19 = vmul.f32 %v6432_v18, %v6596_v20  ;;  %3893 = vst [vmem:[%s5147_s29 + $0x3a8] sm:$0xff] %v6662_v59 }
 0x2b9   : > { %v6673_v45 = vadd.f32 %v1919_v28, %v6588_v57  ;;  %v4333_v54 = vpop.f32.mrb[22].mxu1  ;;  %v1455_v3 = vsub.f32 %v1423_v8, %v6471_v41  ;;  %v1763_v25 = vadd.f32 %v6441_v48, %v1762_v15  ;;  %v1872_v41 = vmul.f32 %v6432_v18, %v6605_v37 }
 0x2ba   : > { %v6686_v57 = vpop.f32.mrb[23].mxu1  ;;  %3931 = vst [vmem:[%s5147_s29 + $0x490] sm:$0xff] %v6665_v38  ;;  %v1522_v61 = vmul.f32 %v8686_v27, %v1457_v13  ;;  %v1458_v32 = vsub.f32 %v1426_v44, %v6480_v56  ;;  %v6693_v46 = vadd.f32 %v1874_v19, %v6177_v50  ;;  %v1922_v15 = vmul.f32 %v6432_v18, %v1857_v21 }
 0x2bb   : > { %3929 = vst [vmem:[%s5147_s29 + $0x480] sm:$0xff] %v6673_v45  ;;  %v1520_v36 = vmul.f32 %v8686_v27, %v1455_v3  ;;  %v1424_v62 = vsub.f32 %v1388_v51, %v6125_v11  ;;  %v1823_v23 = vsub.f32 %v1763_v25, %v6605_v37  ;;  %v4308_v9 = vpop.f32.mrb[28].mxu0  ;;  %v6708_v56 = vadd.f32 %v1872_v41, %v6132_v24 }
 0x2bc   : > { %v6704_v28 = vadd.f32 %v1522_v61, %v6048_v33  ;;  %v1523_v50 = vmul.f32 %v8686_v27, %v1458_v32  ;;  %v1409_v30 = vadd.f32 %v4308_v9, %v6441_v48  ;;  %v1400_v31 = vpop.f32.mrb[29].mxu0  ;;  %3916 = vst [vmem:[%s5147_s29 + $0x418] sm:$0xff] %v6693_v46  ;;  %v6717_v60 = vadd.f32 %v1922_v15, %v6596_v20 }
 0x2bd   : > { %v6714_v8 = vadd.f32 %v1520_v36, %v6086_v58  ;;  %v1456_v33 = vsub.f32 %v1424_v62, %v6488_v16  ;;  %v1855_v13 = vsub.f32 %v1823_v23, %v6495_v2  ;;  %v4309_v24 = vpop.f32.mrb[30].mxu0  ;;  %v1784_v3 = vadd.f32 %v4332_v42, %v6441_v48  ;;  %3914 = vst [vmem:[%s5147_s29 + $0x408] sm:$0xff] %v6708_v56 }
 0x2be   : > { %v6722_v44 = vadd.f32 %v1523_v50, %v6115_v17  ;;  %v1429_v19 = vsub.f32 %v1409_v30, %v6134_v63  ;;  %v1877_v58 = vmul.f32 %v6432_v18, %v6640_v39  ;;  %v1403_v20 = vpop.f32.mrb[31].mxu0  ;;  %3898 = vst [vmem:[%s5147_s29 + $0x3d0] sm:$0xff] %v6704_v28  ;;  %v1401_v17 = vadd.f32 %v6441_v48, %v1400_v31  ;;  %v8708_v50 = vld [vmem:[#allocation30_spill] sm:$0xff]  ;;  %v8709_v31 = vld [vmem:[#allocation36_spill] sm:$0xff] }
 0x2bf   : > { %v4336_v21 = vpop.f32.mrb[24].mxu1  ;;  %v1521_v16 = vmul.f32 %v8686_v27, %v1456_v33  ;;  %v1920_v2 = vmul.f32 %v6432_v18, %v1855_v13  ;;  %v1776_v51 = vadd.f32 %v6441_v48, %v1775_v10  ;;  %3896 = vst [vmem:[%s5147_s29 + $0x3c0] sm:$0xff] %v6714_v8  ;;  %3932 = vst [vmem:[%s5147_s29 + $0x498] sm:$0xff] %v6717_v60 }
 0x2c0   : > { %v1791_v42 = vpop.f32.mrb[25].mxu1  ;;  %v1461_v25 = vsub.f32 %v1429_v19, %v6499_v49  ;;  %v1828_v61 = vsub.f32 %v1784_v3, %v6640_v39  ;;  %v6743_v32 = vadd.f32 %v1877_v58, %v6234_v53  ;;  %v1875_v41 = vmul.f32 %v6432_v18, %v6646_v7  ;;  %3899 = vst [vmem:[%s5147_s29 + $0x3d8] sm:$0xff] %v6722_v44  ;;  %v8710_v3 = vld [vmem:[#allocation33_spill] sm:$0xff] }
 0x2c1   : > { %v6749_v10 = vpop.f32.mrb[26].mxu1  ;;  %v6752_v36 = vadd.f32 %v1521_v16, %v6125_v11  ;;  %v6755_v15 = vadd.f32 %v1920_v2, %v6605_v37  ;;  %v1427_v49 = vsub.f32 %v1401_v17, %v6145_v0  ;;  %v1826_v53 = vsub.f32 %v1776_v51, %v6646_v7  ;;  %v8711_v17 = vld [vmem:[#allocation34_spill] sm:$0xff] }
 0x2c2   : > { %v6759_v62 = vpop.f32.mrb[27].mxu1  ;;  %v1526_v23 = vmul.f32 %v8686_v27, %v1461_v25  ;;  %v1860_v9 = vsub.f32 %v1828_v61, %v6503_v22  ;;  %v6764_v30 = vadd.f32 %v1875_v41, %v8708_v50  ;;  %v1412_v11 = vadd.f32 %v4309_v24, %v6441_v48  ;;  %3919 = vst [vmem:[%s5147_s29 + $0x430] sm:$0xff] %v6743_v32  ;;  %v8712_v25 = vld [vmem:[#allocation50_spill] sm:$0xff]  ;;  %v8713_v41 = vld [vmem:[#allocation45_spill] sm:$0xff] }
 0x2c3   : > { %v1459_v37 = vsub.f32 %v1427_v49, %v6510_v6  ;;  %v1858_v33 = vsub.f32 %v1826_v53, %v8709_v31  ;;  %v1787_v13 = vadd.f32 %v4333_v54, %v6441_v48  ;;  %v1878_v19 = vmul.f32 %v6432_v18, %v6654_v12  ;;  %3897 = vst [vmem:[%s5147_s29 + $0x3c8] sm:$0xff] %v6752_v36 }
 0x2c4   : > { %3930 = vst [vmem:[%s5147_s29 + $0x488] sm:$0xff] %v6755_v15  ;;  %v6779_v22 = vadd.f32 %v1526_v23, %v6134_v63  ;;  %v1925_v24 = vmul.f32 %v6432_v18, %v1860_v9  ;;  %v1430_v58 = vsub.f32 %v1412_v11, %v8710_v3  ;;  %v1404_v6 = vadd.f32 %v6441_v48, %v1403_v20 }
 0x2c5   : > { %3917 = vst [vmem:[%s5147_s29 + $0x420] sm:$0xff] %v6764_v30  ;;  %v1524_v54 = vmul.f32 %v8686_v27, %v1459_v37  ;;  %v1923_v16 = vmul.f32 %v6432_v18, %v1858_v33  ;;  %v1829_v2 = vsub.f32 %v1787_v13, %v6654_v12  ;;  %v6790_v51 = vadd.f32 %v1878_v19, %v8711_v17  ;;  %v8714_v33 = vld [vmem:[#allocation31_spill] sm:$0xff] }
 0x2c6   : > { %v6793_v63 = vadd.f32 %v1925_v24, %v6640_v39  ;;  %v1462_v61 = vsub.f32 %v1430_v58, %v8712_v25  ;;  %v1428_v20 = vsub.f32 %v1404_v6, %v8713_v41  ;;  %v1779_v49 = vadd.f32 %v6441_v48, %v6686_v57  ;;  %3902 = vst [vmem:[%s5147_s29 + $0x3f0] sm:$0xff] %v6779_v22 }
 0x2c7   : > { %v6801_v53 = vpop.f32.mrb[28].mxu1  ;;  %v6804_v23 = vadd.f32 %v1524_v54, %v6145_v0  ;;  %v6807_v9 = vadd.f32 %v1923_v16, %v6646_v7  ;;  %v1861_v39 = vsub.f32 %v1829_v2, %v6528_v5  ;;  %v1876_v50 = vmul.f32 %v6432_v18, %v6662_v59  ;;  %3920 = vst [vmem:[%s5147_s29 + $0x438] sm:$0xff] %v6790_v51  ;;  %v8715_v16 = vld [vmem:[#allocation47_spill] sm:$0xff] }
 0x2c8   : > { %v6812_v11 = vpop.f32.mrb[29].mxu1  ;;  %v1527_v57 = vmul.f32 %v8686_v27, %v1462_v61  ;;  %v1460_v37 = vsub.f32 %v1428_v20, %v6532_v34  ;;  %v1827_v0 = vsub.f32 %v1779_v49, %v6662_v59  ;;  %v1800_v31 = vadd.f32 %v4336_v21, %v6441_v48  ;;  %3935 = vst [vmem:[%s5147_s29 + $0x4b0] sm:$0xff] %v6793_v63  ;;  %v8716_v20 = vld [vmem:[#allocation32_spill] sm:$0xff] }
 0x2c9   : > { %v6820_v7 = vpop.f32.mrb[30].mxu1  ;;  %v1926_v5 = vmul.f32 %v6432_v18, %v1861_v39  ;;  %v6826_v13 = vadd.f32 %v1876_v50, %v8714_v33  ;;  %v1881_v19 = vmul.f32 %v6432_v18, %v6704_v28  ;;  %v1792_v24 = vadd.f32 %v6441_v48, %v1791_v42  ;;  %3900 = vst [vmem:[%s5147_s29 + $0x3e0] sm:$0xff] %v6804_v23  ;;  %v8718_v33 = vld [vmem:[#allocation46_spill] sm:$0xff] }
 0x2ca   : > { %v6833_v34 = vpop.f32.mrb[31].mxu1  ;;  %3933 = vst [vmem:[%s5147_s29 + $0x4a0] sm:$0xff] %v6807_v9  ;;  %v6838_v21 = vadd.f32 %v1527_v57, %v8710_v3  ;;  %v1525_v58 = vmul.f32 %v8686_v27, %v1460_v37  ;;  %v1859_v6 = vsub.f32 %v1827_v0, %v6538_v26  ;;  %v1832_v54 = vsub.f32 %v1800_v31, %v6704_v28  ;;  %v8717_v57 = vld [vmem:[#allocation37_spill] sm:$0xff] }
 0x2cb   : > { %v6844_v42 = vadd.f32 %v1926_v5, %v6654_v12  ;;  %v6847_v2 = vadd.f32 %v1881_v19, %v8715_v16  ;;  %v1830_v17 = vsub.f32 %v1792_v24, %v6714_v8  ;;  %v1879_v3 = vmul.f32 %v6432_v18, %v6714_v8  ;;  %3918 = vst [vmem:[%s5147_s29 + $0x428] sm:$0xff] %v6826_v13 }
 0x2cc   : > { %v6855_v27 = vadd.f32 %v1525_v58, %v8713_v41  ;;  %v1924_v26 = vmul.f32 %v6432_v18, %v1859_v6  ;;  %v1864_v25 = vsub.f32 %v1832_v54, %v6542_v52  ;;  %v1803_v12 = vadd.f32 %v6749_v10, %v6441_v48  ;;  %3903 = vst [vmem:[%s5147_s29 + $0x3f8] sm:$0xff] %v6838_v21 }
 0x2cd   : > { %v1862_v61 = vsub.f32 %v1830_v17, %v6547_v55  ;;  %v6865_v49 = vadd.f32 %v1879_v3, %v8716_v20  ;;  %v1882_v39 = vmul.f32 %v6432_v18, %v6722_v44  ;;  %v1795_v41 = vadd.f32 %v6441_v48, %v6759_v62  ;;  %3936 = vst [vmem:[%s5147_s29 + $0x4b8] sm:$0xff] %v6844_v42 }
 0x2ce   : > { %3923 = vst [vmem:[%s5147_s29 + $0x450] sm:$0xff] %v6847_v2  ;;  %v6876_v52 = vadd.f32 %v1924_v26, %v6662_v59  ;;  %v1929_v10 = vmul.f32 %v6432_v18, %v1864_v25  ;;  %v1833_v55 = vsub.f32 %v1803_v12, %v6722_v44  ;;  %v1880_v50 = vmul.f32 %v6432_v18, %v6752_v36 }
 0x2cf   : > { %3901 = vst [vmem:[%s5147_s29 + $0x3e8] sm:$0xff] %v6855_v27  ;;  %v1927_v62 = vmul.f32 %v6432_v18, %v1862_v61  ;;  %v6886_v37 = vadd.f32 %v1882_v39, %v8717_v57  ;;  %v1831_v0 = vsub.f32 %v1795_v41, %v6752_v36  ;;  %v6891_v59 = vmul.f32 %v6573_v43, %v6637_v40  ;;  %v8720_v57 = vld [vmem:[#allocation48_spill] sm:$0xff] }
 0x2d0   : > { %3921 = vst [vmem:[%s5147_s29 + $0x440] sm:$0xff] %v6865_v49  ;;  %v6896_v31 = vadd.f32 %v1929_v10, %v6704_v28  ;;  %v1865_v5 = vsub.f32 %v1833_v55, %v6551_v47  ;;  %v6900_v19 = vadd.f32 %v1880_v50, %v8718_v33  ;;  %v6904_v24 = vmul.f32 %v6573_v43, %v6708_v56 }
 0x2d1   : > { %3934 = vst [vmem:[%s5147_s29 + $0x4a8] sm:$0xff] %v6876_v52  ;;  %v6909_v58 = vadd.f32 %v1927_v62, %v6714_v8  ;;  %v1863_v6 = vsub.f32 %v1831_v0, %v6556_v1  ;;  %v2278_v28 = vmul.f32 %v6585_v4, %v6673_v45  ;;  %v2279_v47 = vmul.f32 %v6585_v4, %v6755_v15 }
 0x2d2   : > { %3924 = vst [vmem:[%s5147_s29 + $0x458] sm:$0xff] %v6886_v37  ;;  %v1930_v54 = vmul.f32 %v6432_v18, %v1865_v5  ;;  %v2053_v16 = vpack.c.bf16 %v6904_v24, %v6891_v59  ;;  %v6923_v17 = vmul.f32 %v6573_v43, %v6615_v35  ;;  %v6927_v1 = vmul.f32 %v6573_v43, %v6693_v46 }
 0x2d3   : > { %3922 = vst [vmem:[%s5147_s29 + $0x448] sm:$0xff] %v6900_v19  ;;  %3939 = vst [vmem:[%s5147_s29 + $0x4d0] sm:$0xff] %v6896_v31  ;;  %v1928_v8 = vmul.f32 %v6432_v18, %v1863_v6  ;;  %v6935_v3 = vadd.f32 %v2278_v28, %v6637_v40  ;;  %v6938_v26 = vadd.f32 %v2279_v47, %v6708_v56 }
 0x2d4   : > { %v2280_v25 = vmul.f32 %v6585_v4, %v6665_v38  ;;  %3937 = vst [vmem:[%s5147_s29 + $0x4c0] sm:$0xff] %v6909_v58  ;;  %v6945_v12 = vadd.f32 %v1930_v54, %v6722_v44  ;;  %4358 = vmatprep.mubr.bf16.mxu0 %v2053_v16  ;;  %v2054_v61 = vpack.c.bf16 %v6927_v1, %v6923_v17  ;;  %v8722_v54 = vld [vmem:[#allocation41_spill] sm:$0xff] }
 0x2d5   : > { %v2281_v40 = vmul.f32 %v6585_v4, %v6717_v60  ;;  %v1816_v56 = vadd.f32 %v6801_v53, %v6441_v48  ;;  %v6954_v20 = vadd.f32 %v1928_v8, %v6752_v36  ;;  %v1885_v44 = vmul.f32 %v6432_v18, %v6779_v22  ;;  %3954 = vst [vmem:[%s5147_s29 + $0x500] sm:$0xff] %v6935_v3  ;;  %v8723_v8 = vld [vmem:[#allocation35_spill] sm:$0xff] }
 0x2d6   : > { %v6957_v39 = vadd.f32 %v2280_v25, %v6615_v35  ;;  %v1808_v41 = vadd.f32 %v6441_v48, %v6812_v11  ;;  %3955 = vst [vmem:[%s5147_s29 + $0x508] sm:$0xff] %v6938_v26  ;;  %4359 = vmatmul.mubr.bf16.vlgmr.msra.gmra.mrb[32].mxu0 %v2054_v61  ;;  %v1883_v35 = vmul.f32 %v6432_v18, %v6804_v23  ;;  %3940 = vst [vmem:[%s5147_s29 + $0x4d8] sm:$0xff] %v6945_v12  ;;  %v8719_v11 = vld [vmem:[#allocation49_spill] sm:$0xff] }
 0x2d7   : > { %v6968_v36 = vadd.f32 %v2281_v40, %v6693_v46  ;;  %v1836_v53 = vsub.f32 %v1816_v56, %v6779_v22  ;;  %v1819_v10 = vadd.f32 %v6820_v7, %v6441_v48  ;;  %v6978_v55 = vadd.f32 %v1885_v44, %v8719_v11  ;;  %3938 = vst [vmem:[%s5147_s29 + $0x4c8] sm:$0xff] %v6954_v20  ;;  %v8724_v40 = vld [vmem:[#allocation44_spill] sm:$0xff] }
 0x2d8   : > { %v1834_v50 = vsub.f32 %v1808_v41, %v6804_v23  ;;  %v1886_v46 = vmul.f32 %v6432_v18, %v6838_v21  ;;  %v1811_v62 = vadd.f32 %v6441_v48, %v6833_v34  ;;  %3956 = vst [vmem:[%s5147_s29 + $0x510] sm:$0xff] %v6957_v39  ;;  %v6991_v0 = vadd.f32 %v1883_v35, %v8720_v57  ;;  %v8721_v34 = vld [vmem:[#allocation38_spill] sm:$0xff] }
 0x2d9   : > { %v1868_v7 = vsub.f32 %v1836_v53, %v6560_v29  ;;  %v1837_v5 = vsub.f32 %v1819_v10, %v6838_v21  ;;  %v1884_v33 = vmul.f32 %v6432_v18, %v6855_v27  ;;  %3957 = vst [vmem:[%s5147_s29 + $0x518] sm:$0xff] %v6968_v36  ;;  %v7005_v29 = vmul.f32 %v6573_v43, %v6764_v30 }
 0x2da   : > { %v1866_v48 = vsub.f32 %v1834_v50, %v6565_v14  ;;  %v7000_v6 = vadd.f32 %v1886_v46, %v8721_v34  ;;  %v1835_v28 = vsub.f32 %v1811_v62, %v6855_v27  ;;  %3927 = vst [vmem:[%s5147_s29 + $0x470] sm:$0xff] %v6978_v55  ;;  %v7016_v14 = vmul.f32 %v6573_v43, %v6826_v13 }
 0x2db   : > { %v1933_v47 = vmul.f32 %v6432_v18, %v1868_v7  ;;  %v1869_v16 = vsub.f32 %v1837_v5, %v8722_v54  ;;  %v7012_v25 = vadd.f32 %v1884_v33, %v8723_v8  ;;  %3925 = vst [vmem:[%s5147_s29 + $0x460] sm:$0xff] %v6991_v0  ;;  %v2282_v44 = vmul.f32 %v6585_v4, %v6807_v9  ;;  %v8733_v54 = vld [vmem:[#allocation39_spill] sm:$0xff] }
 0x2dc   : > { %v1931_v61 = vmul.f32 %v6432_v18, %v1866_v48  ;;  %v1867_v56 = vsub.f32 %v1835_v28, %v8724_v40  ;;  %v2283_v41 = vmul.f32 %v6585_v4, %v6876_v52  ;;  %3928 = vst [vmem:[%s5147_s29 + $0x478] sm:$0xff] %v7000_v6  ;;  %v2055_v10 = vpack.c.bf16 %v7016_v14, %v7005_v29 }
 0x2dd   : > { %v7029_v53 = vadd.f32 %v1933_v47, %v6779_v22  ;;  %v1934_v35 = vmul.f32 %v6432_v18, %v1869_v16  ;;  %v7036_v11 = vmul.f32 %v6573_v43, %v6743_v32  ;;  %3926 = vst [vmem:[%s5147_s29 + $0x468] sm:$0xff] %v7012_v25  ;;  %v7045_v46 = vadd.f32 %v2282_v44, %v6764_v30 }
 0x2de   : > { %v7041_v50 = vadd.f32 %v1931_v61, %v6804_v23  ;;  %v1932_v22 = vmul.f32 %v6432_v18, %v1867_v56  ;;  %v7048_v62 = vadd.f32 %v2283_v41, %v6826_v13  ;;  %4362 = vmatprep.mubr.bf16.mxu0 %v2055_v10  ;;  %v7055_v57 = vmul.f32 %v6573_v43, %v6790_v51 }
 0x2df   : > { %8726 = vst [vmem:[#allocation51_spill] sm:$0xff] %v7045_v46  ;;  %v7051_v7 = vadd.f32 %v1934_v35, %v6838_v21  ;;  %v2284_v23 = vmul.f32 %v6585_v4, %v6793_v63  ;;  %v2285_v18 = vmul.f32 %v6585_v4, %v6844_v42  ;;  %3943 = vst [vmem:[%s5147_s29 + $0x4f0] sm:$0xff] %v7029_v53 }
 0x2e0   : > { %8725 = vst [vmem:[#allocation52_spill] sm:$0xff] %v7041_v50  ;;  %8727 = vst [vmem:[#allocation42_spill] sm:$0xff] %v7048_v62  ;;  %v7064_v30 = vadd.f32 %v1932_v22, %v6855_v27  ;;  %v7068_v13 = vmul.f32 %v6573_v43, %v6865_v49  ;;  %v7072_v21 = vmul.f32 %v6573_v43, %v6900_v19 }
 0x2e1   : > { %8728 = vst [vmem:[#allocation40_spill] sm:$0xff] %v7051_v7  ;;  %v2286_v5 = vmul.f32 %v6585_v4, %v6909_v58  ;;  %3941 = vst [vmem:[%s5147_s29 + $0x4e0] sm:$0xff] %v7041_v50  ;;  %v2056_v27 = vpack.c.bf16 %v7055_v57, %v7036_v11  ;;  %v7085_v33 = vadd.f32 %v2284_v23, %v6743_v32 }
 0x2e2   : > { %8729 = vst [vmem:[#allocation30_spill] sm:$0xff] %v7064_v30  ;;  %3958 = vst [vmem:[%s5147_s29 + $0x520] sm:$0xff] %v7045_v46  ;;  %v7088_v48 = vadd.f32 %v2285_v18, %v6790_v51  ;;  %v2287_v34 = vmul.f32 %v6585_v4, %v6954_v20  ;;  %v2057_v28 = vpack.c.bf16 %v7072_v21, %v7068_v13 }
 0x2e3   : > { %3959 = vst [vmem:[%s5147_s29 + $0x528] sm:$0xff] %v7048_v62  ;;  %8730 = vst [vmem:[#allocation36_spill] sm:$0xff] %v7085_v33  ;;  %v7097_v47 = vadd.f32 %v2286_v5, %v6865_v49  ;;  %v7101_v16 = vmul.f32 %v8733_v54, %v6935_v3  ;;  %v7105_v32 = vmul.f32 %v8733_v54, %v6938_v26  ;;  %4363 = vmatmul.mubr.bf16.gmra.mrb[36].mxu0 %v2056_v27 }
 0x2e4   : > { %8731 = vst [vmem:[#allocation33_spill] sm:$0xff] %v7088_v48  ;;  %3944 = vst [vmem:[%s5147_s29 + $0x4f8] sm:$0xff] %v7051_v7  ;;  %v7110_v51 = vadd.f32 %v2287_v34, %v6900_v19  ;;  %v7114_v49 = vmul.f32 %v6573_v43, %v6847_v2  ;;  %v7118_v8 = vmul.f32 %v6573_v43, %v6886_v37  ;;  %4366 = vmatprep.mubr.bf16.mxu0 %v2057_v28 }
 0x2e5   : > { %8732 = vst [vmem:[#allocation34_spill] sm:$0xff] %v7097_v47  ;;  %3942 = vst [vmem:[%s5147_s29 + $0x4e8] sm:$0xff] %v7064_v30  ;;  %v2288_v61 = vmul.f32 %v6585_v4, %v6896_v31  ;;  %v2460_v19 = vpack.c.bf16 %v7105_v32, %v7101_v16  ;;  %v2289_v40 = vmul.f32 %v6585_v4, %v6945_v12 }
 0x2e6   : > { %8734 = vst [vmem:[#allocation50_spill] sm:$0xff] %v7110_v51  ;;  %3960 = vst [vmem:[%s5147_s29 + $0x530] sm:$0xff] %v7085_v33  ;;  %v7132_v56 = vmul.f32 %v8733_v54, %v6957_v39  ;;  %v7136_v44 = vmul.f32 %v8733_v54, %v6968_v36  ;;  %v2058_v41 = vpack.c.bf16 %v7118_v8, %v7114_v49 }
 0x2e7   : > { %3961 = vst [vmem:[%s5147_s29 + $0x538] sm:$0xff] %v7088_v48  ;;  %3962 = vst [vmem:[%s5147_s29 + $0x540] sm:$0xff] %v7097_v47  ;;  %v7143_v35 = vadd.f32 %v2288_v61, %v6847_v2  ;;  %v7147_v10 = vmul.f32 %v6573_v43, %v6991_v0  ;;  %v7151_v22 = vmul.f32 %v6573_v43, %v7012_v25  ;;  %4390 = vmatprep.mubr.bf16.mxu1 %v2460_v19 }
 0x2e8   : > { %3963 = vst [vmem:[%s5147_s29 + $0x548] sm:$0xff] %v7110_v51  ;;  %v7156_v23 = vadd.f32 %v2289_v40, %v6886_v37  ;;  %v2461_v18 = vpack.c.bf16 %v7136_v44, %v7132_v56  ;;  %v2290_v2 = vmul.f32 %v6585_v4, %v7041_v50  ;;  %v2291_v5 = vmul.f32 %v6585_v4, %v7064_v30 }
 0x2e9   : > { %8735 = vst [vmem:[#allocation45_spill] sm:$0xff] %v7143_v35  ;;  %v2059_v27 = vpack.c.bf16 %v7151_v22, %v7147_v10  ;;  %v7168_v34 = vmul.f32 %v8733_v54, %v7045_v46  ;;  %v7172_v37 = vmul.f32 %v8733_v54, %v7048_v62  ;;  %v7176_v28 = vmul.f32 %v6573_v43, %v6978_v55 }
 0x2ea   : > { %8736 = vst [vmem:[#allocation31_spill] sm:$0xff] %v7156_v23  ;;  %3964 = vst [vmem:[%s5147_s29 + $0x550] sm:$0xff] %v7143_v35  ;;  %4391 = vmatmul.mubr.bf16.vlgmr.msra.gmra.mrb[32].mxu1 %v2461_v18  ;;  %v7181_v61 = vadd.f32 %v2290_v2, %v6991_v0  ;;  %v7184_v19 = vadd.f32 %v2291_v5, %v7012_v25  ;;  %v7188_v40 = vmul.f32 %v6573_v43, %v7000_v6 }
 0x2eb   : > { %v2292_v62 = vmul.f32 %v6585_v4, %v7029_v53  ;;  %3965 = vst [vmem:[%s5147_s29 + $0x558] sm:$0xff] %v7156_v23  ;;  %v2462_v30 = vpack.c.bf16 %v7172_v37, %v7168_v34  ;;  %v2293_v0 = vmul.f32 %v6585_v4, %v7051_v7  ;;  %v7205_v43 = vmul.f32 %v8733_v54, %v7088_v48 }
 0x2ec   : > { %8737 = vst [vmem:[#allocation47_spill] sm:$0xff] %v7181_v61  ;;  %8738 = vst [vmem:[#allocation32_spill] sm:$0xff] %v7184_v19  ;;  %v2060_v25 = vpack.c.bf16 %v7188_v40, %v7176_v28  ;;  %v7209_v2 = vmul.f32 %v8733_v54, %v7110_v51  ;;  %4367 = vmatmul.mubr.bf16.gmra.mrb[40].mxu0 %v2058_v41  ;;  %v7240_v41 = vmul.f32 %v8733_v54, %v7156_v23  ;;  %v4666_v23 = vld [vmem:[#allocation10] sm:$0xff]  }
 0x2ed   : > { %v7201_v18 = vadd.f32 %v2292_v62, %v6978_v55  ;;  %3966 = vst [vmem:[%s5147_s29 + $0x560] sm:$0xff] %v7181_v61  ;;  %3967 = vst [vmem:[%s5147_s29 + $0x568] sm:$0xff] %v7184_v19  ;;  %4394 = vmatprep.mubr.bf16.mxu1 %v2462_v30  ;;  %v7216_v5 = vadd.f32 %v2293_v0, %v7000_v6  ;;  %v7220_v55 = vmul.f32 %v8733_v54, %v7097_v47  ;;  %v4667_v47 = vld [vmem:[#allocation10 + $0x8] sm:$0xff]  }
 0x2ee   : > { %4370 = vmatprep.mubr.bf16.mxu0 %v2059_v27  ;;  %v7224_v62 = vmul.f32 %v8733_v54, %v7085_v33  ;;  %v7236_v30 = vmul.f32 %v8733_v54, %v7184_v19  ;;  %v7244_v27 = vmul.f32 %v8733_v54, %v7181_v61  ;;  %v7248_v0 = vmul.f32 %v8733_v54, %v7143_v35  ;;  %v4673_v35 = vld [vmem:[#allocation10 + $0x8] sm:$0xff]  }
 0x2ef   : > { %8739 = vst [vmem:[#allocation37_spill] sm:$0xff] %v7201_v18  ;;  %8740 = vst [vmem:[#allocation46_spill] sm:$0xff] %v7216_v5  ;;  %v2464_v51 = vpack.c.bf16 %v7209_v2, %v7220_v55  ;;  %v7256_v19 = vmul.f32 %v8733_v54, %v7216_v5  ;;  %4406 = vmatprep.subr.bf16.mxu0 %v4666_v23 }
 0x2f0   : > { %3968 = vst [vmem:[%s5147_s29 + $0x570] sm:$0xff] %v7201_v18  ;;  %3969 = vst [vmem:[%s5147_s29 + $0x578] sm:$0xff] %v7216_v5  ;;  %v2463_v6 = vpack.c.bf16 %v7205_v43, %v7224_v62  ;;  %4407 = vmatpush3.bf16.msra.mxu0 %v4666_v23  ;;  %v4669_v5 = vld [vmem:[#allocation10 + $0x18] sm:$0xff]   ;;  %v4672_v23 = vld [vmem:[#allocation10 + $0x28] sm:$0xff]  }
 0x2f1   : > { %4408 = vmatprep.subr.bf16.mxu0 %v4667_v47 }
 0x2f2   : > { %4395 = vmatmul.mubr.bf16.gmra.mrb[36].mxu1 %v2463_v6  ;;  %v2465_v6 = vpack.c.bf16 %v7240_v41, %v7248_v0 }
 0x2f3   : > { %4398 = vmatprep.mubr.bf16.mxu1 %v2464_v51  ;;  %v2466_v51 = vpack.c.bf16 %v7236_v30, %v7244_v27 }
 0x2f4   : > { %4371 = vmatmul.mubr.bf16.gmra.mrb[44].mxu0 %v2060_v25  ;;  %v7260_v25 = vmul.f32 %v8733_v54, %v7201_v18  ;;  %v4670_v54 = vld [vmem:[#allocation10 + $0x20] sm:$0xff]  }
 0x2f5   : > { %4409 = vmatpush3.bf16.msra.mxu0 %v4667_v47  ;;  %v4677_v47 = vld [vmem:[#allocation10 + $0x18] sm:$0xff]  }
 0x2f6   : > { %v2467_v61 = vpack.c.bf16 %v7256_v19, %v7260_v25 }
 0x2fa   : > { %4399 = vmatmul.mubr.bf16.gmra.mrb[40].mxu1 %v2465_v6  ;;  %v4668_v6 = vld [vmem:[#allocation10 + $0x10] sm:$0xff]  }
 0x2fb   : > { %4402 = vmatprep.mubr.bf16.mxu1 %v2466_v51  ;;  %v4671_v51 = vld [vmem:[#allocation10] sm:$0xff]   ;;  %4410 = vmatprep.subr.bf16.mxu0 %v4668_v6 }
 0x2fc   : > { %4438 = vmatprep.subr.bf16.mxu1 %v4671_v51  ;;  %4411 = vmatpush3.bf16.msra.mxu0 %v4668_v6  ;;  %v4674_v6 = vld [vmem:[#allocation10 + $0x30] sm:$0xff]  }
 0x2fd   : > { %4439 = vmatpush3.bf16.msra.mxu1 %v4671_v51  ;;  %4412 = vmatprep.subr.bf16.mxu0 %v4669_v5  ;;  %v4678_v51 = vld [vmem:[#allocation10 + $0x20] sm:$0xff]  }
 0x2fe   : > { %4440 = vmatprep.subr.bf16.mxu1 %v4673_v35 }
 0x300   : > { %4413 = vmatpush3.bf16.msra.mxu0 %v4669_v5  ;;  %v4679_v5 = vld [vmem:[#allocation10 + $0x28] sm:$0xff]  }
 0x301   : > { %4441 = vmatpush3.bf16.msra.mxu1 %v4673_v35  ;;  %4414 = vmatprep.subr.bf16.mxu0 %v4670_v54  ;;  %v4676_v35 = vld [vmem:[#allocation10 + $0x38] sm:$0xff]  }
 0x302   : > { %4403 = vmatmul.mubr.bf16.gmra.mrb[44].mxu1 %v2467_v61  ;;  %v4675_v61 = vld [vmem:[#allocation10 + $0x10] sm:$0xff]  }
 0x303   : > { %4442 = vmatprep.subr.bf16.mxu1 %v4675_v61 }
 0x304   : > { %4415 = vmatpush3.bf16.msra.mxu0 %v4670_v54  ;;  %v4680_v54 = vld [vmem:[#allocation10 + $0x30] sm:$0xff]  }
 0x305   : > { %4443 = vmatpush3.bf16.msra.mxu1 %v4675_v61  ;;  %4416 = vmatprep.subr.bf16.mxu0 %v4672_v23  ;;  %v4681_v61 = vld [vmem:[#allocation10 + $0x38] sm:$0xff]  }
 0x306   : > { %4444 = vmatprep.subr.bf16.mxu1 %v4677_v47 }
 0x308   : > { %4417 = vmatpush3.bf16.msra.mxu0 %v4672_v23  ;;  %v7266_v23 = vld [vmem:[#allocation12] ss:$0 sm:$0xff] }
 0x309   : > { %4445 = vmatpush3.bf16.msra.mxu1 %v4677_v47  ;;  %4418 = vmatprep.subr.bf16.mxu0 %v4674_v6  ;;  %v7268_v47 = vstv %s2441_s27 }
 0x30a   : > { %4446 = vmatprep.subr.bf16.mxu1 %v4678_v51 }
 0x30c   : > { %4419 = vmatpush3.bf16.msra.mxu0 %v4674_v6  ;;  %v8741_v6 = vld [vmem:[#allocation43_spill] sm:$0xff] }
 0x30d   : > { %4447 = vmatpush3.bf16.msra.mxu1 %v4678_v51  ;;  %4420 = vmatprep.subr.bf16.mxu0 %v4676_v35  ;;  %v2247_v51 = vmul.f32 %v6923_v17, %v8741_v6  ;;  %v7280_v18 = vmul.f32 %v7036_v11, %v8741_v6  ;;  %v7284_v48 = vmul.f32 %v7005_v29, %v8741_v6 }
 0x30e   : > { %4448 = vmatprep.subr.bf16.mxu1 %v4679_v5 }
 0x310   : > { %4421 = vmatpush3.bf16.msra.mxu0 %v4676_v35  ;;  %v2245_v35 = vmul.f32 %v6891_v59, %v8741_v6  ;;  %v7289_v59 = vmul.f32 %v7055_v57, %v8741_v6  ;;  %v7306_v57 = vmul.f32 %v7068_v13, %v8741_v6 }
 0x311   : > { %4449 = vmatpush3.bf16.msra.mxu1 %v4679_v5 }
 0x312   : > { %4450 = vmatprep.subr.bf16.mxu1 %v4680_v54 }
 0x315   : > { %4451 = vmatpush3.bf16.msra.mxu1 %v4680_v54  ;;  %v2248_v54 = vmul.f32 %v6927_v1, %v8741_v6  ;;  %v7293_v1 = vmul.f32 %v7016_v14, %v8741_v6  ;;  %v7310_v14 = vmul.f32 %v7101_v16, %v8741_v6  ;;  %v7327_v16 = vmul.f32 %v7072_v21, %v8741_v6 }
 0x316   : > { %4452 = vmatprep.subr.bf16.mxu1 %v4681_v61 }
 0x319   : > { %4453 = vmatpush3.bf16.msra.mxu1 %v4681_v61  ;;  %v2246_v61 = vmul.f32 %v6904_v24, %v8741_v6  ;;  %v7297_v24 = vmul.f32 %v7114_v49, %v8741_v6 }
 0x3a9   : > { %v4360_v5 = vpop.f32.mrb[32].mxu0 }
 0x3aa   : > { %v2175_v17 = vadd.f32 %v4360_v5, %v7266_v23  ;;  %v2166_v7 = vpop.f32.mrb[33].mxu0  ;;  %v7302_v5 = vmul.f32 %v7132_v56, %v8741_v6  ;;  %v7321_v56 = vmul.f32 %v7136_v44, %v8741_v6  ;;  %v7337_v44 = vmul.f32 %v7176_v28, %v8741_v6 }
 0x3ab   : > { %v2167_v11 = vadd.f32 %v7266_v23, %v2166_v7  ;;  %v4361_v29 = vpop.f32.mrb[34].mxu0  ;;  %v7317_v7 = vmul.f32 %v7118_v8, %v8741_v6 }
 0x3ac   : > { %v2231_v49 = vsub.f32 %v2175_v17, %v6665_v38  ;;  %v2178_v46 = vadd.f32 %v4361_v29, %v7266_v23  ;;  %v2169_v50 = vpop.f32.mrb[35].mxu0  ;;  %v7331_v17 = vmul.f32 %v7105_v32, %v8741_v6  ;;  %v7348_v32 = vmul.f32 %v7147_v10, %v8741_v6 }
 0x3ad   : > { %v2229_v13 = vsub.f32 %v2167_v11, %v6673_v45  ;;  %v2170_v33 = vadd.f32 %v7266_v23, %v2169_v50  ;;  %v7341_v50 = vmul.f32 %v7224_v62, %v8741_v6  ;;  %v7359_v62 = vmul.f32 %v7188_v40, %v8741_v6 }
 0x3ae   : > { %v2263_v8 = vsub.f32 %v2231_v49, %v2247_v51  ;;  %v2232_v29 = vsub.f32 %v2178_v46, %v6717_v60  ;;  %v7352_v46 = vmul.f32 %v7168_v34, %v8741_v6  ;;  %v7384_v49 = vmul.f32 %v7248_v0, %v8741_v6 }
 0x3af   : > { %v2261_v21 = vsub.f32 %v2229_v13, %v2245_v35  ;;  %v2230_v11 = vsub.f32 %v2170_v33, %v6755_v15  ;;  %v7363_v33 = vmul.f32 %v7205_v43, %v8741_v6  ;;  %v7372_v35 = vmul.f32 %v7151_v22, %v8741_v6 }
 0x3b0   : > { %v2328_v28 = vmul.f32 %v6585_v4, %v2263_v8  ;;  %v2264_v51 = vsub.f32 %v2232_v29, %v2248_v54  ;;  %v7376_v54 = vmul.f32 %v7172_v37, %v8741_v6  ;;  %v7396_v13 = vmul.f32 %v7240_v41, %v8741_v6 }
 0x3b1   : > { %v2326_v10 = vmul.f32 %v6585_v4, %v2261_v21  ;;  %v2262_v34 = vsub.f32 %v2230_v11, %v2246_v61  ;;  %v7388_v61 = vmul.f32 %v7220_v55, %v8741_v6  ;;  %v7411_v55 = vmul.f32 %v7260_v25, %v8741_v6 }
 0x3b2   : > { %v7379_v40 = vadd.f32 %v2328_v28, %v6665_v38  ;;  %v2329_v43 = vmul.f32 %v6585_v4, %v2264_v51  ;;  %v7400_v38 = vmul.f32 %v7209_v2, %v8741_v6  ;;  %v7415_v41 = vmul.f32 %v7244_v27, %v8741_v6 }
 0x3b3   : > { %v7391_v22 = vadd.f32 %v2326_v10, %v6673_v45  ;;  %v2327_v37 = vmul.f32 %v6585_v4, %v2262_v34  ;;  %8742 = vst [vmem:[#allocation49_spill] sm:$0xff] %v7411_v55  ;;  %v7426_v29 = vmul.f32 %v7256_v19, %v8741_v6  ;;  %v7430_v25 = vmul.f32 %v7236_v30, %v8741_v6 }
 0x3b4   : > { %v7403_v0 = vadd.f32 %v2329_v43, %v6717_v60  ;;  %3972 = vst [vmem:[%s5147_s29 + $0x590] sm:$0xff] %v7379_v40  ;;  %v2687_v45 = vmul.f32 %v7268_v47, %v7379_v40  ;;  %8743 = vst [vmem:[#allocation48_spill] sm:$0xff] %v7415_v41  ;;  %v7441_v28 = vstv %s7343_s13  ;;  %v7452_v10 = vstv %s7354_s24 }
 0x3b5   : > { %v7418_v2 = vadd.f32 %v2327_v37, %v6755_v15  ;;  %3970 = vst [vmem:[%s5147_s29 + $0x580] sm:$0xff] %v7391_v22  ;;  %v2685_v8 = vmul.f32 %v7268_v47, %v7391_v22  ;;  %8744 = vst [vmem:[#allocation38_spill] sm:$0xff] %v7426_v29 }
 0x3b6   : > { %v4364_v60 = vpop.f32.mrb[36].mxu0  ;;  %8745 = vst [vmem:[#allocation41_spill] sm:$0xff] %v7430_v25  ;;  %v7434_v21 = vadd.f32 %v2687_v45, %v6957_v39  ;;  %3973 = vst [vmem:[%s5147_s29 + $0x598] sm:$0xff] %v7403_v0  ;;  %v2688_v11 = vmul.f32 %v7268_v47, %v7403_v0 }
 0x3b7   : > { %v2191_v27 = vadd.f32 %v4364_v60, %v7266_v23  ;;  %v2182_v15 = vpop.f32.mrb[37].mxu0  ;;  %8746 = vst [vmem:[#allocation35_spill] sm:$0xff] %v7441_v28  ;;  %v7445_v51 = vadd.f32 %v2685_v8, %v6935_v3  ;;  %3971 = vst [vmem:[%s5147_s29 + $0x588] sm:$0xff] %v7418_v2  ;;  %v2686_v39 = vmul.f32 %v7268_v47, %v7418_v2  ;;  %v7462_v3 = vstv %s7367_s7 }
 0x3b8   : > { %v2183_v19 = vadd.f32 %v7266_v23, %v2182_v15  ;;  %v4365_v30 = vpop.f32.mrb[38].mxu0  ;;  %v7457_v45 = vadd.f32 %v2688_v11, %v6968_v36  ;;  %3997 = vst [vmem:[%s5147_s29 + $0x610] sm:$0xff] %v7434_v21  ;;  %8747 = vst [vmem:[#allocation44_spill] sm:$0xff] %v7462_v3 }
 0x3b9   : > { %v2235_v34 = vsub.f32 %v2191_v27, %v6793_v63  ;;  %v2194_v43 = vadd.f32 %v4365_v30, %v7266_v23  ;;  %v2185_v37 = vpop.f32.mrb[39].mxu0  ;;  %v7467_v15 = vadd.f32 %v2686_v39, %v6938_v26  ;;  %3995 = vst [vmem:[%s5147_s29 + $0x600] sm:$0xff] %v7445_v51  ;;  %v7473_v27 = vmul.f32 %v7441_v28, %v7434_v21 }
 0x3ba   : > { %v2233_v60 = vsub.f32 %v2183_v19, %v6807_v9  ;;  %v2186_v8 = vadd.f32 %v7266_v23, %v2185_v37  ;;  %v7479_v6 = vmul.f32 %v7441_v28, %v7445_v51  ;;  %3998 = vst [vmem:[%s5147_s29 + $0x618] sm:$0xff] %v7457_v45  ;;  %v7485_v26 = vmul.f32 %v7441_v28, %v7457_v45 }
 0x3bb   : > { %v2267_v36 = vsub.f32 %v2235_v34, %v7280_v18  ;;  %v2236_v11 = vsub.f32 %v2194_v43, %v6844_v42  ;;  %3996 = vst [vmem:[%s5147_s29 + $0x608] sm:$0xff] %v7467_v15  ;;  %v7494_v34 = vmul.f32 %v7441_v28, %v7467_v15 }
 0x3bc   : > { %v2265_v19 = vsub.f32 %v2233_v60, %v7284_v48  ;;  %v2234_v39 = vsub.f32 %v2186_v8, %v6876_v52 }
 0x3bd   : > { %v4392_v30 = vpop.f32.mrb[32].mxu1  ;;  %v2332_v43 = vmul.f32 %v6585_v4, %v2267_v36  ;;  %v2268_v3 = vsub.f32 %v2236_v11, %v7289_v59 }
 0x3be   : > { %v2582_v37 = vadd.f32 %v4392_v30, %v7266_v23  ;;  %v2573_v18 = vpop.f32.mrb[33].mxu1  ;;  %v2330_v60 = vmul.f32 %v6585_v4, %v2265_v19  ;;  %v2266_v8 = vsub.f32 %v2234_v39, %v7293_v1 }
 0x3bf   : > { %v2574_v25 = vadd.f32 %v7266_v23, %v2573_v18  ;;  %v4393_v29 = vpop.f32.mrb[34].mxu1  ;;  %v4368_v30 = vpop.f32.mrb[40].mxu0  ;;  %v7506_v36 = vadd.f32 %v2332_v43, %v6793_v63  ;;  %v2333_v59 = vmul.f32 %v6585_v4, %v2268_v3 }
 0x3c0   : > { %v2638_v41 = vsub.f32 %v2582_v37, %v7379_v40  ;;  %v2585_v28 = vadd.f32 %v4393_v29, %v7266_v23  ;;  %v2576_v55 = vpop.f32.mrb[35].mxu1  ;;  %v2207_v11 = vadd.f32 %v4368_v30, %v7266_v23  ;;  %v2198_v18 = vpop.f32.mrb[41].mxu0  ;;  %v7512_v1 = vadd.f32 %v2330_v60, %v6807_v9 }
 0x3c1   : > { %v2636_v48 = vsub.f32 %v2574_v25, %v7391_v22  ;;  %v2331_v19 = vmul.f32 %v6585_v4, %v2266_v8  ;;  %v2199_v39 = vadd.f32 %v7266_v23, %v2198_v18  ;;  %v4369_v37 = vpop.f32.mrb[42].mxu0  ;;  %v7518_v63 = vadd.f32 %v2333_v59, %v6844_v42  ;;  %3976 = vst [vmem:[%s5147_s29 + $0x5b0] sm:$0xff] %v7506_v36 }
 0x3c2   : > { %v2670_v29 = vsub.f32 %v2638_v41, %v7302_v5  ;;  %v2239_v3 = vsub.f32 %v2207_v11, %v6896_v31  ;;  %v2210_v25 = vadd.f32 %v4369_v37, %v7266_v23  ;;  %v2201_v30 = vpop.f32.mrb[43].mxu0  ;;  %v2639_v42 = vsub.f32 %v2585_v28, %v7403_v0  ;;  %3974 = vst [vmem:[%s5147_s29 + $0x5a0] sm:$0xff] %v7512_v1 }
 0x3c3   : > { %v2668_v43 = vsub.f32 %v2636_v48, %v7310_v14  ;;  %v7526_v9 = vadd.f32 %v2331_v19, %v6876_v52  ;;  %v2237_v41 = vsub.f32 %v2199_v39, %v6909_v58  ;;  %v2202_v8 = vadd.f32 %v7266_v23, %v2201_v30  ;;  %3977 = vst [vmem:[%s5147_s29 + $0x5b8] sm:$0xff] %v7518_v63 }
 0x3c4   : > { %v2735_v5 = vmul.f32 %v7268_v47, %v2670_v29  ;;  %v2271_v60 = vsub.f32 %v2239_v3, %v7297_v24  ;;  %v2240_v48 = vsub.f32 %v2210_v25, %v6945_v12  ;;  %v2671_v28 = vsub.f32 %v2639_v42, %v7321_v56 }
 0x3c5   : > { %v2733_v14 = vmul.f32 %v7268_v47, %v2668_v43  ;;  %v4396_v59 = vpop.f32.mrb[36].mxu1  ;;  %v2269_v11 = vsub.f32 %v2237_v41, %v7306_v57  ;;  %v2577_v18 = vadd.f32 %v7266_v23, %v2576_v55  ;;  %3975 = vst [vmem:[%s5147_s29 + $0x5a8] sm:$0xff] %v7526_v9 }
 0x3c6   : > { %v7540_v52 = vadd.f32 %v2735_v5, %v7379_v40  ;;  %v2589_v24 = vpop.f32.mrb[37].mxu1  ;;  %v2336_v19 = vmul.f32 %v6585_v4, %v2271_v60  ;;  %v2272_v39 = vsub.f32 %v2240_v48, %v7317_v7  ;;  %v2238_v40 = vsub.f32 %v2202_v8, %v6954_v20 }
 0x3c7   : > { %v7549_v29 = vadd.f32 %v2733_v14, %v7391_v22  ;;  %v4397_v37 = vpop.f32.mrb[38].mxu1  ;;  %v2334_v57 = vmul.f32 %v6585_v4, %v2269_v11  ;;  %v2736_v56 = vmul.f32 %v7268_v47, %v2671_v28  ;;  %v2637_v55 = vsub.f32 %v2577_v18, %v7418_v2  ;;  %v4372_v3 = vpop.f32.mrb[44].mxu0 }
 0x3c8   : > { %v2598_v43 = vadd.f32 %v4396_v59, %v7266_v23  ;;  %v2592_v25 = vpop.f32.mrb[39].mxu1  ;;  %4013 = vst [vmem:[%s5147_s29 + $0x690] sm:$0xff] %v7540_v52  ;;  %v7560_v22 = vadd.f32 %v2336_v19, %v6896_v31  ;;  %v2337_v7 = vmul.f32 %v6585_v4, %v2272_v39  ;;  %v2270_v30 = vsub.f32 %v2238_v40, %v7327_v16  ;;  %v2214_v41 = vpop.f32.mrb[45].mxu0  ;;  %v8748_v39 = vld [vmem:[#allocation36_spill] sm:$0xff] }
 0x3c9   : > { %v2223_v5 = vadd.f32 %v4372_v3, %v7266_v23  ;;  %4011 = vst [vmem:[%s5147_s29 + $0x680] sm:$0xff] %v7549_v29  ;;  %v7568_v42 = vadd.f32 %v2334_v57, %v6909_v58  ;;  %v7571_v60 = vadd.f32 %v2736_v56, %v7403_v0  ;;  %v2669_v31 = vsub.f32 %v2637_v55, %v7331_v17  ;;  %v4373_v48 = vpop.f32.mrb[46].mxu0 }
 0x3ca   : > { %v2642_v14 = vsub.f32 %v2598_v43, %v7506_v36  ;;  %v7576_v16 = vadd.f32 %v2337_v7, %v6945_v12  ;;  %v2335_v8 = vmul.f32 %v6585_v4, %v2270_v30  ;;  %v2691_v58 = vmul.f32 %v7268_v47, %v7506_v36  ;;  %v2217_v11 = vpop.f32.mrb[47].mxu0  ;;  %3980 = vst [vmem:[%s5147_s29 + $0x5d0] sm:$0xff] %v7560_v22  ;;  %v8750_v7 = vld [vmem:[#allocation51_spill] sm:$0xff] }
 0x3cb   : > { %v2243_v59 = vsub.f32 %v2223_v5, %v7029_v53  ;;  %v2734_v0 = vmul.f32 %v7268_v47, %v2669_v31  ;;  %v2215_v28 = vadd.f32 %v7266_v23, %v2214_v41  ;;  %v2590_v12 = vadd.f32 %v7266_v23, %v2589_v24  ;;  %3978 = vst [vmem:[%s5147_s29 + $0x5c0] sm:$0xff] %v7568_v42 }
 0x3cc   : > { %v2674_v17 = vsub.f32 %v2642_v14, %v7341_v50  ;;  %4014 = vst [vmem:[%s5147_s29 + $0x698] sm:$0xff] %v7571_v60  ;;  %v7593_v18 = vadd.f32 %v2335_v8, %v6954_v20  ;;  %v7597_v40 = vadd.f32 %v2691_v58, %v8748_v39  ;;  %v2689_v50 = vmul.f32 %v7268_v47, %v7512_v1  ;;  %v8749_v20 = vld [vmem:[#allocation52_spill] sm:$0xff] }
 0x3cd   : > { %v2275_v19 = vsub.f32 %v2243_v59, %v7337_v44  ;;  %v4400_v57 = vpop.f32.mrb[40].mxu1  ;;  %3981 = vst [vmem:[%s5147_s29 + $0x5d8] sm:$0xff] %v7576_v16  ;;  %v7604_v24 = vadd.f32 %v2734_v0, %v7418_v2  ;;  %v2241_v55 = vsub.f32 %v2215_v28, %v8749_v20  ;;  %v2640_v44 = vsub.f32 %v2590_v12, %v7512_v1  ;;  %v8752_v28 = vld [vmem:[#allocation33_spill] sm:$0xff] }
 0x3ce   : > { %v2739_v56 = vmul.f32 %v7268_v47, %v2674_v17  ;;  %v2605_v3 = vpop.f32.mrb[41].mxu1  ;;  %v7611_v30 = vadd.f32 %v2689_v50, %v8750_v7  ;;  %v2226_v5 = vadd.f32 %v4373_v48, %v7266_v23  ;;  %v2601_v41 = vadd.f32 %v4397_v37, %v7266_v23  ;;  %3979 = vst [vmem:[%s5147_s29 + $0x5c8] sm:$0xff] %v7593_v18  ;;  %v8751_v48 = vld [vmem:[#allocation40_spill] sm:$0xff]  ;;  %v8753_v50 = vld [vmem:[#allocation30_spill] sm:$0xff] }
 0x3cf   : > { %v2340_v43 = vmul.f32 %v6585_v4, %v2275_v19  ;;  %v4401_v2 = vpop.f32.mrb[42].mxu1  ;;  %4001 = vst [vmem:[%s5147_s29 + $0x630] sm:$0xff] %v7597_v40  ;;  %v2273_v14 = vsub.f32 %v2241_v55, %v7348_v32  ;;  %v2672_v8 = vsub.f32 %v2640_v44, %v7352_v46  ;;  %v2692_v59 = vmul.f32 %v7268_v47, %v7518_v63 }
 0x3d0   : > { %v7620_v31 = vadd.f32 %v2739_v56, %v7506_v36  ;;  %v2608_v58 = vpop.f32.mrb[43].mxu1  ;;  %4012 = vst [vmem:[%s5147_s29 + $0x688] sm:$0xff] %v7604_v24  ;;  %v2244_v0 = vsub.f32 %v2226_v5, %v8751_v48  ;;  %v2643_v17 = vsub.f32 %v2601_v41, %v7518_v63  ;;  %v2218_v36 = vadd.f32 %v7266_v23, %v2217_v11  ;;  %v8754_v5 = vld [vmem:[#allocation42_spill] sm:$0xff] }
 0x3d1   : > { %v7629_v37 = vadd.f32 %v2340_v43, %v7029_v53  ;;  %3999 = vst [vmem:[%s5147_s29 + $0x620] sm:$0xff] %v7611_v30  ;;  %v2338_v32 = vmul.f32 %v6585_v4, %v2273_v14  ;;  %v2737_v46 = vmul.f32 %v7268_v47, %v2672_v8  ;;  %v7639_v12 = vadd.f32 %v2692_v59, %v8752_v28 }
 0x3d2   : > { %v2593_v19 = vadd.f32 %v7266_v23, %v2592_v25  ;;  %4017 = vst [vmem:[%s5147_s29 + $0x6b0] sm:$0xff] %v7620_v31  ;;  %v2276_v53 = vsub.f32 %v2244_v0, %v7359_v62  ;;  %v2675_v39 = vsub.f32 %v2643_v17, %v7363_v33  ;;  %v2242_v11 = vsub.f32 %v2218_v36, %v8753_v50 }
 0x3d3   : > { %v2690_v56 = vmul.f32 %v7268_v47, %v7526_v9  ;;  %3984 = vst [vmem:[%s5147_s29 + $0x5f0] sm:$0xff] %v7629_v37  ;;  %v7652_v55 = vadd.f32 %v2338_v32, %v8749_v20  ;;  %v7655_v25 = vadd.f32 %v2737_v46, %v7512_v1  ;;  %v2614_v62 = vadd.f32 %v4400_v57, %v7266_v23  ;;  %v8755_v46 = vld [vmem:[#allocation45_spill] sm:$0xff] }
 0x3d4   : > { %v2641_v44 = vsub.f32 %v2593_v19, %v7526_v9  ;;  %4002 = vst [vmem:[%s5147_s29 + $0x638] sm:$0xff] %v7639_v12  ;;  %v2341_v33 = vmul.f32 %v6585_v4, %v2276_v53  ;;  %v2740_v43 = vmul.f32 %v7268_v47, %v2675_v39  ;;  %v2274_v7 = vsub.f32 %v2242_v11, %v7372_v35  ;;  %v8756_v19 = vld [vmem:[#allocation34_spill] sm:$0xff] }
 0x3d5   : > { %v7665_v20 = vadd.f32 %v2690_v56, %v8754_v5  ;;  %v4404_v41 = vpop.f32.mrb[44].mxu1  ;;  %v2646_v14 = vsub.f32 %v2614_v62, %v7560_v22  ;;  %v2695_v57 = vmul.f32 %v7268_v47, %v7560_v22  ;;  %v2606_v8 = vadd.f32 %v7266_v23, %v2605_v3  ;;  %3982 = vst [vmem:[%s5147_s29 + $0x5e0] sm:$0xff] %v7652_v55  ;;  %v8757_v62 = vld [vmem:[#allocation31_spill] sm:$0xff] }
 0x3d6   : > { %v2673_v1 = vsub.f32 %v2641_v44, %v7376_v54  ;;  %v2621_v59 = vpop.f32.mrb[45].mxu1  ;;  %4015 = vst [vmem:[%s5147_s29 + $0x6a0] sm:$0xff] %v7655_v25  ;;  %v7677_v35 = vadd.f32 %v2341_v33, %v8751_v48  ;;  %v7680_v0 = vadd.f32 %v2740_v43, %v7518_v63  ;;  %v2339_v54 = vmul.f32 %v6585_v4, %v2274_v7 }
 0x3d7   : > { %v2693_v17 = vmul.f32 %v7268_v47, %v7568_v42  ;;  %v4405_v36 = vpop.f32.mrb[46].mxu1  ;;  %4000 = vst [vmem:[%s5147_s29 + $0x628] sm:$0xff] %v7665_v20  ;;  %v2678_v32 = vsub.f32 %v2646_v14, %v7384_v49  ;;  %v7690_v48 = vadd.f32 %v2695_v57, %v8755_v46  ;;  %v2644_v28 = vsub.f32 %v2606_v8, %v7568_v42  ;;  %v8758_v14 = vld [vmem:[#allocation50_spill] sm:$0xff] }
 0x3d8   : > { %v2738_v3 = vmul.f32 %v7268_v47, %v2673_v1  ;;  %v2624_v63 = vpop.f32.mrb[47].mxu1  ;;  %v7694_v4 = vadd.f32 %v2339_v54, %v8753_v50  ;;  %v2617_v39 = vadd.f32 %v4401_v2, %v7266_v23  ;;  %v2696_v11 = vmul.f32 %v7268_v47, %v7576_v16  ;;  %3985 = vst [vmem:[%s5147_s29 + $0x5f8] sm:$0xff] %v7677_v35 }
 0x3d9   : > { %v7697_v53 = vadd.f32 %v2693_v17, %v8756_v19  ;;  %4018 = vst [vmem:[%s5147_s29 + $0x6b8] sm:$0xff] %v7680_v0  ;;  %v2743_v50 = vmul.f32 %v7268_v47, %v2678_v32  ;;  %v2676_v56 = vsub.f32 %v2644_v28, %v7388_v61  ;;  %v2609_v44 = vadd.f32 %v7266_v23, %v2608_v58 }
 0x3da   : > { %v7707_v49 = vadd.f32 %v2738_v3, %v7526_v9  ;;  %4005 = vst [vmem:[%s5147_s29 + $0x650] sm:$0xff] %v7690_v48  ;;  %v2647_v2 = vsub.f32 %v2617_v39, %v7576_v16  ;;  %v7716_v33 = vadd.f32 %v2696_v11, %v8757_v62  ;;  %v2694_v43 = vmul.f32 %v7268_v47, %v7593_v18  ;;  %v8764_v62 = vld [vmem:[#allocation47_spill] sm:$0xff] }
 0x3db   : > { %v2867_v9 = vpack.c.bf16 %v7494_v34, %v7479_v6  ;;  %3983 = vst [vmem:[%s5147_s29 + $0x5e8] sm:$0xff] %v7694_v4  ;;  %4003 = vst [vmem:[%s5147_s29 + $0x640] sm:$0xff] %v7697_v53  ;;  %v7727_v61 = vadd.f32 %v2743_v50, %v7560_v22  ;;  %v2741_v58 = vmul.f32 %v7268_v47, %v2676_v56  ;;  %v8762_v50 = vld [vmem:[#allocation37_spill] sm:$0xff] }
 0x3dc   : > { %v2645_v7 = vsub.f32 %v2609_v44, %v7593_v18  ;;  %v3092_v5 = vmul.f32 %v7452_v10, %v7549_v29  ;;  %4016 = vst [vmem:[%s5147_s29 + $0x6a8] sm:$0xff] %v7707_v49  ;;  %v2679_v1 = vsub.f32 %v2647_v2, %v7396_v13  ;;  %v7737_v57 = vadd.f32 %v2694_v43, %v8758_v14 }
 0x3dd   : > { %4422 = vmatprep.mubr.bf16.mxu0 %v2867_v9  ;;  %v3093_v22 = vmul.f32 %v7452_v10, %v7604_v24  ;;  %v3094_v8 = vmul.f32 %v7452_v10, %v7540_v52  ;;  %4006 = vst [vmem:[%s5147_s29 + $0x658] sm:$0xff] %v7716_v33  ;;  %v7746_v54 = vadd.f32 %v2741_v58, %v7568_v42  ;;  %4021 = vst [vmem:[%s5147_s29 + $0x6d0] sm:$0xff] %v7727_v61  ;;  %v8765_v58 = vld [vmem:[#allocation48_spill] sm:$0xff] }
 0x3de   : > { %v2677_v13 = vsub.f32 %v2645_v7, %v7400_v38  ;;  %v7750_v17 = vadd.f32 %v3092_v5, %v7445_v51  ;;  %v8759_v3 = vpack.c.bf16 %v7485_v26, %v7473_v27  ;;  %v3095_v32 = vmul.f32 %v7452_v10, %v7571_v60  ;;  %4004 = vst [vmem:[%s5147_s29 + $0x648] sm:$0xff] %v7737_v57  ;;  %v8766_v5 = vld [vmem:[#allocation46_spill] sm:$0xff] }
 0x3df   : > { %v2744_v46 = vmul.f32 %v7268_v47, %v2679_v1  ;;  %v7761_v42 = vadd.f32 %v3093_v22, %v7467_v15  ;;  %v7764_v38 = vadd.f32 %v3094_v8, %v7434_v21  ;;  %v2630_v51 = vadd.f32 %v4404_v41, %v7266_v23  ;;  %4019 = vst [vmem:[%s5147_s29 + $0x6c0] sm:$0xff] %v7746_v54  ;;  %v8767_v22 = vld [vmem:[#allocation35_spill] sm:$0xff] }
 0x3e0   : > { %4423 = vmatmul.mubr.bf16.vlgmr.msra.gmra.mrb[48].mxu0 %v8759_v3  ;;  %v2742_v28 = vmul.f32 %v7268_v47, %v2677_v13  ;;  %v7771_v19 = vadd.f32 %v3095_v32, %v7457_v45  ;;  %v2699_v39 = vmul.f32 %v7268_v47, %v7629_v37  ;;  %v2622_v11 = vadd.f32 %v7266_v23, %v2621_v59 }
 0x3e1   : > { %4036 = vst [vmem:[%s5147_s29 + $0x700] sm:$0xff] %v7750_v17  ;;  %v7781_v21 = vadd.f32 %v2744_v46, %v7576_v16  ;;  %v2650_v15 = vsub.f32 %v2630_v51, %v7629_v37  ;;  %v2697_v41 = vmul.f32 %v7268_v47, %v7652_v55  ;;  %v2633_v45 = vadd.f32 %v4405_v36, %v7266_v23  ;;  %v8763_v36 = vld [vmem:[#allocation49_spill] sm:$0xff]  ;;  %v8769_v51 = vld [vmem:[#allocation32_spill] sm:$0xff] }
 0x3e2   : > { %4037 = vst [vmem:[%s5147_s29 + $0x708] sm:$0xff] %v7761_v42  ;;  %4038 = vst [vmem:[%s5147_s29 + $0x710] sm:$0xff] %v7764_v38  ;;  %v7792_v59 = vadd.f32 %v2742_v28, %v7593_v18  ;;  %v7795_v56 = vadd.f32 %v2699_v39, %v8762_v50  ;;  %v2648_v16 = vsub.f32 %v2622_v11, %v7652_v55 }
 0x3e3   : > { %8760 = vst [vmem:[#allocation39_spill] sm:$0xff] %v7781_v21  ;;  %v2700_v44 = vmul.f32 %v7268_v47, %v7677_v35  ;;  %4039 = vst [vmem:[%s5147_s29 + $0x718] sm:$0xff] %v7771_v19  ;;  %v2682_v2 = vsub.f32 %v2650_v15, %v8763_v36  ;;  %v7804_v43 = vadd.f32 %v2697_v41, %v8764_v62 }
 0x3e4   : > { %8761 = vst [vmem:[#allocation36_spill] sm:$0xff] %v7792_v59  ;;  %v2651_v9 = vsub.f32 %v2633_v45, %v7677_v35  ;;  %v2625_v18 = vadd.f32 %v7266_v23, %v2624_v63  ;;  %4022 = vst [vmem:[%s5147_s29 + $0x6d8] sm:$0xff] %v7781_v21  ;;  %v2680_v7 = vsub.f32 %v2648_v16, %v8765_v58  ;;  %v8768_v63 = vld [vmem:[#allocation38_spill] sm:$0xff]  ;;  %v8771_v45 = vld [vmem:[#allocation41_spill] sm:$0xff] }
 0x3e5   : > { %v7812_v1 = vadd.f32 %v2700_v44, %v8766_v5  ;;  %v2698_v14 = vmul.f32 %v7268_v47, %v7694_v4  ;;  %v7818_v8 = vmul.f32 %v8767_v22, %v7611_v30  ;;  %4020 = vst [vmem:[%s5147_s29 + $0x6c8] sm:$0xff] %v7792_v59  ;;  %4009 = vst [vmem:[%s5147_s29 + $0x670] sm:$0xff] %v7795_v56 }
 0x3e6   : > { %v2747_v23 = vmul.f32 %v7268_v47, %v2682_v2  ;;  %v2683_v13 = vsub.f32 %v2651_v9, %v8768_v63  ;;  %v2649_v3 = vsub.f32 %v2625_v18, %v7694_v4  ;;  %v7829_v32 = vmul.f32 %v8767_v22, %v7665_v20  ;;  %4007 = vst [vmem:[%s5147_s29 + $0x660] sm:$0xff] %v7804_v43 }
 0x3e7   : > { %v2745_v46 = vmul.f32 %v7268_v47, %v2680_v7  ;;  %v7835_v28 = vadd.f32 %v2698_v14, %v8769_v51  ;;  %v3096_v39 = vmul.f32 %v7452_v10, %v7655_v25  ;;  %v3097_v11 = vmul.f32 %v7452_v10, %v7707_v49  ;;  %4010 = vst [vmem:[%s5147_s29 + $0x678] sm:$0xff] %v7812_v1 }
 0x3e8   : > { %v7844_v15 = vadd.f32 %v2747_v23, %v7629_v37  ;;  %v2748_v41 = vmul.f32 %v7268_v47, %v2683_v13  ;;  %v2681_v50 = vsub.f32 %v2649_v3, %v8771_v45  ;;  %v2869_v16 = vpack.c.bf16 %v7829_v32, %v7818_v8  ;;  %v8780_v13 = vld [vmem:[#allocation44_spill] sm:$0xff] }
 0x3e9   : > { %v7851_v44 = vadd.f32 %v2745_v46, %v7652_v55  ;;  %v7854_v36 = vadd.f32 %v3096_v39, %v7611_v30  ;;  %v7857_v2 = vadd.f32 %v3097_v11, %v7665_v20  ;;  %v7861_v37 = vmul.f32 %v8767_v22, %v7597_v40  ;;  %4008 = vst [vmem:[%s5147_s29 + $0x668] sm:$0xff] %v7835_v28 }
 0x3ea   : > { %8770 = vst [vmem:[#allocation52_spill] sm:$0xff] %v7844_v15  ;;  %v7866_v62 = vadd.f32 %v2748_v41, %v7677_v35  ;;  %v2746_v55 = vmul.f32 %v7268_v47, %v2681_v50  ;;  %4426 = vmatprep.mubr.bf16.mxu0 %v2869_v16  ;;  %v7871_v30 = vmul.f32 %v8767_v22, %v7639_v12  ;;  %4025 = vst [vmem:[%s5147_s29 + $0x6f0] sm:$0xff] %v7844_v15 }
 0x3eb   : > { %8772 = vst [vmem:[#allocation51_spill] sm:$0xff] %v7851_v44  ;;  %8773 = vst [vmem:[#allocation40_spill] sm:$0xff] %v7854_v36  ;;  %v3098_v20 = vmul.f32 %v7452_v10, %v7620_v31  ;;  %v3099_v9 = vmul.f32 %v7452_v10, %v7680_v0  ;;  %v7881_v35 = vmul.f32 %v8767_v22, %v7697_v53 }
 0x3ec   : > { %8774 = vst [vmem:[#allocation33_spill] sm:$0xff] %v7857_v2  ;;  %8775 = vst [vmem:[#allocation30_spill] sm:$0xff] %v7866_v62  ;;  %v7885_v47 = vmul.f32 %v8767_v22, %v7737_v57  ;;  %v3100_v18 = vmul.f32 %v7452_v10, %v7746_v54  ;;  %v7896_v58 = vadd.f32 %v2746_v55, %v7694_v4 }
 0x3ed   : > { %4023 = vst [vmem:[%s5147_s29 + $0x6e0] sm:$0xff] %v7851_v44  ;;  %4040 = vst [vmem:[%s5147_s29 + $0x720] sm:$0xff] %v7854_v36  ;;  %v2870_v7 = vpack.c.bf16 %v7871_v30, %v7861_v37  ;;  %v7901_v5 = vadd.f32 %v3098_v20, %v7597_v40  ;;  %v3101_v14 = vmul.f32 %v7452_v10, %v7792_v59 }
 0x3ee   : > { %4041 = vst [vmem:[%s5147_s29 + $0x728] sm:$0xff] %v7857_v2  ;;  %8776 = vst [vmem:[#allocation42_spill] sm:$0xff] %v7896_v58  ;;  %v7908_v23 = vadd.f32 %v3099_v9, %v7639_v12  ;;  %v2871_v63 = vpack.c.bf16 %v7885_v47, %v7881_v35  ;;  %v7913_v4 = vadd.f32 %v3100_v18, %v7697_v53 }
 0x3ef   : > { %8777 = vst [vmem:[#allocation45_spill] sm:$0xff] %v7901_v5  ;;  %4026 = vst [vmem:[%s5147_s29 + $0x6f8] sm:$0xff] %v7866_v62  ;;  %v7917_v40 = vmul.f32 %v8780_v13, %v7750_v17  ;;  %4427 = vmatmul.mubr.bf16.gmra.mrb[52].mxu0 %v2870_v7  ;;  %v7920_v3 = vadd.f32 %v3101_v14, %v7737_v57  ;;  %v7924_v12 = vmul.f32 %v8780_v13, %v7761_v42 }
 0x3f0   : > { %8778 = vst [vmem:[#allocation34_spill] sm:$0xff] %v7908_v23  ;;  %8779 = vst [vmem:[#allocation31_spill] sm:$0xff] %v7913_v4  ;;  %v7928_v46 = vmul.f32 %v8767_v22, %v7690_v48  ;;  %v7932_v53 = vmul.f32 %v8767_v22, %v7716_v33  ;;  %4430 = vmatprep.mubr.bf16.mxu0 %v2871_v63  ;;  %v3102_v57 = vmul.f32 %v7452_v10, %v7727_v61 }
 0x3f1   : > { %8781 = vst [vmem:[#allocation50_spill] sm:$0xff] %v7920_v3  ;;  %4024 = vst [vmem:[%s5147_s29 + $0x6e8] sm:$0xff] %v7896_v58  ;;  %v3103_v51 = vmul.f32 %v7452_v10, %v7781_v21  ;;  %v7944_v39 = vmul.f32 %v8780_v13, %v7764_v38  ;;  %v7948_v11 = vmul.f32 %v8780_v13, %v7771_v19  ;;  %v8101_v21 = vstv %s3255_s30 }
 0x3f2   : > { %4042 = vst [vmem:[%s5147_s29 + $0x730] sm:$0xff] %v7901_v5  ;;  %4043 = vst [vmem:[%s5147_s29 + $0x738] sm:$0xff] %v7908_v23  ;;  %v3274_v41 = vpack.c.bf16 %v7924_v12, %v7917_v40  ;;  %v2872_v45 = vpack.c.bf16 %v7932_v53, %v7928_v46  ;;  %v7960_v50 = vmul.f32 %v8767_v22, %v7804_v43 }
 0x3f3   : > { %4044 = vst [vmem:[%s5147_s29 + $0x740] sm:$0xff] %v7913_v4  ;;  %v7964_v16 = vmul.f32 %v8767_v22, %v7835_v28  ;;  %4045 = vst [vmem:[%s5147_s29 + $0x748] sm:$0xff] %v7920_v3  ;;  %v7969_v55 = vadd.f32 %v3102_v57, %v7690_v48  ;;  %v7972_v20 = vadd.f32 %v3103_v51, %v7716_v33 }
 0x3f4   : > { %v3275_v9 = vpack.c.bf16 %v7948_v11, %v7944_v39  ;;  %v3104_v18 = vmul.f32 %v7452_v10, %v7851_v44  ;;  %4454 = vmatprep.mubr.bf16.mxu1 %v3274_v41  ;;  %v3105_v14 = vmul.f32 %v7452_v10, %v7896_v58  ;;  %v7984_v48 = vmul.f32 %v8780_v13, %v7854_v36 }
 0x3f5   : > { %8782 = vst [vmem:[#allocation37_spill] sm:$0xff] %v7969_v55  ;;  %8783 = vst [vmem:[#allocation49_spill] sm:$0xff] %v7972_v20  ;;  %v2873_v7 = vpack.c.bf16 %v7964_v16, %v7960_v50  ;;  %v7988_v33 = vmul.f32 %v8780_v13, %v7857_v2  ;;  %v7995_v57 = vmul.f32 %v8767_v22, %v7795_v56 }
 0x3f6   : > { %4455 = vmatmul.mubr.bf16.vlgmr.msra.gmra.mrb[48].mxu1 %v3275_v9  ;;  %v7991_v63 = vadd.f32 %v3104_v18, %v7804_v43  ;;  %v7999_v51 = vmul.f32 %v8767_v22, %v7812_v1  ;;  %v3106_v41 = vmul.f32 %v7452_v10, %v7844_v15  ;;  %4046 = vst [vmem:[%s5147_s29 + $0x750] sm:$0xff] %v7969_v55  ;;  %4047 = vst [vmem:[%s5147_s29 + $0x758] sm:$0xff] %v7972_v20 }
 0x3f7   : > { %v8008_v43 = vadd.f32 %v3105_v14, %v7835_v28  ;;  %v3276_v9 = vpack.c.bf16 %v7988_v33, %v7984_v48  ;;  %v3107_v22 = vmul.f32 %v7452_v10, %v7866_v62  ;;  %v8021_v58 = vmul.f32 %v8780_v13, %v7908_v23  ;;  %4431 = vmatmul.mubr.bf16.gmra.mrb[56].mxu0 %v2872_v45  ;;  %v8788_v23 = vld [vmem:[#allocation43_spill] sm:$0xff] }
 0x3f8   : > { %8784 = vst [vmem:[#allocation47_spill] sm:$0xff] %v7991_v63  ;;  %v2874_v18 = vpack.c.bf16 %v7999_v51, %v7995_v57  ;;  %v8017_v2 = vadd.f32 %v3106_v41, %v7795_v56  ;;  %4048 = vst [vmem:[%s5147_s29 + $0x760] sm:$0xff] %v7991_v63  ;;  %v8030_v14 = vmul.f32 %v8780_v13, %v7913_v4  ;;  %4434 = vmatprep.mubr.bf16.mxu0 %v2873_v7 }
 0x3f9   : > { %8785 = vst [vmem:[#allocation48_spill] sm:$0xff] %v8008_v43  ;;  %4458 = vmatprep.mubr.bf16.mxu1 %v3276_v9  ;;  %v8026_v28 = vadd.f32 %v3107_v22, %v7812_v1  ;;  %v8034_v62 = vmul.f32 %v8780_v13, %v7920_v3  ;;  %4049 = vst [vmem:[%s5147_s29 + $0x768] sm:$0xff] %v8008_v43  ;;  %v8040_v56 = vmul.f32 %v8780_v13, %v7901_v5  ;;  %v8080_v3 = vld [vmem:[#allocation12] ss:$0 sm:$0xff] }
 0x3fa   : > { %8786 = vst [vmem:[#allocation46_spill] sm:$0xff] %v8017_v2  ;;  %4050 = vst [vmem:[%s5147_s29 + $0x770] sm:$0xff] %v8017_v2  ;;  %v8052_v7 = vmul.f32 %v8780_v13, %v8008_v43  ;;  %v8056_v41 = vmul.f32 %v8780_v13, %v7972_v20  ;;  %v8060_v9 = vmul.f32 %v8780_v13, %v7991_v63 }
 0x3fb   : > { %8787 = vst [vmem:[#allocation35_spill] sm:$0xff] %v8026_v28  ;;  %v3278_v1 = vpack.c.bf16 %v8034_v62, %v8030_v14  ;;  %4051 = vst [vmem:[%s5147_s29 + $0x778] sm:$0xff] %v8026_v28  ;;  %v3277_v45 = vpack.c.bf16 %v8021_v58, %v8040_v56  ;;  %v8064_v22 = vmul.f32 %v8780_v13, %v7969_v55 }
 0x3fc   : > { %v8072_v43 = vmul.f32 %v8780_v13, %v8026_v28  ;;  %v3059_v44 = vmul.f32 %v7479_v6, %v8788_v23 }
 0x3fe   : > { %4459 = vmatmul.mubr.bf16.gmra.mrb[52].mxu1 %v3277_v45  ;;  %v3279_v45 = vpack.c.bf16 %v8056_v41, %v8064_v22 }
 0x3ff   : > { %4462 = vmatprep.mubr.bf16.mxu1 %v3278_v1  ;;  %4435 = vmatmul.mubr.bf16.gmra.mrb[60].mxu0 %v2874_v18  ;;  %v3280_v1 = vpack.c.bf16 %v8052_v7, %v8060_v9  ;;  %v8076_v18 = vmul.f32 %v8780_v13, %v8017_v2  ;;  %v3061_v13 = vmul.f32 %v7473_v27, %v8788_v23 }
 0x400   : > { %v3060_v27 = vmul.f32 %v7494_v34, %v8788_v23  ;;  %v3063_v34 = vmul.f32 %v7818_v8, %v8788_v23 }
 0x401   : > { %v3281_v63 = vpack.c.bf16 %v8072_v43, %v8076_v18 }
 0x406   : > { %4463 = vmatmul.mubr.bf16.gmra.mrb[56].mxu1 %v3279_v45 }
 0x407   : > { %4466 = vmatprep.mubr.bf16.mxu1 %v3280_v1 }
 0x40e   : > { %4467 = vmatmul.mubr.bf16.gmra.mrb[60].mxu1 %v3281_v63 }
 0x4b3   : > { %v4424_v20 = vpop.f32.mrb[48].mxu0 }
 0x4b4   : > { %v2989_v45 = vadd.f32 %v4424_v20, %v8080_v3  ;;  %v2980_v1 = vpop.f32.mrb[49].mxu0 }
 0x4b5   : > { %v2981_v4 = vadd.f32 %v8080_v3, %v2980_v1  ;;  %v4425_v28 = vpop.f32.mrb[50].mxu0  ;;  %v3062_v1 = vmul.f32 %v7485_v26, %v8788_v23 }
 0x4b6   : > { %v3045_v55 = vsub.f32 %v2989_v45, %v7540_v52  ;;  %v2992_v2 = vadd.f32 %v4425_v28, %v8080_v3  ;;  %v2983_v36 = vpop.f32.mrb[51].mxu0 }
 0x4b7   : > { %v3043_v63 = vsub.f32 %v2981_v4, %v7549_v29  ;;  %v2984_v5 = vadd.f32 %v8080_v3, %v2983_v36 }
 0x4b8   : > { %v3077_v20 = vsub.f32 %v3045_v55, %v3061_v13  ;;  %v3046_v15 = vsub.f32 %v2992_v2, %v7571_v60  ;;  %v8155_v13 = vmul.f32 %v7932_v53, %v8788_v23 }
 0x4b9   : > { %v3075_v45 = vsub.f32 %v3043_v63, %v3059_v44  ;;  %v3044_v59 = vsub.f32 %v2984_v5, %v7604_v24  ;;  %v3065_v44 = vmul.f32 %v7861_v37, %v8788_v23  ;;  %v8127_v37 = vmul.f32 %v7928_v46, %v8788_v23 }
 0x4ba   : > { %v3142_v4 = vmul.f32 %v7452_v10, %v3077_v20  ;;  %v3078_v28 = vsub.f32 %v3046_v15, %v3062_v1  ;;  %v8168_v63 = vmul.f32 %v7885_v47, %v8788_v23  ;;  %v8185_v47 = vmul.f32 %v8040_v56, %v8788_v23 }
 0x4bb   : > { %v3140_v6 = vmul.f32 %v7452_v10, %v3075_v45  ;;  %v3076_v36 = vsub.f32 %v3044_v59, %v3060_v27  ;;  %v3066_v59 = vmul.f32 %v7871_v30, %v8788_v23  ;;  %v8148_v30 = vmul.f32 %v7917_v40, %v8788_v23 }
 0x4bc   : > { %v8105_v2 = vadd.f32 %v3142_v4, %v7540_v52  ;;  %v3143_v26 = vmul.f32 %v7452_v10, %v3078_v28  ;;  %v8120_v52 = vmul.f32 %v7829_v32, %v8788_v23  ;;  %v8189_v1 = vmul.f32 %v7960_v50, %v8788_v23 }
 0x4bd   : > { %v8113_v5 = vadd.f32 %v3140_v6, %v7549_v29  ;;  %v3141_v15 = vmul.f32 %v7452_v10, %v3076_v36  ;;  %v8133_v29 = vmul.f32 %v7944_v39, %v8788_v23  ;;  %v8204_v50 = vmul.f32 %v8021_v58, %v8788_v23 }
 0x4be   : > { %v8123_v55 = vadd.f32 %v3143_v26, %v7571_v60  ;;  %4054 = vst [vmem:[%s5147_s29 + $0x790] sm:$0xff] %v8105_v2  ;;  %v3501_v8 = vmul.f32 %v8101_v21, %v8105_v2  ;;  %v8142_v60 = vmul.f32 %v7881_v35, %v8788_v23  ;;  %v8208_v28 = vmul.f32 %v7964_v16, %v8788_v23 }
 0x4bf   : > { %v8138_v32 = vadd.f32 %v3141_v15, %v7604_v24  ;;  %4052 = vst [vmem:[%s5147_s29 + $0x780] sm:$0xff] %v8113_v5  ;;  %v3499_v46 = vmul.f32 %v8101_v21, %v8113_v5  ;;  %v8161_v24 = vmul.f32 %v7948_v11, %v8788_v23  ;;  %v8218_v36 = vmul.f32 %v8064_v22, %v8788_v23 }
 0x4c0   : > { %v3517_v39 = vadd.f32 %v3501_v8, %v7764_v38  ;;  %4055 = vst [vmem:[%s5147_s29 + $0x798] sm:$0xff] %v8123_v55  ;;  %v3502_v35 = vmul.f32 %v8101_v21, %v8123_v55  ;;  %v8174_v38 = vmul.f32 %v7924_v12, %v8788_v23  ;;  %v8222_v58 = vmul.f32 %v8030_v14, %v8788_v23 }
 0x4c1   : > { %v3515_v40 = vadd.f32 %v3499_v46, %v7750_v17  ;;  %4053 = vst [vmem:[%s5147_s29 + $0x788] sm:$0xff] %v8138_v32  ;;  %v3500_v53 = vmul.f32 %v8101_v21, %v8138_v32  ;;  %v8181_v17 = vmul.f32 %v7995_v57, %v8788_v23  ;;  %v8199_v57 = vmul.f32 %v7999_v51, %v8788_v23 }
 0x4c2   : > { %v4428_v11 = vpop.f32.mrb[52].mxu0  ;;  %3533 = vst [vmem:[#allocation2 + $0x10] sm:$0xff] %v3517_v39  ;;  %v3518_v20 = vadd.f32 %v3502_v35, %v7771_v19  ;;  %v8195_v19 = vmul.f32 %v7984_v48, %v8788_v23  ;;  %v8232_v15 = vmul.f32 %v8034_v62, %v8788_v23  ;;  %v8237_v14 = vmul.f32 %v8076_v18, %v8788_v23 }
 0x4c3   : > { %v3005_v12 = vadd.f32 %v4428_v11, %v8080_v3  ;;  %v2996_v45 = vpop.f32.mrb[53].mxu0  ;;  %3531 = vst [vmem:[#allocation2] sm:$0xff] %v3515_v40  ;;  %v3516_v27 = vadd.f32 %v3500_v53, %v7761_v42  ;;  %v8212_v42 = vmul.f32 %v7988_v33, %v8788_v23  ;;  %v8228_v33 = vmul.f32 %v8056_v41, %v8788_v23 }
 0x4c4   : > { %v2997_v56 = vadd.f32 %v8080_v3, %v2996_v45  ;;  %v4429_v4 = vpop.f32.mrb[54].mxu0  ;;  %3534 = vst [vmem:[#allocation2 + $0x18] sm:$0xff] %v3518_v20  ;;  %v8241_v39 = vmul.f32 %v8060_v9, %v8788_v23  ;;  %v8247_v62 = vmul.f32 %v8072_v43, %v8788_v23  ;;  %v8253_v9 = vmul.f32 %v8052_v7, %v8788_v23 }
 0x4c5   : > { %v3049_v48 = vsub.f32 %v3005_v12, %v7620_v31  ;;  %v3008_v51 = vadd.f32 %v4429_v4, %v8080_v3  ;;  %v2999_v6 = vpop.f32.mrb[55].mxu0  ;;  %3532 = vst [vmem:[#allocation2 + $0x8] sm:$0xff] %v3516_v27 }
 0x4c6   : > { %v3047_v16 = vsub.f32 %v2997_v56, %v7655_v25  ;;  %v3000_v26 = vadd.f32 %v8080_v3, %v2999_v6 }
 0x4c7   : > { %v3081_v8 = vsub.f32 %v3049_v48, %v3065_v44  ;;  %v3050_v22 = vsub.f32 %v3008_v51, %v7680_v0 }
 0x4c8   : > { %v3079_v35 = vsub.f32 %v3047_v16, %v3063_v34  ;;  %v3048_v41 = vsub.f32 %v3000_v26, %v7707_v49 }
 0x4c9   : > { %v4456_v46 = vpop.f32.mrb[48].mxu1  ;;  %v3146_v44 = vmul.f32 %v7452_v10, %v3081_v8  ;;  %v3082_v11 = vsub.f32 %v3050_v22, %v3066_v59 }
 0x4ca   : > { %v3396_v40 = vadd.f32 %v4456_v46, %v8080_v3  ;;  %v3387_v53 = vpop.f32.mrb[49].mxu1  ;;  %v3144_v34 = vmul.f32 %v7452_v10, %v3079_v35  ;;  %v3080_v12 = vsub.f32 %v3048_v41, %v8120_v52  ;;  %v4432_v45 = vpop.f32.mrb[56].mxu0 }
 0x4cb   : > { %v3388_v18 = vadd.f32 %v8080_v3, %v3387_v53  ;;  %v4457_v20 = vpop.f32.mrb[50].mxu1  ;;  %v8260_v59 = vadd.f32 %v3146_v44, %v7620_v31  ;;  %v3147_v4 = vmul.f32 %v7452_v10, %v3082_v11  ;;  %v3021_v48 = vadd.f32 %v4432_v45, %v8080_v3  ;;  %v3012_v23 = vpop.f32.mrb[57].mxu0  ;;  %v8789_v53 = vld [vmem:[#allocation39_spill] sm:$0xff] }
 0x4cc   : > { %v3452_v27 = vsub.f32 %v3396_v40, %v8105_v2  ;;  %v3399_v43 = vadd.f32 %v4457_v20, %v8080_v3  ;;  %v3390_v56 = vpop.f32.mrb[51].mxu1  ;;  %v8266_v52 = vadd.f32 %v3144_v34, %v7655_v25  ;;  %v3145_v51 = vmul.f32 %v7452_v10, %v3080_v12  ;;  %v4433_v26 = vpop.f32.mrb[58].mxu0 }
 0x4cd   : > { %v3450_v7 = vsub.f32 %v3388_v18, %v8113_v5  ;;  %v3013_v16 = vadd.f32 %v8080_v3, %v3012_v23  ;;  %v8272_v31 = vadd.f32 %v3147_v4, %v7680_v0  ;;  %v3053_v8 = vsub.f32 %v3021_v48, %v7727_v61  ;;  %v3015_v35 = vpop.f32.mrb[59].mxu0  ;;  %4058 = vst [vmem:[%s5147_s29 + $0x7b0] sm:$0xff] %v8260_v59  ;;  %v8790_v4 = vld [vmem:[#allocation36_spill] sm:$0xff] }
 0x4ce   : > { %v3484_v6 = vsub.f32 %v3452_v27, %v8133_v29  ;;  %v3024_v46 = vadd.f32 %v4433_v26, %v8080_v3  ;;  %v8280_v25 = vadd.f32 %v3145_v51, %v7707_v49  ;;  %v3453_v0 = vsub.f32 %v3399_v43, %v8123_v55  ;;  %4056 = vst [vmem:[%s5147_s29 + $0x7a0] sm:$0xff] %v8266_v52 }
 0x4cf   : > { %v3482_v22 = vsub.f32 %v3450_v7, %v8148_v30  ;;  %v3051_v41 = vsub.f32 %v3013_v16, %v7746_v54  ;;  %v3085_v40 = vsub.f32 %v3053_v8, %v8127_v37  ;;  %v3016_v11 = vadd.f32 %v8080_v3, %v3015_v35  ;;  %4059 = vst [vmem:[%s5147_s29 + $0x7b8] sm:$0xff] %v8272_v31 }
 0x4d0   : > { %v3549_v29 = vmul.f32 %v8101_v21, %v3484_v6  ;;  %v3054_v44 = vsub.f32 %v3024_v46, %v8789_v53  ;;  %v3485_v34 = vsub.f32 %v3453_v0, %v8161_v24  ;;  %v3391_v12 = vadd.f32 %v8080_v3, %v3390_v56  ;;  %4057 = vst [vmem:[%s5147_s29 + $0x7a8] sm:$0xff] %v8280_v25 }
 0x4d1   : > { %v3547_v30 = vmul.f32 %v8101_v21, %v3482_v22  ;;  %v4460_v18 = vpop.f32.mrb[52].mxu1  ;;  %v3083_v20 = vsub.f32 %v3051_v41, %v8142_v60  ;;  %v3150_v37 = vmul.f32 %v7452_v10, %v3085_v40  ;;  %v3052_v48 = vsub.f32 %v3016_v11, %v8790_v4 }
 0x4d2   : > { %v3565_v49 = vadd.f32 %v3549_v29, %v8105_v2  ;;  %v3403_v45 = vpop.f32.mrb[53].mxu1  ;;  %v3086_v43 = vsub.f32 %v3054_v44, %v8155_v13  ;;  %v3550_v60 = vmul.f32 %v8101_v21, %v3485_v34  ;;  %v3451_v24 = vsub.f32 %v3391_v12, %v8138_v32  ;;  %v4436_v56 = vpop.f32.mrb[60].mxu0 }
 0x4d3   : > { %v3563_v27 = vadd.f32 %v3547_v30, %v8113_v5  ;;  %v4461_v23 = vpop.f32.mrb[54].mxu1  ;;  %v3148_v2 = vmul.f32 %v7452_v10, %v3083_v20  ;;  %v3412_v7 = vadd.f32 %v4460_v18, %v8080_v3  ;;  %v8308_v6 = vadd.f32 %v3150_v37, %v7727_v61  ;;  %v3028_v26 = vpop.f32.mrb[61].mxu0  ;;  %v8792_v18 = vld [vmem:[#allocation45_spill] sm:$0xff] }
 0x4d4   : > { %3581 = vst [vmem:[#allocation2 + $0x90] sm:$0xff] %v3565_v49  ;;  %v3406_v51 = vpop.f32.mrb[55].mxu1  ;;  %v3151_v5 = vmul.f32 %v7452_v10, %v3086_v43  ;;  %v3084_v13 = vsub.f32 %v3052_v48, %v8168_v63  ;;  %v3037_v16 = vadd.f32 %v4436_v56, %v8080_v3  ;;  %v3566_v22 = vadd.f32 %v3550_v60, %v8123_v55  ;;  %v4437_v35 = vpop.f32.mrb[62].mxu0  ;;  %v8791_v63 = vld [vmem:[#allocation52_spill] sm:$0xff] }
 0x4d5   : > { %3579 = vst [vmem:[#allocation2 + $0x80] sm:$0xff] %v3563_v27  ;;  %v8314_v8 = vadd.f32 %v3148_v2, %v7746_v54  ;;  %v3483_v46 = vsub.f32 %v3451_v24, %v8174_v38  ;;  %v3456_v61 = vsub.f32 %v3412_v7, %v8260_v59  ;;  %v3505_v54 = vmul.f32 %v8101_v21, %v8260_v59  ;;  %v3031_v40 = vpop.f32.mrb[63].mxu0 }
 0x4d6   : > { %v8320_v29 = vadd.f32 %v3151_v5, %v8789_v53  ;;  %v3149_v41 = vmul.f32 %v7452_v10, %v3084_v13  ;;  %v3057_v0 = vsub.f32 %v3037_v16, %v8791_v63  ;;  %4062 = vst [vmem:[%s5147_s29 + $0x7d0] sm:$0xff] %v8308_v6  ;;  %3582 = vst [vmem:[#allocation2 + $0x98] sm:$0xff] %v3566_v22 }
 0x4d7   : > { %v3548_v55 = vmul.f32 %v8101_v21, %v3483_v46  ;;  %v3488_v38 = vsub.f32 %v3456_v61, %v8185_v47  ;;  %v3029_v30 = vadd.f32 %v8080_v3, %v3028_v26  ;;  %v3404_v53 = vadd.f32 %v8080_v3, %v3403_v45  ;;  %4060 = vst [vmem:[%s5147_s29 + $0x7c0] sm:$0xff] %v8314_v8  ;;  %v8793_v45 = vld [vmem:[#allocation51_spill] sm:$0xff] }
 0x4d8   : > { %v8335_v44 = vadd.f32 %v3149_v41, %v8790_v4  ;;  %v3089_v11 = vsub.f32 %v3057_v0, %v8181_v17  ;;  %v3521_v49 = vadd.f32 %v3505_v54, %v8792_v18  ;;  %v3503_v20 = vmul.f32 %v8101_v21, %v8266_v52  ;;  %4063 = vst [vmem:[%s5147_s29 + $0x7d8] sm:$0xff] %v8320_v29  ;;  %v8794_v4 = vld [vmem:[#allocation40_spill] sm:$0xff]  ;;  %v8797_v0 = vld [vmem:[#allocation42_spill] sm:$0xff] }
 0x4d9   : > { %v4464_v34 = vpop.f32.mrb[56].mxu1  ;;  %v3564_v47 = vadd.f32 %v3548_v55, %v8138_v32  ;;  %v3553_v12 = vmul.f32 %v8101_v21, %v3488_v38  ;;  %v3055_v37 = vsub.f32 %v3029_v30, %v8793_v45  ;;  %v3454_v27 = vsub.f32 %v3404_v53, %v8266_v52 }
 0x4da   : > { %v3419_v43 = vpop.f32.mrb[57].mxu1  ;;  %v3154_v17 = vmul.f32 %v7452_v10, %v3089_v11  ;;  %3537 = vst [vmem:[#allocation2 + $0x30] sm:$0xff] %v3521_v49  ;;  %v3519_v48 = vadd.f32 %v3503_v20, %v8794_v4  ;;  %v3040_v2 = vadd.f32 %v4437_v35, %v8080_v3  ;;  %v3415_v60 = vadd.f32 %v4461_v23, %v8080_v3  ;;  %v8795_v23 = vld [vmem:[#allocation30_spill] sm:$0xff]  ;;  %v8798_v11 = vld [vmem:[#allocation33_spill] sm:$0xff] }
 0x4db   : > { %v4465_v24 = vpop.f32.mrb[58].mxu1  ;;  %4061 = vst [vmem:[%s5147_s29 + $0x7c8] sm:$0xff] %v8335_v44  ;;  %3580 = vst [vmem:[#allocation2 + $0x88] sm:$0xff] %v3564_v47  ;;  %v3569_v32 = vadd.f32 %v3553_v12, %v8260_v59  ;;  %v3087_v56 = vsub.f32 %v3055_v37, %v8189_v1  ;;  %v3486_v7 = vsub.f32 %v3454_v27, %v8195_v19  ;;  %v8796_v59 = vld [vmem:[#allocation34_spill] sm:$0xff]  ;;  %v8799_v4 = vld [vmem:[#allocation37_spill] sm:$0xff] }
 0x4dc   : > { %v3506_v5 = vmul.f32 %v8101_v21, %v8272_v31  ;;  %v3422_v13 = vpop.f32.mrb[59].mxu1  ;;  %v8359_v16 = vadd.f32 %v3154_v17, %v8791_v63  ;;  %3535 = vst [vmem:[#allocation2 + $0x20] sm:$0xff] %v3519_v48  ;;  %v3058_v26 = vsub.f32 %v3040_v2, %v8795_v23  ;;  %v3457_v22 = vsub.f32 %v3415_v60, %v8272_v31 }
 0x4dd   : > { %v3032_v46 = vadd.f32 %v8080_v3, %v3031_v40  ;;  %3585 = vst [vmem:[#allocation2 + $0xb0] sm:$0xff] %v3569_v32  ;;  %v3152_v1 = vmul.f32 %v7452_v10, %v3087_v56  ;;  %v3551_v19 = vmul.f32 %v8101_v21, %v3486_v7  ;;  %v3407_v35 = vadd.f32 %v8080_v3, %v3406_v51 }
 0x4de   : > { %v3522_v61 = vadd.f32 %v3506_v5, %v8796_v59  ;;  %v3090_v41 = vsub.f32 %v3058_v26, %v8199_v57  ;;  %v3489_v63 = vsub.f32 %v3457_v22, %v8204_v50  ;;  %v3504_v55 = vmul.f32 %v8101_v21, %v8280_v25  ;;  %4066 = vst [vmem:[%s5147_s29 + $0x7f0] sm:$0xff] %v8359_v16 }
 0x4df   : > { %v3056_v54 = vsub.f32 %v3032_v46, %v8797_v0  ;;  %v8376_v40 = vadd.f32 %v3152_v1, %v8793_v45  ;;  %v3567_v38 = vadd.f32 %v3551_v19, %v8266_v52  ;;  %v3455_v51 = vsub.f32 %v3407_v35, %v8280_v25  ;;  %v8801_v46 = vld [vmem:[#allocation49_spill] sm:$0xff]  ;;  %v8802_v35 = vld [vmem:[#allocation50_spill] sm:$0xff] }
 0x4e0   : > { %3538 = vst [vmem:[#allocation2 + $0x38] sm:$0xff] %v3522_v61  ;;  %v3428_v57 = vadd.f32 %v4464_v34, %v8080_v3  ;;  %v3155_v50 = vmul.f32 %v7452_v10, %v3090_v41  ;;  %v3554_v30 = vmul.f32 %v8101_v21, %v3489_v63  ;;  %v3520_v18 = vadd.f32 %v3504_v55, %v8798_v11  ;;  %v8803_v55 = vld [vmem:[#allocation46_spill] sm:$0xff] }
 0x4e1   : > { %v3088_v53 = vsub.f32 %v3056_v54, %v8208_v28  ;;  %v4468_v49 = vpop.f32.mrb[60].mxu1  ;;  %3583 = vst [vmem:[#allocation2 + $0xa0] sm:$0xff] %v3567_v38  ;;  %v3487_v20 = vsub.f32 %v3455_v51, %v8212_v42  ;;  %v3509_v52 = vmul.f32 %v8101_v21, %v8308_v6  ;;  %v3420_v12 = vadd.f32 %v8080_v3, %v3419_v43 }
 0x4e2   : > { %v3460_v47 = vsub.f32 %v3428_v57, %v8308_v6  ;;  %4064 = vst [vmem:[%s5147_s29 + $0x7e0] sm:$0xff] %v8376_v40  ;;  %v3435_v34 = vpop.f32.mrb[61].mxu1  ;;  %v8393_v45 = vadd.f32 %v3155_v50, %v8795_v23  ;;  %v3570_v28 = vadd.f32 %v3554_v30, %v8272_v31  ;;  %3536 = vst [vmem:[#allocation2 + $0x28] sm:$0xff] %v3520_v18 }
 0x4e3   : > { %v3153_v37 = vmul.f32 %v7452_v10, %v3088_v53  ;;  %v3507_v42 = vmul.f32 %v8101_v21, %v8314_v8  ;;  %v4469_v27 = vpop.f32.mrb[62].mxu1  ;;  %v3552_v17 = vmul.f32 %v8101_v21, %v3487_v20  ;;  %v3525_v48 = vadd.f32 %v3509_v52, %v8799_v4  ;;  %v8800_v10 = vld [vmem:[#allocation31_spill] sm:$0xff] }
 0x4e4   : > { %v3492_v43 = vsub.f32 %v3460_v47, %v8218_v36  ;;  %v3458_v2 = vsub.f32 %v3420_v12, %v8314_v8  ;;  %v3438_v60 = vpop.f32.mrb[63].mxu1  ;;  %3586 = vst [vmem:[#allocation2 + $0xb8] sm:$0xff] %v3570_v28  ;;  %v3431_v56 = vadd.f32 %v4465_v24, %v8080_v3  ;;  %v3510_v7 = vmul.f32 %v8101_v21, %v8320_v29  ;;  %v8805_v12 = vld [vmem:[#allocation35_spill] sm:$0xff] }
 0x4e5   : > { %v8404_v31 = vadd.f32 %v3153_v37, %v8797_v0  ;;  %v3523_v32 = vadd.f32 %v3507_v42, %v8800_v10  ;;  %4067 = vst [vmem:[%s5147_s29 + $0x7f8] sm:$0xff] %v8393_v45  ;;  %v3568_v36 = vadd.f32 %v3552_v17, %v8280_v25  ;;  %3541 = vst [vmem:[#allocation2 + $0x50] sm:$0xff] %v3525_v48  ;;  %v8806_v42 = vld [vmem:[#allocation48_spill] sm:$0xff] }
 0x4e6   : > { %v3557_v5 = vmul.f32 %v8101_v21, %v3492_v43  ;;  %v3490_v23 = vsub.f32 %v3458_v2, %v8222_v58  ;;  %v3423_v26 = vadd.f32 %v8080_v3, %v3422_v13  ;;  %v3461_v22 = vsub.f32 %v3431_v56, %v8320_v29 }
 0x4e7   : > { %3539 = vst [vmem:[#allocation2 + $0x40] sm:$0xff] %v3523_v32  ;;  %v3526_v1 = vadd.f32 %v3510_v7, %v8801_v46  ;;  %v3508_v24 = vmul.f32 %v8101_v21, %v8335_v44  ;;  %v3444_v19 = vadd.f32 %v4468_v49, %v8080_v3  ;;  %4065 = vst [vmem:[%s5147_s29 + $0x7e8] sm:$0xff] %v8404_v31 }
 0x4e8   : > { %3584 = vst [vmem:[#allocation2 + $0xa8] sm:$0xff] %v3568_v36  ;;  %v3573_v25 = vadd.f32 %v3557_v5, %v8308_v6  ;;  %v3555_v59 = vmul.f32 %v8101_v21, %v3490_v23  ;;  %v3459_v58 = vsub.f32 %v3423_v26, %v8335_v44  ;;  %v3513_v13 = vmul.f32 %v8101_v21, %v8359_v16 }
 0x4e9   : > { %v3493_v61 = vsub.f32 %v3461_v22, %v8228_v33  ;;  %3542 = vst [vmem:[#allocation2 + $0x58] sm:$0xff] %v3526_v1  ;;  %v3524_v41 = vadd.f32 %v3508_v24, %v8802_v35  ;;  %v3464_v63 = vsub.f32 %v3444_v19, %v8359_v16  ;;  %v3436_v0 = vadd.f32 %v8080_v3, %v3435_v34 }
 0x4ea   : > { %3589 = vst [vmem:[#allocation2 + $0xd0] sm:$0xff] %v3573_v25  ;;  %v3571_v54 = vadd.f32 %v3555_v59, %v8314_v8  ;;  %v3491_v6 = vsub.f32 %v3459_v58, %v8232_v15  ;;  %v3529_v38 = vadd.f32 %v3513_v13, %v8803_v55  ;;  %v3511_v51 = vmul.f32 %v8101_v21, %v8376_v40  ;;  %v8804_v8 = vld [vmem:[#allocation47_spill] sm:$0xff] }
 0x4eb   : > { %v3558_v57 = vmul.f32 %v8101_v21, %v3493_v61  ;;  %3540 = vst [vmem:[#allocation2 + $0x48] sm:$0xff] %v3524_v41  ;;  %v3496_v33 = vsub.f32 %v3464_v63, %v8237_v14  ;;  %v3462_v50 = vsub.f32 %v3436_v0, %v8376_v40  ;;  %v3447_v30 = vadd.f32 %v4469_v27, %v8080_v3 }
 0x4ec   : > { %3587 = vst [vmem:[#allocation2 + $0xc0] sm:$0xff] %v3571_v54  ;;  %v3556_v53 = vmul.f32 %v8101_v21, %v3491_v6  ;;  %3545 = vst [vmem:[#allocation2 + $0x70] sm:$0xff] %v3529_v38  ;;  %v3527_v15 = vadd.f32 %v3511_v51, %v8804_v8  ;;  %v3514_v11 = vmul.f32 %v8101_v21, %v8393_v45 }
 0x4ed   : > { %v3439_v18 = vadd.f32 %v8080_v3, %v3438_v60  ;;  %v3574_v49 = vadd.f32 %v3558_v57, %v8320_v29  ;;  %v3561_v20 = vmul.f32 %v8101_v21, %v3496_v33  ;;  %v3494_v14 = vsub.f32 %v3462_v50, %v8241_v39 }
 0x4ee   : > { %v3465_v47 = vsub.f32 %v3447_v30, %v8393_v45  ;;  %v3572_v52 = vadd.f32 %v3556_v53, %v8335_v44  ;;  %3543 = vst [vmem:[#allocation2 + $0x60] sm:$0xff] %v3527_v15  ;;  %v3530_v34 = vadd.f32 %v3514_v11, %v8805_v12  ;;  %v3512_v37 = vmul.f32 %v8101_v21, %v8404_v31 }
 0x4ef   : > { %v3463_v28 = vsub.f32 %v3439_v18, %v8404_v31  ;;  %3590 = vst [vmem:[#allocation2 + $0xd8] sm:$0xff] %v3574_v49  ;;  %v3577_v3 = vadd.f32 %v3561_v20, %v8359_v16  ;;  %v3559_v29 = vmul.f32 %v8101_v21, %v3494_v14 }
 0x4f0   : > { %v3497_v39 = vsub.f32 %v3465_v47, %v8247_v62  ;;  %3588 = vst [vmem:[#allocation2 + $0xc8] sm:$0xff] %v3572_v52  ;;  %3546 = vst [vmem:[#allocation2 + $0x78] sm:$0xff] %v3530_v34  ;;  %v3528_v27 = vadd.f32 %v3512_v37, %v8806_v42 }
 0x4f1   : > { %v3495_v44 = vsub.f32 %v3463_v28, %v8253_v9  ;;  %3593 = vst [vmem:[#allocation2 + $0xf0] sm:$0xff] %v3577_v3  ;;  %v3575_v17 = vadd.f32 %v3559_v29, %v8376_v40 }
 0x4f2   : > { %v3562_v43 = vmul.f32 %v8101_v21, %v3497_v39  ;;  %3544 = vst [vmem:[#allocation2 + $0x68] sm:$0xff] %v3528_v27 }
 0x4f3   : > { %v3560_v4 = vmul.f32 %v8101_v21, %v3495_v44  ;;  %3591 = vst [vmem:[#allocation2 + $0xe0] sm:$0xff] %v3575_v17 }
 0x4f4   : > { %v3578_v16 = vadd.f32 %v3562_v43, %v8393_v45 }
 0x4f5   : > { %v3576_v48 = vadd.f32 %v3560_v4, %v8404_v31 }
 0x4f6   : > { %3594 = vst [vmem:[#allocation2 + $0xf8] sm:$0xff] %v3578_v16 }
 0x4f7   : > { %3592 = vst [vmem:[#allocation2 + $0xe8] sm:$0xff] %v3576_v48 }
 0x4f8   : > { %s4079_s11 = sshll.u32 %s4846_s23, 4  ;;  %s4085_s14 = sshll.u32 %s4842_s2, 9 }
 0x4f9   : > { %s3609_s10 = sadd.s32 %s4085_s14, %s4079_s11  ;;  %s3628_s20 = sshll.u32 %s5147_s29, 4  ;;  %s3629_s20 = int_to_ptr.vmem [resolvable:$true] %s3628_s20 }
 0x4fa   : > { %s4081_s0 = sshll.u32 %s3609_s10, 7  ;;  %s4872_s16 = smov 2048  }
 0x4fb   : > { %s3611_s8 = scalar_lea.hbm %s8529_s6, %s4081_s0  ;;  %p8807_p4 = scmp.ne.s32.totalorder %s8633_s15, 0 }
 0x4fc   : > { %s4873_s27 = smov 4096   ;;  %s4874_s28 = smov 16  }
 0x4fd   : > { %4487 = sst [smem:[#allocation17]] (%p8807_p4), %s4872_s16  ;;  %s4875_s2 = smov 128  }
 0x4fe   : > { %4488 = sst [smem:[#allocation17 + $0x1]] (%p8807_p4), %s4873_s27  ;;  %s4876_s23 = smov 8  }
 0x4ff   : > { %4489 = sst [smem:[#allocation17 + $0x2]] (%p8807_p4), %s4874_s28  ;;  %s4877_s29 = smov [#allocation16]  }
 0x500   : > { %4490 = sst [smem:[#allocation17 + $0x3]] (%p8807_p4), %s4875_s2  ;;  %s4878_s17 = smov 0  }
 0x501   : > { %4491 = sst [smem:[#allocation17 + $0x4]] (%p8807_p4), %s4875_s2 }
 0x502   : > { %4492 = sst [smem:[#allocation17 + $0x5]] (%p8807_p4), %s4876_s23 }
 0x503   : > { %4493 = dma.general (%p8807_p4), %s3629_s20, 32768, %s3611_s8, %s3596_s9, %s4877_s29, [#allocation17], %s4878_s17, 0  }
 0x504 PF: > { %s8808_s13 = sld [smem:[#allocation29_spill]]  ;;  %p4510_p11 = scmp.ge.s32.totalorder %s4858_s26, 2 }
 0x505   : > { %s3656_s24 = sand.u32 1, %s4818_s18  }
 0x506   : > { %s3657_s7 = scalar_lea.sflag [#allocation9], %s3656_s24 }
 0x50a   : > { %p8809_p2 = scmp.ne.s32.totalorder %s8808_s13, 0 }
 0x50c   : > { %p4503_p5 = pnand %p4510_p11, %p8809_p2 }
 0x50e   : > { %4813 = dma.done.wait (!%p4503_p5), %s3657_s7, 32768  }
 0x50f   : > { %4815 = vsyncadd (!%p4503_p5), %s3657_s7, 4294934528  ;;  %s30_s26 = sadd.s32 1, %s4858_s26   ;;  %s8810_s30 = sld [smem:[#allocation23_spill]] }
 0x510   : > { %p27_p6 = scmp.ge.s32.totalorder %s30_s26, 6   ;;  %s8811_s20 = sld [smem:[#allocation28_spill]] }
 0x511   : > { %s8812_s15 = sld [smem:[#allocation27_spill]]  ;;  %s8813_s2 = sld [smem:[#allocation24_spill]] }
 0x512   : > { %s8814_s24 = sld [smem:[#allocation25_spill]]  ;;  %s8815_s9 = sld [smem:[#allocation26_spill]] }
 0x513   : > { %s8816_s18 = smov %s4822_s19  ;;  %s8818_s21 = smov %s4834_s1 }
 0x514   : > { %s8819_s1 = smov %s4838_s22  ;;  %s8821_s23 = smov %s4854_s25 }
 0x515   : > { %s8817_s19 = smov %s8810_s30  ;;  %29 = sbr.rel (!%p27_p6) target bundleno = 29 (0x1d), region = 115 }
 0x517   : > { %s8820_s22 = smov %s8812_s15 }
 0x518   : > { %s8822_s25 = smov %s8815_s9 }
 0x51c   :  { %3662 = vsyncpa [#allocation8], 1 }
 0x51d   :  { %3664 = vsyncpa [#allocation8 + $0x1], 1 }
 0x51e   :  { %3665 = vsyncpa [#allocation11], 1 }
 0x51f   :  { %3666 = vsyncpa [#allocation9], 1 }
 0x520   :  { %3668 = vsyncpa [#allocation9 + $0x1], 1 }

</bundles_post_ra>
